<compile_context>
chip_gen: v7x
topology: tpu7x:2x2x1
jax: 0.10.0
libtpu: 0.0.40
codegen_flags: <defaults>
</compile_context>

<pallas_src>
import functools

import jax
import jax.numpy as jnp
from jax.experimental import pallas as pl
from jax.experimental.pallas import tpu as pltpu


# ------------------------------ fused forward -------------------------------

def mbconv_forward_nhwc(x, params, cfg):
    """Fused MBConvBlock forward.  x: (N, H, W, Cin) NHWC."""
    n, h, w, cin = x.shape
    k = cfg["kernel_size"]
    stride = cfg["stride"]
    pad = (k - 1) // 2
    has_expand = cfg["expand_ratio"] != 1
    has_se = bool(cfg["se_ratio"])
    use_residual = (cfg["input_filters"] == cfg["output_filters"]
                    and stride == 1)
    cmid = cin * cfg["expand_ratio"]
    cout = cfg["output_filters"]

    hp = h + 2 * pad                       # padded height
    h_out = (hp - k) // stride + 1
    w_out = (w + 2 * pad - k) // stride + 1
    # Left pad rounded up to a sublane multiple so the interior store into the
    # depthwise scratch is tile-aligned; taps read at sublane offset off+kw.
    lpad = (-(-pad // 8) * 8) if pad else 0
    wp = lpad + w + pad                    # scratch width
    off = lpad - pad

    def kernel(*refs):
        it = iter(refs)
        x_ref = next(it)
        if has_expand:
            w_exp_ref, bn0s_ref, bn0b_ref = next(it), next(it), next(it)
        w_dw_ref, bn1s_ref, bn1b_ref = next(it), next(it), next(it)
        if has_se:
            w_se1_ref, w_se2_ref = next(it), next(it)
        w_pw_ref, bn2s_ref, bn2b_ref = next(it), next(it), next(it)
        o_ref = next(it)
        xpad_ref = next(it)

        x_img = x_ref[0]                                    # (H, W, Cin)
        x2d = x_img.reshape(h * w, cin)

        # -- expand 1x1 conv + BN0 + SiLU (MXU bf16 inputs, f32 accumulate) --
        if has_expand:
            y = jnp.dot(x2d.astype(jnp.bfloat16), w_exp_ref[...],
                        preferred_element_type=jnp.float32)
            y = y * bn0s_ref[...] + bn0b_ref[...]
            y = y * jax.nn.sigmoid(y)
            y_mid = y.reshape(h, w, cmid)                   # (H, W, Cmid) f32
        else:
            y_mid = x_img.astype(jnp.float32)

        # -- depthwise KxK conv + BN1 + SiLU (VPU, f32) --
        xpad_ref[...] = jnp.zeros_like(xpad_ref)
        xpad_ref[pad:pad + h, lpad:lpad + w, :] = y_mid     # aligned store
        acc = jnp.zeros((h, w, cmid), jnp.float32)          # stride-1 accum
        for kh in range(k):
            for kw in range(k):
                patch = xpad_ref[kh:kh + h, off + kw:off + kw + w, :]
                acc = acc + patch * w_dw_ref[kh:kh + 1, kw:kw + 1, :]
        if stride > 1:
            # one decimation instead of k*k strided (sublane-gather) slices
            acc = jax.lax.slice(acc, (0, 0, 0), (h, w, cmid),
                                (stride, stride, 1))
        y = acc * bn1s_ref[...] + bn1b_ref[...]
        y = y * jax.nn.sigmoid(y)                           # (h_out, w_out, Cmid)
        y2d = y.reshape(h_out * w_out, cmid)

        # -- squeeze-excite: pooled epilogue + tiny FCs + gate fused in VMEM --
        if has_se:
            pooled = jnp.mean(y2d, axis=0, keepdims=True)   # (1, Cmid)
            hid = jnp.maximum(
                jnp.dot(pooled, w_se1_ref[...],
                        preferred_element_type=jnp.float32), 0.0)
            gate = jax.nn.sigmoid(
                jnp.dot(hid, w_se2_ref[...],
                        preferred_element_type=jnp.float32))  # (1, Cmid)
            y2d = y2d * gate

        # -- project 1x1 conv + BN2 (+ residual) --
        out = jnp.dot(y2d.astype(jnp.bfloat16), w_pw_ref[...],
                      preferred_element_type=jnp.float32)
        out = out * bn2s_ref[...] + bn2b_ref[...]
        if use_residual:
            out = out + x2d.astype(jnp.float32)
        o_ref[0] = out.reshape(h_out, w_out, cout).astype(o_ref.dtype)

    # ---- argument / BlockSpec assembly (order matches kernel unpacking) ----
    args = [x]
    in_specs = [pl.BlockSpec((1, h, w, cin), lambda i: (i, 0, 0, 0))]

    def add_full(a):
        args.append(a)
        in_specs.append(pl.BlockSpec(a.shape, lambda i, _nd=a.ndim: (0,) * _nd))

    if has_expand:
        add_full(params["w_expand"].astype(jnp.bfloat16))
        add_full(params["bn0_scale"].reshape(1, cmid).astype(jnp.float32))
        add_full(params["bn0_bias"].reshape(1, cmid).astype(jnp.float32))
    add_full(params["w_dw"].astype(jnp.float32))
    add_full(params["bn1_scale"].reshape(1, cmid).astype(jnp.float32))
    add_full(params["bn1_bias"].reshape(1, cmid).astype(jnp.float32))
    if has_se:
        add_full(params["w_se1"].astype(jnp.float32))
        add_full(params["w_se2"].astype(jnp.float32))
    add_full(params["w_pw"].astype(jnp.bfloat16))
    add_full(params["bn2_scale"].reshape(1, cout).astype(jnp.float32))
    add_full(params["bn2_bias"].reshape(1, cout).astype(jnp.float32))

    return pl.pallas_call(
        kernel,
        out_shape=jax.ShapeDtypeStruct((n, h_out, w_out, cout), x.dtype),
        grid_spec=pltpu.PrefetchScalarGridSpec(
            num_scalar_prefetch=0,
            grid=(n,),
            in_specs=in_specs,
            out_specs=pl.BlockSpec((1, h_out, w_out, cout),
                                   lambda i: (i, 0, 0, 0)),
            scratch_shapes=[pltpu.VMEM((hp, wp, cmid), jnp.float32)],
        ),
        compiler_params=pltpu.CompilerParams(
            dimension_semantics=("parallel",)),
    )(*args)


def mbconv_forward(x_nchw, params, cfg):
    """PyTorch-layout entry point.  x_nchw: (N, Cin, H, W) float32.

    Callers that can supply/consume NHWC should call mbconv_forward_nhwc
    directly and skip these two boundary transposes (each costs one extra HBM
    pass over the activation, done by XLA outside the kernel).
    """
    x = jnp.transpose(x_nchw, (0, 2, 3, 1))
    out = mbconv_forward_nhwc(x, params, cfg)
    return jnp.transpose(out, (0, 3, 1, 2))


# --------------------------- parameter construction --------------------------

def _fold_bn(key, c, eps=1e-5):
    k1, k2, k3, k4 = jax.random.split(key, 4)
    gamma = jax.random.uniform(k1, (c,), jnp.float32, 0.5, 1.5)
    beta = 0.1 * jax.random.normal(k2, (c,), jnp.float32)
    mean = 0.1 * jax.random.normal(k3, (c,), jnp.float32)
    var = jax.random.uniform(k4, (c,), jnp.float32, 0.5, 1.5)
    scale = gamma / jnp.sqrt(var + eps)
    bias = beta - mean * scale
    return scale, bias


def make_params(key, cfg):
    cin = cfg["input_filters"]
    cmid = cin * cfg["expand_ratio"]
    cout = cfg["output_filters"]
    hid = int(cmid * cfg["se_ratio"]) if cfg["se_ratio"] else 0
    ks = cfg["kernel_size"]
    keys = jax.random.split(key, 8)
    params = {
        # PyTorch expand conv weight (Cmid, Cin, 1, 1) stored as (Cin, Cmid)
        "w_expand": 0.2 * jax.random.normal(keys[0], (cin, cmid), jnp.float32),
        # PyTorch dw conv weight (Cmid, 1, K, K) stored as (K, K, Cmid)
        "w_dw": 0.2 * jax.random.normal(keys[1], (ks, ks, cmid), jnp.float32),
        # PyTorch pw conv weight (Cout, Cmid, 1, 1) stored as (Cmid, Cout)
        "w_pw": 0.2 * jax.random.normal(keys[4], (cmid, cout), jnp.float32),
    }
    if cfg["se_ratio"]:
        # PyTorch Linear(cmid, hid).weight is (hid, cmid); stored transposed.
        params["w_se1"] = 0.2 * jax.random.normal(keys[2], (cmid, hid), jnp.float32)
        params["w_se2"] = 0.2 * jax.random.normal(keys[3], (hid, cmid), jnp.float32)
    params["bn0_scale"], params["bn0_bias"] = _fold_bn(keys[5], cmid)
    params["bn1_scale"], params["bn1_bias"] = _fold_bn(keys[6], cmid)
    params["bn2_scale"], params["bn2_bias"] = _fold_bn(keys[7], cout)
    return params


# ----------------------------- pure-JAX reference ----------------------------

def mbconv_reference(x_nchw, params, cfg):
    """XLA reference, numerically matched to the kernel (bf16 MXU inputs for
    the 1x1 convs, f32 everywhere else)."""
    hi = jax.lax.Precision.HIGHEST
    x = jnp.transpose(x_nchw, (0, 2, 3, 1)).astype(jnp.float32)
    inputs = x
    y = x
    if cfg["expand_ratio"] != 1:
        y = jnp.einsum("nhwc,cd->nhwd", x.astype(jnp.bfloat16),
                       params["w_expand"].astype(jnp.bfloat16),
                       preferred_element_type=jnp.float32)
        y = y * params["bn0_scale"] + params["bn0_bias"]
        y = y * jax.nn.sigmoid(y)
    k, s = cfg["kernel_size"], cfg["stride"]
    pad = (k - 1) // 2
    cmid = y.shape[-1]
    y = jax.lax.conv_general_dilated(
        y, params["w_dw"].reshape(k, k, 1, cmid),
        window_strides=(s, s), padding=[(pad, pad), (pad, pad)],
        dimension_numbers=("NHWC", "HWIO", "NHWC"),
        feature_group_count=cmid, precision=hi)
    y = y * params["bn1_scale"] + params["bn1_bias"]
    y = y * jax.nn.sigmoid(y)
    if cfg["se_ratio"]:
        pooled = jnp.mean(y, axis=(1, 2))
        hdn = jnp.maximum(jnp.dot(pooled, params["w_se1"], precision=hi), 0.0)
        g = jax.nn.sigmoid(jnp.dot(hdn, params["w_se2"], precision=hi))
        y = y * g[:, None, None, :]
    out = jnp.einsum("nhwc,cd->nhwd", y.astype(jnp.bfloat16),
                     params["w_pw"].astype(jnp.bfloat16),
                     preferred_element_type=jnp.float32)
    out = out * params["bn2_scale"] + params["bn2_bias"]
    if (cfg["input_filters"] == cfg["output_filters"] and cfg["stride"] == 1):
        out = out + inputs
    return jnp.transpose(out, (0, 3, 1, 2))


# ----------------------------------- main ------------------------------------

if __name__ == "__main__":
    cfg = dict(input_filters=8, output_filters=8, expand_ratio=4,
               kernel_size=3, stride=1, se_ratio=0.25)

    key = jax.random.PRNGKey(0)
    kx, kp = jax.random.split(key)
    x = jax.random.normal(kx, (2, cfg["input_filters"], 16, 16), jnp.float32)
    params = make_params(kp, cfg)

    fwd = jax.jit(functools.partial(mbconv_forward, cfg=cfg))
    out = jax.block_until_ready(fwd(x, params))

    assert out.shape == (2, cfg["output_filters"], 16, 16), out.shape
    assert bool(jnp.all(jnp.isfinite(out)))

    ref = mbconv_reference(x, params, cfg)
    err = float(jnp.max(jnp.abs(out - ref)))
    assert err < 3e-2, f"max abs error vs reference: {err}"

    print("KERNEL_OK")
</pallas_src>

<mosaic_0001>
module attributes {stable_mosaic.version = 11 : i64} {
  func.func @kernel(%arg0: i32, %arg1: memref<1x16x16x8xf32, #tpu.memory_space<vmem>>, %arg2: memref<8x32xbf16, #tpu.memory_space<vmem>>, %arg3: memref<1x32xf32, #tpu.memory_space<vmem>>, %arg4: memref<1x32xf32, #tpu.memory_space<vmem>>, %arg5: memref<3x3x32xf32, #tpu.memory_space<vmem>>, %arg6: memref<1x32xf32, #tpu.memory_space<vmem>>, %arg7: memref<1x32xf32, #tpu.memory_space<vmem>>, %arg8: memref<32x8xf32, #tpu.memory_space<vmem>>, %arg9: memref<8x32xf32, #tpu.memory_space<vmem>>, %arg10: memref<32x8xbf16, #tpu.memory_space<vmem>>, %arg11: memref<1x8xf32, #tpu.memory_space<vmem>>, %arg12: memref<1x8xf32, #tpu.memory_space<vmem>>, %arg13: memref<1x16x16x8xf32, #tpu.memory_space<vmem>>, %arg14: memref<18x25x32xf32, #tpu.memory_space<vmem>>) attributes {dimension_semantics = [#tpu.dimension_semantics<parallel>], iteration_bounds = array<i64: 2>, scalar_prefetch = 0 : i64, scratch_operands = 1 : i64, tpu.core_type = #tpu.core_type<tc>, window_params = [{transform_indices = @transform_0, window_bounds = array<i64: 1, 16, 16, 8>}, {pipeline_mode = #tpu.pipeline_mode<synchronous>, transform_indices = @transform_1, window_bounds = array<i64: 8, 32>}, {pipeline_mode = #tpu.pipeline_mode<synchronous>, transform_indices = @transform_2, window_bounds = array<i64: 1, 32>}, {pipeline_mode = #tpu.pipeline_mode<synchronous>, transform_indices = @transform_3, window_bounds = array<i64: 1, 32>}, {pipeline_mode = #tpu.pipeline_mode<synchronous>, transform_indices = @transform_4, window_bounds = array<i64: 3, 3, 32>}, {pipeline_mode = #tpu.pipeline_mode<synchronous>, transform_indices = @transform_5, window_bounds = array<i64: 1, 32>}, {pipeline_mode = #tpu.pipeline_mode<synchronous>, transform_indices = @transform_6, window_bounds = array<i64: 1, 32>}, {pipeline_mode = #tpu.pipeline_mode<synchronous>, transform_indices = @transform_7, window_bounds = array<i64: 32, 8>}, {pipeline_mode = #tpu.pipeline_mode<synchronous>, transform_indices = @transform_8, window_bounds = array<i64: 8, 32>}, {pipeline_mode = #tpu.pipeline_mode<synchronous>, transform_indices = @transform_9, window_bounds = array<i64: 32, 8>}, {pipeline_mode = #tpu.pipeline_mode<synchronous>, transform_indices = @transform_10, window_bounds = array<i64: 1, 8>}, {pipeline_mode = #tpu.pipeline_mode<synchronous>, transform_indices = @transform_11, window_bounds = array<i64: 1, 8>}, {transform_indices = @transform_12, window_bounds = array<i64: 1, 16, 16, 8>}]} {
    %c0 = arith.constant 0 : index
    %c0_0 = arith.constant 0 : index
    %c0_1 = arith.constant 0 : index
    %c0_2 = arith.constant 0 : index
    %0 = vector.load %arg1[%c0, %c0_0, %c0_1, %c0_2] : memref<1x16x16x8xf32, #tpu.memory_space<vmem>>, vector<1x16x16x8xf32>
    %1 = vector.shape_cast %0 : vector<1x16x16x8xf32> to vector<16x16x8xf32>
    %2 = vector.shape_cast %1 : vector<16x16x8xf32> to vector<256x8xf32>
    %3 = arith.truncf %2 : vector<256x8xf32> to vector<256x8xbf16>
    %c0_3 = arith.constant 0 : index
    %c0_4 = arith.constant 0 : index
    %4 = vector.load %arg2[%c0_3, %c0_4] : memref<8x32xbf16, #tpu.memory_space<vmem>>, vector<8x32xbf16>
    %cst = arith.constant dense<0.000000e+00> : vector<256x32xf32>
    %5 = tpu.matmul %3, %4, %cst {dimension_numbers = #tpu.dot_dimension_numbers<[1], [0], [0], [1], [0, 0, 1, 1], [], []>} : vector<256x8xbf16>, vector<8x32xbf16>, vector<256x32xf32> -> vector<256x32xf32>
    %c0_5 = arith.constant 0 : index
    %c0_6 = arith.constant 0 : index
    %6 = vector.load %arg3[%c0_5, %c0_6] : memref<1x32xf32, #tpu.memory_space<vmem>>, vector<1x32xf32>
    %7 = vector.broadcast %6 : vector<1x32xf32> to vector<256x32xf32>
    %8 = arith.mulf %5, %7 : vector<256x32xf32>
    %c0_7 = arith.constant 0 : index
    %c0_8 = arith.constant 0 : index
    %9 = vector.load %arg4[%c0_7, %c0_8] : memref<1x32xf32, #tpu.memory_space<vmem>>, vector<1x32xf32>
    %10 = vector.broadcast %9 : vector<1x32xf32> to vector<256x32xf32>
    %11 = arith.addf %8, %10 : vector<256x32xf32>
    %12 = arith.negf %11 : vector<256x32xf32>
    %13 = math.exp %12 : vector<256x32xf32>
    %cst_9 = arith.constant 1.000000e+00 : f32
    %14 = vector.broadcast %cst_9 : f32 to vector<256x32xf32>
    %15 = arith.addf %14, %13 : vector<256x32xf32>
    %16 = arith.divf %14, %15 : vector<256x32xf32>
    %17 = arith.mulf %11, %16 : vector<256x32xf32>
    %18 = vector.shape_cast %17 : vector<256x32xf32> to vector<16x16x32xf32>
    %cst_10 = arith.constant 0.000000e+00 : f32
    %19 = vector.broadcast %cst_10 : f32 to vector<18x25x32xf32>
    %c0_11 = arith.constant 0 : index
    %c0_12 = arith.constant 0 : index
    %c0_13 = arith.constant 0 : index
    %20 = vector.load %arg14[%c0_11, %c0_12, %c0_13] : memref<18x25x32xf32, #tpu.memory_space<vmem>>, vector<18x25x32xf32>
    tpu.vector_store %arg14[%c0_11, %c0_12, %c0_13], %19 {strides = array<i32>} : memref<18x25x32xf32, #tpu.memory_space<vmem>>, vector<18x25x32xf32>,
    %c1 = arith.constant 1 : index
    %c8 = arith.constant 8 : index
    %c0_14 = arith.constant 0 : index
    %21 = vector.load %arg14[%c1, %c8, %c0_14] : memref<18x25x32xf32, #tpu.memory_space<vmem>>, vector<16x16x32xf32>
    tpu.vector_store %arg14[%c1, %c8, %c0_14], %18 {strides = array<i32>} : memref<18x25x32xf32, #tpu.memory_space<vmem>>, vector<16x16x32xf32>,
    %cst_15 = arith.constant 0.000000e+00 : f32
    %22 = vector.broadcast %cst_15 : f32 to vector<16x16x32xf32>
    %c0_16 = arith.constant 0 : index
    %c7 = arith.constant 7 : index
    %c0_17 = arith.constant 0 : index
    %23 = vector.load %arg14[%c0_16, %c7, %c0_17] : memref<18x25x32xf32, #tpu.memory_space<vmem>>, vector<16x16x32xf32>
    %c0_18 = arith.constant 0 : index
    %c0_19 = arith.constant 0 : index
    %c0_20 = arith.constant 0 : index
    %24 = vector.load %arg5[%c0_18, %c0_19, %c0_20] : memref<3x3x32xf32, #tpu.memory_space<vmem>>, vector<1x1x32xf32>
    %25 = vector.broadcast %24 : vector<1x1x32xf32> to vector<16x16x32xf32>
    %26 = arith.mulf %23, %25 : vector<16x16x32xf32>
    %27 = arith.addf %22, %26 : vector<16x16x32xf32>
    %c0_21 = arith.constant 0 : index
    %c8_22 = arith.constant 8 : index
    %c0_23 = arith.constant 0 : index
    %28 = vector.load %arg14[%c0_21, %c8_22, %c0_23] : memref<18x25x32xf32, #tpu.memory_space<vmem>>, vector<16x16x32xf32>
    %c0_24 = arith.constant 0 : index
    %c1_25 = arith.constant 1 : index
    %c0_26 = arith.constant 0 : index
    %29 = vector.load %arg5[%c0_24, %c1_25, %c0_26] : memref<3x3x32xf32, #tpu.memory_space<vmem>>, vector<1x1x32xf32>
    %30 = vector.broadcast %29 : vector<1x1x32xf32> to vector<16x16x32xf32>
    %31 = arith.mulf %28, %30 : vector<16x16x32xf32>
    %32 = arith.addf %27, %31 : vector<16x16x32xf32>
    %c0_27 = arith.constant 0 : index
    %c9 = arith.constant 9 : index
    %c0_28 = arith.constant 0 : index
    %33 = vector.load %arg14[%c0_27, %c9, %c0_28] : memref<18x25x32xf32, #tpu.memory_space<vmem>>, vector<16x16x32xf32>
    %c0_29 = arith.constant 0 : index
    %c2 = arith.constant 2 : index
    %c0_30 = arith.constant 0 : index
    %34 = vector.load %arg5[%c0_29, %c2, %c0_30] : memref<3x3x32xf32, #tpu.memory_space<vmem>>, vector<1x1x32xf32>
    %35 = vector.broadcast %34 : vector<1x1x32xf32> to vector<16x16x32xf32>
    %36 = arith.mulf %33, %35 : vector<16x16x32xf32>
    %37 = arith.addf %32, %36 : vector<16x16x32xf32>
    %c1_31 = arith.constant 1 : index
    %c7_32 = arith.constant 7 : index
    %c0_33 = arith.constant 0 : index
    %38 = vector.load %arg14[%c1_31, %c7_32, %c0_33] : memref<18x25x32xf32, #tpu.memory_space<vmem>>, vector<16x16x32xf32>
    %c1_34 = arith.constant 1 : index
    %c0_35 = arith.constant 0 : index
    %c0_36 = arith.constant 0 : index
    %39 = vector.load %arg5[%c1_34, %c0_35, %c0_36] : memref<3x3x32xf32, #tpu.memory_space<vmem>>, vector<1x1x32xf32>
    %40 = vector.broadcast %39 : vector<1x1x32xf32> to vector<16x16x32xf32>
    %41 = arith.mulf %38, %40 : vector<16x16x32xf32>
    %42 = arith.addf %37, %41 : vector<16x16x32xf32>
    %c1_37 = arith.constant 1 : index
    %c8_38 = arith.constant 8 : index
    %c0_39 = arith.constant 0 : index
    %43 = vector.load %arg14[%c1_37, %c8_38, %c0_39] : memref<18x25x32xf32, #tpu.memory_space<vmem>>, vector<16x16x32xf32>
    %c1_40 = arith.constant 1 : index
    %c1_41 = arith.constant 1 : index
    %c0_42 = arith.constant 0 : index
    %44 = vector.load %arg5[%c1_40, %c1_41, %c0_42] : memref<3x3x32xf32, #tpu.memory_space<vmem>>, vector<1x1x32xf32>
    %45 = vector.broadcast %44 : vector<1x1x32xf32> to vector<16x16x32xf32>
    %46 = arith.mulf %43, %45 : vector<16x16x32xf32>
    %47 = arith.addf %42, %46 : vector<16x16x32xf32>
    %c1_43 = arith.constant 1 : index
    %c9_44 = arith.constant 9 : index
    %c0_45 = arith.constant 0 : index
    %48 = vector.load %arg14[%c1_43, %c9_44, %c0_45] : memref<18x25x32xf32, #tpu.memory_space<vmem>>, vector<16x16x32xf32>
    %c1_46 = arith.constant 1 : index
    %c2_47 = arith.constant 2 : index
    %c0_48 = arith.constant 0 : index
    %49 = vector.load %arg5[%c1_46, %c2_47, %c0_48] : memref<3x3x32xf32, #tpu.memory_space<vmem>>, vector<1x1x32xf32>
    %50 = vector.broadcast %49 : vector<1x1x32xf32> to vector<16x16x32xf32>
    %51 = arith.mulf %48, %50 : vector<16x16x32xf32>
    %52 = arith.addf %47, %51 : vector<16x16x32xf32>
    %c2_49 = arith.constant 2 : index
    %c7_50 = arith.constant 7 : index
    %c0_51 = arith.constant 0 : index
    %53 = vector.load %arg14[%c2_49, %c7_50, %c0_51] : memref<18x25x32xf32, #tpu.memory_space<vmem>>, vector<16x16x32xf32>
    %c2_52 = arith.constant 2 : index
    %c0_53 = arith.constant 0 : index
    %c0_54 = arith.constant 0 : index
    %54 = vector.load %arg5[%c2_52, %c0_53, %c0_54] : memref<3x3x32xf32, #tpu.memory_space<vmem>>, vector<1x1x32xf32>
    %55 = vector.broadcast %54 : vector<1x1x32xf32> to vector<16x16x32xf32>
    %56 = arith.mulf %53, %55 : vector<16x16x32xf32>
    %57 = arith.addf %52, %56 : vector<16x16x32xf32>
    %c2_55 = arith.constant 2 : index
    %c8_56 = arith.constant 8 : index
    %c0_57 = arith.constant 0 : index
    %58 = vector.load %arg14[%c2_55, %c8_56, %c0_57] : memref<18x25x32xf32, #tpu.memory_space<vmem>>, vector<16x16x32xf32>
    %c2_58 = arith.constant 2 : index
    %c1_59 = arith.constant 1 : index
    %c0_60 = arith.constant 0 : index
    %59 = vector.load %arg5[%c2_58, %c1_59, %c0_60] : memref<3x3x32xf32, #tpu.memory_space<vmem>>, vector<1x1x32xf32>
    %60 = vector.broadcast %59 : vector<1x1x32xf32> to vector<16x16x32xf32>
    %61 = arith.mulf %58, %60 : vector<16x16x32xf32>
    %62 = arith.addf %57, %61 : vector<16x16x32xf32>
    %c2_61 = arith.constant 2 : index
    %c9_62 = arith.constant 9 : index
    %c0_63 = arith.constant 0 : index
    %63 = vector.load %arg14[%c2_61, %c9_62, %c0_63] : memref<18x25x32xf32, #tpu.memory_space<vmem>>, vector<16x16x32xf32>
    %c2_64 = arith.constant 2 : index
    %c2_65 = arith.constant 2 : index
    %c0_66 = arith.constant 0 : index
    %64 = vector.load %arg5[%c2_64, %c2_65, %c0_66] : memref<3x3x32xf32, #tpu.memory_space<vmem>>, vector<1x1x32xf32>
    %65 = vector.broadcast %64 : vector<1x1x32xf32> to vector<16x16x32xf32>
    %66 = arith.mulf %63, %65 : vector<16x16x32xf32>
    %67 = arith.addf %62, %66 : vector<16x16x32xf32>
    %c0_67 = arith.constant 0 : index
    %c0_68 = arith.constant 0 : index
    %68 = vector.load %arg6[%c0_67, %c0_68] : memref<1x32xf32, #tpu.memory_space<vmem>>, vector<1x32xf32>
    %69 = vector.shape_cast %68 : vector<1x32xf32> to vector<1x1x32xf32>
    %70 = vector.broadcast %69 : vector<1x1x32xf32> to vector<16x16x32xf32>
    %71 = arith.mulf %67, %70 : vector<16x16x32xf32>
    %c0_69 = arith.constant 0 : index
    %c0_70 = arith.constant 0 : index
    %72 = vector.load %arg7[%c0_69, %c0_70] : memref<1x32xf32, #tpu.memory_space<vmem>>, vector<1x32xf32>
    %73 = vector.shape_cast %72 : vector<1x32xf32> to vector<1x1x32xf32>
    %74 = vector.broadcast %73 : vector<1x1x32xf32> to vector<16x16x32xf32>
    %75 = arith.addf %71, %74 : vector<16x16x32xf32>
    %76 = arith.negf %75 : vector<16x16x32xf32>
    %77 = math.exp %76 : vector<16x16x32xf32>
    %cst_71 = arith.constant 1.000000e+00 : f32
    %78 = vector.broadcast %cst_71 : f32 to vector<16x16x32xf32>
    %79 = arith.addf %78, %77 : vector<16x16x32xf32>
    %80 = arith.divf %78, %79 : vector<16x16x32xf32>
    %81 = arith.mulf %75, %80 : vector<16x16x32xf32>
    %82 = vector.shape_cast %81 : vector<16x16x32xf32> to vector<256x32xf32>
    %cst_72 = arith.constant dense<0.000000e+00> : vector<32xf32>
    %83 = vector.multi_reduction <add>, %82, %cst_72 [0] : vector<256x32xf32> to vector<32xf32>
    %84 = vector.shape_cast %83 : vector<32xf32> to vector<1x32xf32>
    %cst_73 = arith.constant 2.560000e+02 : f32
    %85 = vector.broadcast %cst_73 : f32 to vector<1x32xf32>
    %86 = arith.divf %84, %85 : vector<1x32xf32>
    %c0_74 = arith.constant 0 : index
    %c0_75 = arith.constant 0 : index
    %87 = vector.load %arg8[%c0_74, %c0_75] : memref<32x8xf32, #tpu.memory_space<vmem>>, vector<32x8xf32>
    %cst_76 = arith.constant dense<0.000000e+00> : vector<1x8xf32>
    %88 = tpu.matmul %86, %87, %cst_76 {dimension_numbers = #tpu.dot_dimension_numbers<[1], [0], [0], [1], [0, 0, 1, 1], [], []>} : vector<1x32xf32>, vector<32x8xf32>, vector<1x8xf32> -> vector<1x8xf32>
    %cst_77 = arith.constant 0.000000e+00 : f32
    %89 = vector.broadcast %cst_77 : f32 to vector<1x8xf32>
    %90 = arith.maximumf %88, %89 : vector<1x8xf32>
    %c0_78 = arith.constant 0 : index
    %c0_79 = arith.constant 0 : index
    %91 = vector.load %arg9[%c0_78, %c0_79] : memref<8x32xf32, #tpu.memory_space<vmem>>, vector<8x32xf32>
    %cst_80 = arith.constant dense<0.000000e+00> : vector<1x32xf32>
    %92 = tpu.matmul %90, %91, %cst_80 {dimension_numbers = #tpu.dot_dimension_numbers<[1], [0], [0], [1], [0, 0, 1, 1], [], []>} : vector<1x8xf32>, vector<8x32xf32>, vector<1x32xf32> -> vector<1x32xf32>
    %93 = arith.negf %92 : vector<1x32xf32>
    %94 = math.exp %93 : vector<1x32xf32>
    %cst_81 = arith.constant 1.000000e+00 : f32
    %95 = vector.broadcast %cst_81 : f32 to vector<1x32xf32>
    %96 = arith.addf %95, %94 : vector<1x32xf32>
    %97 = arith.divf %95, %96 : vector<1x32xf32>
    %98 = vector.broadcast %97 : vector<1x32xf32> to vector<256x32xf32>
    %99 = arith.mulf %82, %98 : vector<256x32xf32>
    %100 = arith.truncf %99 : vector<256x32xf32> to vector<256x32xbf16>
    %c0_82 = arith.constant 0 : index
    %c0_83 = arith.constant 0 : index
    %101 = vector.load %arg10[%c0_82, %c0_83] : memref<32x8xbf16, #tpu.memory_space<vmem>>, vector<32x8xbf16>
    %cst_84 = arith.constant dense<0.000000e+00> : vector<256x8xf32>
    %102 = tpu.matmul %100, %101, %cst_84 {dimension_numbers = #tpu.dot_dimension_numbers<[1], [0], [0], [1], [0, 0, 1, 1], [], []>} : vector<256x32xbf16>, vector<32x8xbf16>, vector<256x8xf32> -> vector<256x8xf32>
    %c0_85 = arith.constant 0 : index
    %c0_86 = arith.constant 0 : index
    %103 = vector.load %arg11[%c0_85, %c0_86] : memref<1x8xf32, #tpu.memory_space<vmem>>, vector<1x8xf32>
    %104 = vector.broadcast %103 : vector<1x8xf32> to vector<256x8xf32>
    %105 = arith.mulf %102, %104 : vector<256x8xf32>
    %c0_87 = arith.constant 0 : index
    %c0_88 = arith.constant 0 : index
    %106 = vector.load %arg12[%c0_87, %c0_88] : memref<1x8xf32, #tpu.memory_space<vmem>>, vector<1x8xf32>
    %107 = vector.broadcast %106 : vector<1x8xf32> to vector<256x8xf32>
    %108 = arith.addf %105, %107 : vector<256x8xf32>
    %109 = arith.addf %108, %2 : vector<256x8xf32>
    %110 = vector.shape_cast %109 : vector<256x8xf32> to vector<16x16x8xf32>
    %c0_89 = arith.constant 0 : index
    %c0_90 = arith.constant 0 : index
    %c0_91 = arith.constant 0 : index
    %c0_92 = arith.constant 0 : index
    %111 = vector.load %arg13[%c0_89, %c0_90, %c0_91, %c0_92] : memref<1x16x16x8xf32, #tpu.memory_space<vmem>>, vector<1x16x16x8xf32>
    %112 = vector.shape_cast %111 : vector<1x16x16x8xf32> to vector<16x16x8xf32>
    %113 = vector.shape_cast %110 : vector<16x16x8xf32> to vector<1x16x16x8xf32>
    tpu.vector_store %arg13[%c0_89, %c0_90, %c0_91, %c0_92], %113 {strides = array<i32>} : memref<1x16x16x8xf32, #tpu.memory_space<vmem>>, vector<1x16x16x8xf32>,
    return
  }
  func.func @transform_0(%arg0: i32) -> (i32, i32, i32, i32) {
    %c0_i32 = arith.constant 0 : i32
    %c0_i32_0 = arith.constant 0 : i32
    %c0_i32_1 = arith.constant 0 : i32
    %c0_i32_2 = arith.constant 0 : i32
    return %arg0, %c0_i32, %c0_i32_0, %c0_i32_1 : i32, i32, i32, i32
  }
  func.func @transform_1(%arg0: i32) -> (i32, i32) {
    %c0_i32 = arith.constant 0 : i32
    %c0_i32_0 = arith.constant 0 : i32
    %c0_i32_1 = arith.constant 0 : i32
    return %c0_i32, %c0_i32_0 : i32, i32
  }
  func.func @transform_2(%arg0: i32) -> (i32, i32) {
    %c0_i32 = arith.constant 0 : i32
    %c0_i32_0 = arith.constant 0 : i32
    %c0_i32_1 = arith.constant 0 : i32
    return %c0_i32, %c0_i32_0 : i32, i32
  }
  func.func @transform_3(%arg0: i32) -> (i32, i32) {
    %c0_i32 = arith.constant 0 : i32
    %c0_i32_0 = arith.constant 0 : i32
    %c0_i32_1 = arith.constant 0 : i32
    return %c0_i32, %c0_i32_0 : i32, i32
  }
  func.func @transform_4(%arg0: i32) -> (i32, i32, i32) {
    %c0_i32 = arith.constant 0 : i32
    %c0_i32_0 = arith.constant 0 : i32
    %c0_i32_1 = arith.constant 0 : i32
    %c0_i32_2 = arith.constant 0 : i32
    return %c0_i32, %c0_i32_0, %c0_i32_1 : i32, i32, i32
  }
  func.func @transform_5(%arg0: i32) -> (i32, i32) {
    %c0_i32 = arith.constant 0 : i32
    %c0_i32_0 = arith.constant 0 : i32
    %c0_i32_1 = arith.constant 0 : i32
    return %c0_i32, %c0_i32_0 : i32, i32
  }
  func.func @transform_6(%arg0: i32) -> (i32, i32) {
    %c0_i32 = arith.constant 0 : i32
    %c0_i32_0 = arith.constant 0 : i32
    %c0_i32_1 = arith.constant 0 : i32
    return %c0_i32, %c0_i32_0 : i32, i32
  }
  func.func @transform_7(%arg0: i32) -> (i32, i32) {
    %c0_i32 = arith.constant 0 : i32
    %c0_i32_0 = arith.constant 0 : i32
    %c0_i32_1 = arith.constant 0 : i32
    return %c0_i32, %c0_i32_0 : i32, i32
  }
  func.func @transform_8(%arg0: i32) -> (i32, i32) {
    %c0_i32 = arith.constant 0 : i32
    %c0_i32_0 = arith.constant 0 : i32
    %c0_i32_1 = arith.constant 0 : i32
    return %c0_i32, %c0_i32_0 : i32, i32
  }
  func.func @transform_9(%arg0: i32) -> (i32, i32) {
    %c0_i32 = arith.constant 0 : i32
    %c0_i32_0 = arith.constant 0 : i32
    %c0_i32_1 = arith.constant 0 : i32
    return %c0_i32, %c0_i32_0 : i32, i32
  }
  func.func @transform_10(%arg0: i32) -> (i32, i32) {
    %c0_i32 = arith.constant 0 : i32
    %c0_i32_0 = arith.constant 0 : i32
    %c0_i32_1 = arith.constant 0 : i32
    return %c0_i32, %c0_i32_0 : i32, i32
  }
  func.func @transform_11(%arg0: i32) -> (i32, i32) {
    %c0_i32 = arith.constant 0 : i32
    %c0_i32_0 = arith.constant 0 : i32
    %c0_i32_1 = arith.constant 0 : i32
    return %c0_i32, %c0_i32_0 : i32, i32
  }
  func.func @transform_12(%arg0: i32) -> (i32, i32, i32, i32) {
    %c0_i32 = arith.constant 0 : i32
    %c0_i32_0 = arith.constant 0 : i32
    %c0_i32_1 = arith.constant 0 : i32
    %c0_i32_2 = arith.constant 0 : i32
    return %arg0, %c0_i32, %c0_i32_0, %c0_i32_1 : i32, i32, i32, i32
  }
}

</mosaic_0001>

<bundles_post_ra>
// kernel: mbconv_forward.1
= control target key start
LH: loop header
LB: loop body
LE: loop exit
PB: predicated region body
PF: predicated region fallthrough
CT: control target
= control target key end

     0   :  { %s3673_s21 = smov 0   ;;  %s5462_s0 = inlined_call_operand.vmem [shape: f32[2,16,16,8], index: 0, kind: input, shape index: {}]   ;;  %s5463_s1 = inlined_call_operand.vmem [shape: bf16[8,32], index: 1, kind: input, shape index: {}]   ;;  %s5464_s2 = inlined_call_operand.vmem [shape: f32[1,32], index: 2, kind: input, shape index: {}]   ;;  %s5465_s3 = inlined_call_operand.vmem [shape: f32[1,32], index: 3, kind: input, shape index: {}]   ;;  %s5466_s4 = inlined_call_operand.vmem [shape: f32[3,3,32], index: 4, kind: input, shape index: {}]   ;;  %s5467_s5 = inlined_call_operand.vmem [shape: f32[1,32], index: 5, kind: input, shape index: {}]   ;;  %s5468_s6 = inlined_call_operand.vmem [shape: f32[1,32], index: 6, kind: input, shape index: {}]   ;;  %s5469_s7 = inlined_call_operand.vmem [shape: f32[32,8], index: 7, kind: input, shape index: {}]   ;;  %s5470_s8 = inlined_call_operand.vmem [shape: f32[8,32], index: 8, kind: input, shape index: {}]   ;;  %s5471_s9 = inlined_call_operand.vmem [shape: bf16[32,8], index: 9, kind: input, shape index: {}]   ;;  %s5472_s10 = inlined_call_operand.vmem [shape: f32[1,8], index: 10, kind: input, shape index: {}]   ;;  %s5473_s11 = inlined_call_operand.vmem [shape: f32[1,8], index: 11, kind: input, shape index: {}]   ;;  %s5474_s12 = inlined_call_operand.vmem [shape: f32[2,16,16,8], index: 12, kind: output, shape index: {}]  }
   0x1 LB: > { %s3004_s22 = sadd.s32 4294967295, %s3603_s21   ;;  %p3008_p0 = scmp.ge.s32.totalorder %s3603_s21, 1  ;;  %s3603_s21 = sphi %s3673_s21, %s22_s21  }
   0x2   : > { %p362_p1 = scmp.lt.s32.totalorder %s3603_s21, 3 }
   0x4   : > { %p363_p2 = pnand %p3008_p0, %p362_p1 }
   0x6   : > { %366 = sbr.rel (%p363_p2) target bundleno = 1297 (0x511), region = 68 }
   0xd   : > { %v463_v0 = vld [vmem:[%s5463_s1] sm:$0xf]  ;;  %vm513_vm0 = vcmask 1043456   ;;  %p404_p3 = scmp.lt.s32.totalorder %s3004_s22, 1  ;;  %vm464_vm1 = vcmask 64512   ;;  %vm980_vm2 = vcmask 261120  }
   0xe   : > { %3273 = vmatprep.subr.msk.bf16.mxu0 %vm513_vm0, %v463_v0  ;;  %v515_v1 = vsel %vm513_vm0, %v463_v0, 0  ;;  %v5475_v50 = vmov 0.0   ;;  %vm984_vm3 = vcmask 253952   ;;  %v3890_v51 = vld [vmem:[%s5464_s2] ss:$0 sm:$0xff]  ;;  %vm3607_vm4 = vmmov 0  }
   0xf   : > { %3182 = vmatpush3.bf16.msra.mxu0 %v515_v1  ;;  %s5554_s22 = smov (!%p404_p3, %s3004_s22), 1  ;;  %990 = vst.msk [vmem:[#allocation2 + $0x40] sm:$0xff] %vm980_vm2, %v5475_v50  ;;  %991 = vst.msk [vmem:[#allocation2 + $0x48] sm:$0xff] %vm980_vm2, %v5475_v50  ;;  %3226 = vmatprep.subr.mxu1 %v5475_v50  ;;  %v3895_v53 = vld [vmem:[%s5465_s3] ss:$0 sm:$0xff] }
  0x10   : > { %s3137_s25 = sshll.u32 %s5554_s22, 8  ;;  %981 = vst.msk [vmem:[#allocation2] sm:$0xff] %vm980_vm2, %v5475_v50  ;;  %982 = vst.msk [vmem:[#allocation2 + $0x8] sm:$0xff] %vm980_vm2, %v5475_v50 }
  0x11   : > { %s3692_s28 = scalar_lea.vmem %s5462_s0, %s3137_s25  ;;  %983 = vst.msk [vmem:[#allocation2 + $0x10] sm:$0xff] %vm980_vm2, %v5475_v50  ;;  %986 = vst.msk [vmem:[#allocation2 + $0x20] sm:$0xff] %vm980_vm2, %v5475_v50  ;;  %s5301_s26 = scalar_lea.vmem %s5474_s12, %s3137_s25 }
  0x12   : > { %v415_v2 = vld [vmem:[%s3692_s28] sm:$0xff]  ;;  %v416_v3 = vld [vmem:[%s3692_s28 + $0x8] sm:$0xff]  ;;  %v417_v4 = vld [vmem:[%s3692_s28 + $0x10] sm:$0xff]  ;;  %987 = vst.msk [vmem:[#allocation2 + $0x28] sm:$0xff] %vm980_vm2, %v5475_v50 }
  0x13   : > { %v447_v5 = vpack.c.bf16 %v416_v3, %v415_v2  ;;  %v418_v6 = vld [vmem:[%s3692_s28 + $0x18] sm:$0xff]  ;;  %v419_v7 = vld [vmem:[%s3692_s28 + $0x20] sm:$0xff]  ;;  %v420_v8 = vld [vmem:[%s3692_s28 + $0x28] sm:$0xff]  ;;  %988 = vst.msk [vmem:[#allocation2 + $0x30] sm:$0xff] %vm980_vm2, %v5475_v50 }
  0x14   : > { %v448_v9 = vpack.c.bf16 %v418_v6, %v417_v4  ;;  %v449_v10 = vpack.c.bf16 %v420_v8, %v419_v7  ;;  %v421_v11 = vld [vmem:[%s3692_s28 + $0x30] sm:$0xff]  ;;  %v422_v12 = vld [vmem:[%s3692_s28 + $0x38] sm:$0xff]  ;;  %v423_v13 = vld [vmem:[%s3692_s28 + $0x40] sm:$0xff]  ;;  %992 = vst.msk [vmem:[#allocation2 + $0x50] sm:$0xff] %vm980_vm2, %v5475_v50 }
  0x15   : > { %3183 = vmatprep.mubr.msk.bf16.mxu0 %vm464_vm1, %v447_v5  ;;  %v424_v14 = vld [vmem:[%s3692_s28 + $0x48] sm:$0xff]  ;;  %v450_v15 = vpack.c.bf16 %v422_v12, %v421_v11  ;;  %v425_v17 = vld [vmem:[%s3692_s28 + $0x50] sm:$0xff]  ;;  %v426_v18 = vld [vmem:[%s3692_s28 + $0x58] sm:$0xff]  ;;  %994 = vst.msk [vmem:[#allocation2 + $0x60] sm:$0xff] %vm980_vm2, %v5475_v50 }
  0x16   : > { %3184 = vmatmul.mubr.msk.bf16.vlgmr.msra.gmra.mrb[0].mxu0 %vm464_vm1, %v448_v9  ;;  %v451_v16 = vpack.c.bf16 %v424_v14, %v423_v13  ;;  %v427_v19 = vld [vmem:[%s3692_s28 + $0x60] sm:$0xff]  ;;  %v428_v20 = vld [vmem:[%s3692_s28 + $0x68] sm:$0xff]  ;;  %v452_v21 = vpack.c.bf16 %v426_v18, %v425_v17  ;;  %v429_v23 = vld [vmem:[%s3692_s28 + $0x70] sm:$0xff]  ;;  %995 = vst.msk [vmem:[#allocation2 + $0x68] sm:$0xff] %vm980_vm2, %v5475_v50 }
  0x17   : > { %3187 = vmatprep.mubr.msk.bf16.mxu0 %vm464_vm1, %v449_v10  ;;  %v453_v22 = vpack.c.bf16 %v428_v20, %v427_v19  ;;  %v430_v24 = vld [vmem:[%s3692_s28 + $0x78] sm:$0xff]  ;;  %v431_v25 = vld [vmem:[%s3692_s28 + $0x80] sm:$0xff]  ;;  %v432_v26 = vld [vmem:[%s3692_s28 + $0x88] sm:$0xff]  ;;  %996 = vst.msk [vmem:[#allocation2 + $0x70] sm:$0xff] %vm980_vm2, %v5475_v50 }
  0x18   : > { %v454_v27 = vpack.c.bf16 %v430_v24, %v429_v23  ;;  %v455_v28 = vpack.c.bf16 %v432_v26, %v431_v25  ;;  %v433_v29 = vld [vmem:[%s3692_s28 + $0x90] sm:$0xff]  ;;  %v434_v30 = vld [vmem:[%s3692_s28 + $0x98] sm:$0xff]  ;;  %v435_v31 = vld [vmem:[%s3692_s28 + $0xa0] sm:$0xff]  ;;  %998 = vst.msk [vmem:[#allocation2 + $0x80] sm:$0xff] %vm980_vm2, %v5475_v50 }
  0x19   : > { %v436_v32 = vld [vmem:[%s3692_s28 + $0xa8] sm:$0xff]  ;;  %v456_v33 = vpack.c.bf16 %v434_v30, %v433_v29  ;;  %v437_v35 = vld [vmem:[%s3692_s28 + $0xb0] sm:$0xff]  ;;  %v438_v36 = vld [vmem:[%s3692_s28 + $0xb8] sm:$0xff]  ;;  %999 = vst.msk [vmem:[#allocation2 + $0x88] sm:$0xff] %vm980_vm2, %v5475_v50 }
  0x1a   : > { %v457_v34 = vpack.c.bf16 %v436_v32, %v435_v31  ;;  %v439_v37 = vld [vmem:[%s3692_s28 + $0xc0] sm:$0xff]  ;;  %v440_v38 = vld [vmem:[%s3692_s28 + $0xc8] sm:$0xff]  ;;  %v458_v39 = vpack.c.bf16 %v438_v36, %v437_v35  ;;  %v441_v41 = vld [vmem:[%s3692_s28 + $0xd0] sm:$0xff]  ;;  %1000 = vst.msk [vmem:[#allocation2 + $0x90] sm:$0xff] %vm980_vm2, %v5475_v50 }
  0x1b   : > { %v459_v40 = vpack.c.bf16 %v440_v38, %v439_v37  ;;  %v442_v42 = vld [vmem:[%s3692_s28 + $0xd8] sm:$0xff]  ;;  %v443_v43 = vld [vmem:[%s3692_s28 + $0xe0] sm:$0xff]  ;;  %v444_v44 = vld [vmem:[%s3692_s28 + $0xe8] sm:$0xff]  ;;  %1002 = vst.msk [vmem:[#allocation2 + $0xa0] sm:$0xff] %vm980_vm2, %v5475_v50 }
  0x1c   : > { %v460_v45 = vpack.c.bf16 %v442_v42, %v441_v41  ;;  %v461_v46 = vpack.c.bf16 %v444_v44, %v443_v43  ;;  %v445_v47 = vld [vmem:[%s3692_s28 + $0xf0] sm:$0xff]  ;;  %v446_v48 = vld [vmem:[%s3692_s28 + $0xf8] sm:$0xff]  ;;  %1003 = vst.msk [vmem:[#allocation2 + $0xa8] sm:$0xff] %vm980_vm2, %v5475_v50  ;;  %1004 = vst.msk [vmem:[#allocation2 + $0xb0] sm:$0xff] %vm980_vm2, %v5475_v50 }
  0x1d   : > { %v462_v49 = vpack.c.bf16 %v446_v48, %v445_v47  ;;  %1006 = vst.msk [vmem:[#allocation2 + $0xc0] sm:$0xff] %vm980_vm2, %v5475_v50  ;;  %1007 = vst.msk [vmem:[#allocation2 + $0xc8] sm:$0xff] %vm980_vm2, %v5475_v50 }
  0x1e   : > { %3188 = vmatmul.mubr.msk.bf16.gmra.mrb[4].mxu0 %vm464_vm1, %v450_v15  ;;  %1008 = vst.msk [vmem:[#allocation2 + $0xd0] sm:$0xff] %vm980_vm2, %v5475_v50  ;;  %1010 = vst.msk [vmem:[#allocation2 + $0xe0] sm:$0xff] %vm980_vm2, %v5475_v50 }
  0x1f   : > { %3191 = vmatprep.mubr.msk.bf16.mxu0 %vm464_vm1, %v451_v16  ;;  %1011 = vst.msk [vmem:[#allocation2 + $0xe8] sm:$0xff] %vm980_vm2, %v5475_v50  ;;  %1012 = vst.msk [vmem:[#allocation2 + $0xf0] sm:$0xff] %vm980_vm2, %v5475_v50 }
  0x20   : > { %1014 = vst.msk [vmem:[#allocation2 + $0x100] sm:$0xff] %vm980_vm2, %v5475_v50  ;;  %1015 = vst.msk [vmem:[#allocation2 + $0x108] sm:$0xff] %vm980_vm2, %v5475_v50 }
  0x21   : > { %1016 = vst.msk [vmem:[#allocation2 + $0x110] sm:$0xff] %vm980_vm2, %v5475_v50  ;;  %1018 = vst.msk [vmem:[#allocation2 + $0x120] sm:$0xff] %vm980_vm2, %v5475_v50 }
  0x22   : > { %1019 = vst.msk [vmem:[#allocation2 + $0x128] sm:$0xff] %vm980_vm2, %v5475_v50  ;;  %1020 = vst.msk [vmem:[#allocation2 + $0x130] sm:$0xff] %vm980_vm2, %v5475_v50 }
  0x23   : > { %1022 = vst.msk [vmem:[#allocation2 + $0x140] sm:$0xff] %vm980_vm2, %v5475_v50  ;;  %1023 = vst.msk [vmem:[#allocation2 + $0x148] sm:$0xff] %vm980_vm2, %v5475_v50 }
  0x24   : > { %1024 = vst.msk [vmem:[#allocation2 + $0x150] sm:$0xff] %vm980_vm2, %v5475_v50  ;;  %1026 = vst.msk [vmem:[#allocation2 + $0x160] sm:$0xff] %vm980_vm2, %v5475_v50 }
  0x25   : > { %1027 = vst.msk [vmem:[#allocation2 + $0x168] sm:$0xff] %vm980_vm2, %v5475_v50  ;;  %1028 = vst.msk [vmem:[#allocation2 + $0x170] sm:$0xff] %vm980_vm2, %v5475_v50 }
  0x26   : > { %3192 = vmatmul.mubr.msk.bf16.gmra.mrb[8].mxu0 %vm464_vm1, %v452_v21  ;;  %1030 = vst.msk [vmem:[#allocation2 + $0x180] sm:$0xff] %vm980_vm2, %v5475_v50  ;;  %1031 = vst.msk [vmem:[#allocation2 + $0x188] sm:$0xff] %vm980_vm2, %v5475_v50 }
  0x27   : > { %3195 = vmatprep.mubr.msk.bf16.mxu0 %vm464_vm1, %v453_v22  ;;  %1032 = vst.msk [vmem:[#allocation2 + $0x190] sm:$0xff] %vm980_vm2, %v5475_v50  ;;  %1034 = vst.msk [vmem:[#allocation2 + $0x1a0] sm:$0xff] %vm980_vm2, %v5475_v50 }
  0x28   : > { %1035 = vst.msk [vmem:[#allocation2 + $0x1a8] sm:$0xff] %vm980_vm2, %v5475_v50  ;;  %1036 = vst.msk [vmem:[#allocation2 + $0x1b0] sm:$0xff] %vm980_vm2, %v5475_v50 }
  0x29   : > { %1038 = vst.msk [vmem:[#allocation2 + $0x1c0] sm:$0xff] %vm980_vm2, %v5475_v50  ;;  %1039 = vst.msk [vmem:[#allocation2 + $0x1c8] sm:$0xff] %vm980_vm2, %v5475_v50 }
  0x2a   : > { %1040 = vst.msk [vmem:[#allocation2 + $0x1d0] sm:$0xff] %vm980_vm2, %v5475_v50  ;;  %1042 = vst.msk [vmem:[#allocation2 + $0x1e0] sm:$0xff] %vm980_vm2, %v5475_v50 }
  0x2b   : > { %1043 = vst.msk [vmem:[#allocation2 + $0x1e8] sm:$0xff] %vm980_vm2, %v5475_v50  ;;  %1044 = vst.msk [vmem:[#allocation2 + $0x1f0] sm:$0xff] %vm980_vm2, %v5475_v50 }
  0x2c   : > { %1046 = vst.msk [vmem:[#allocation2 + $0x200] sm:$0xff] %vm980_vm2, %v5475_v50  ;;  %1047 = vst.msk [vmem:[#allocation2 + $0x208] sm:$0xff] %vm980_vm2, %v5475_v50 }
  0x2d   : > { %1048 = vst.msk [vmem:[#allocation2 + $0x210] sm:$0xff] %vm980_vm2, %v5475_v50  ;;  %1050 = vst.msk [vmem:[#allocation2 + $0x220] sm:$0xff] %vm980_vm2, %v5475_v50 }
  0x2e   : > { %3196 = vmatmul.mubr.msk.bf16.gmra.mrb[12].mxu0 %vm464_vm1, %v454_v27  ;;  %1051 = vst.msk [vmem:[#allocation2 + $0x228] sm:$0xff] %vm980_vm2, %v5475_v50  ;;  %1052 = vst.msk [vmem:[#allocation2 + $0x230] sm:$0xff] %vm980_vm2, %v5475_v50 }
  0x2f   : > { %3199 = vmatprep.mubr.msk.bf16.mxu0 %vm464_vm1, %v455_v28  ;;  %993 = vst.msk [vmem:[#allocation2 + $0x58] sm:$0x1] %vm984_vm3, %v5475_v50  ;;  %985 = vst.msk [vmem:[#allocation2 + $0x18] sm:$0x1] %vm984_vm3, %v5475_v50 }
  0x30   : > { %989 = vst.msk [vmem:[#allocation2 + $0x38] sm:$0x1] %vm984_vm3, %v5475_v50  ;;  %997 = vst.msk [vmem:[#allocation2 + $0x78] sm:$0x1] %vm984_vm3, %v5475_v50 }
  0x31   : > { %1001 = vst.msk [vmem:[#allocation2 + $0x98] sm:$0x1] %vm984_vm3, %v5475_v50  ;;  %1005 = vst.msk [vmem:[#allocation2 + $0xb8] sm:$0x1] %vm984_vm3, %v5475_v50 }
  0x32   : > { %1009 = vst.msk [vmem:[#allocation2 + $0xd8] sm:$0x1] %vm984_vm3, %v5475_v50  ;;  %1013 = vst.msk [vmem:[#allocation2 + $0xf8] sm:$0x1] %vm984_vm3, %v5475_v50 }
  0x33   : > { %1017 = vst.msk [vmem:[#allocation2 + $0x118] sm:$0x1] %vm984_vm3, %v5475_v50  ;;  %1021 = vst.msk [vmem:[#allocation2 + $0x138] sm:$0x1] %vm984_vm3, %v5475_v50 }
  0x34   : > { %1025 = vst.msk [vmem:[#allocation2 + $0x158] sm:$0x1] %vm984_vm3, %v5475_v50  ;;  %1029 = vst.msk [vmem:[#allocation2 + $0x178] sm:$0x1] %vm984_vm3, %v5475_v50 }
  0x35   : > { %1033 = vst.msk [vmem:[#allocation2 + $0x198] sm:$0x1] %vm984_vm3, %v5475_v50  ;;  %1037 = vst.msk [vmem:[#allocation2 + $0x1b8] sm:$0x1] %vm984_vm3, %v5475_v50 }
  0x36   : > { %3200 = vmatmul.mubr.msk.bf16.gmra.mrb[16].mxu0 %vm464_vm1, %v456_v33  ;;  %1041 = vst.msk [vmem:[#allocation2 + $0x1d8] sm:$0x1] %vm984_vm3, %v5475_v50  ;;  %1045 = vst.msk [vmem:[#allocation2 + $0x1f8] sm:$0x1] %vm984_vm3, %v5475_v50 }
  0x37   : > { %3203 = vmatprep.mubr.msk.bf16.mxu0 %vm464_vm1, %v457_v34  ;;  %1049 = vst.msk [vmem:[#allocation2 + $0x218] sm:$0x1] %vm984_vm3, %v5475_v50  ;;  %1053 = vst.msk [vmem:[#allocation2 + $0x238] sm:$0x1] %vm984_vm3, %v5475_v50 }
  0x3e   : > { %3204 = vmatmul.mubr.msk.bf16.gmra.mrb[20].mxu0 %vm464_vm1, %v458_v39 }
  0x3f   : > { %3207 = vmatprep.mubr.msk.bf16.mxu0 %vm464_vm1, %v459_v40 }
  0x46   : > { %3208 = vmatmul.mubr.msk.bf16.gmra.mrb[24].mxu0 %vm464_vm1, %v460_v45 }
  0x47   : > { %3211 = vmatprep.mubr.msk.bf16.mxu0 %vm464_vm1, %v461_v46 }
  0x4e   : > { %3212 = vmatmul.mubr.msk.bf16.gmra.mrb[28].mxu0 %vm464_vm1, %v462_v49 }
  0xe9   : > { %v3185_v52 = vpop.f32.mrb[0].mxu0 }
  0xea   : > { %v687_v54 = vmul.f32 %v3185_v52, %v3890_v51  ;;  %v551_v55 = vpop.f32.mrb[1].mxu0 }
  0xeb   : > { %v685_v56 = vmul.f32 %v3890_v51, %v551_v55  ;;  %v3186_v57 = vpop.f32.mrb[2].mxu0 }
  0xec   : > { %v3900_v58 = vadd.f32 %v3895_v53, %v687_v54  ;;  %v688_v59 = vmul.f32 %v3186_v57, %v3890_v51  ;;  %v554_v60 = vpop.f32.mrb[3].mxu0 }
  0xed   : > { %v3904_v61 = vadd.f32 %v3895_v53, %v685_v56  ;;  %v686_v62 = vmul.f32 %v3890_v51, %v554_v60 }
  0xee   : > { %v3033_v63 = vmul.f32 -1.442695, %v3900_v58  ;;  %v3909_v0 = vadd.f32 %v3895_v53, %v688_v59 }
  0xef   : > { %v3031_v1 = vmul.f32 -1.442695, %v3904_v61  ;;  %v3913_v2 = vadd.f32 %v3895_v53, %v686_v62 }
  0xf0   : > { %3287 = vpow2.f32 %v3033_v63  ;;  %v3034_v3 = vmul.f32 -1.442695, %v3909_v0 }
  0xf1   : > { %3289 = vpow2.f32 %v3031_v1  ;;  %v3032_v4 = vmul.f32 -1.442695, %v3913_v2  ;;  %v3189_v5 = vpop.f32.mrb[4].mxu0 }
  0xf2   : > { %3291 = vpow2.f32 %v3034_v3  ;;  %v691_v6 = vmul.f32 %v3189_v5, %v3890_v51  ;;  %v567_v7 = vpop.f32.mrb[5].mxu0 }
  0xf3   : > { %3293 = vpow2.f32 %v3032_v4  ;;  %v689_v8 = vmul.f32 %v3890_v51, %v567_v7  ;;  %v3190_v9 = vpop.f32.mrb[6].mxu0 }
  0xf4   : > { %v3920_v10 = vadd.f32 %v3895_v53, %v691_v6  ;;  %v692_v11 = vmul.f32 %v3190_v9, %v3890_v51  ;;  %v570_v12 = vpop.f32.mrb[7].mxu0 }
  0xf5   : > { %v3924_v13 = vadd.f32 %v3895_v53, %v689_v8  ;;  %v690_v14 = vmul.f32 %v3890_v51, %v570_v12 }
  0xf6   : > { %v3037_v15 = vmul.f32 -1.442695, %v3920_v10  ;;  %v3929_v16 = vadd.f32 %v3895_v53, %v692_v11 }
  0xf7   : > { %v3035_v17 = vmul.f32 -1.442695, %v3924_v13  ;;  %v3933_v18 = vadd.f32 %v3895_v53, %v690_v14  ;;  %v1087_v14 = vld [vmem:[#allocation2 + $0x7] sm:$0xff] }
  0xf8   : > { %3295 = vpow2.f32 %v3037_v15  ;;  %v3038_v19 = vmul.f32 -1.442695, %v3929_v16  ;;  %v1188_v15 = vld [vmem:[#allocation2 + $0x8] sm:$0xff] }
  0xf9   : > { %3297 = vpow2.f32 %v3035_v17  ;;  %v3193_v20 = vpop.f32.mrb[8].mxu0  ;;  %v3036_v26 = vmul.f32 -1.442695, %v3933_v18 }
  0xfa   : > { %v3288_v21 = vpop.eup %3287  ;;  %v695_v22 = vmul.f32 %v3193_v20, %v3890_v51  ;;  %v583_v23 = vpop.f32.mrb[9].mxu0  ;;  %3299 = vpow2.f32 %v3038_v19  ;;  %v1088_v20 = vld [vmem:[#allocation2 + $0xf] sm:$0xff] }
  0xfb   : > { %v3290_v24 = vpop.eup %3289  ;;  %v854_v25 = vadd.f32 1.0, %v3288_v21  ;;  %v693_v27 = vmul.f32 %v3890_v51, %v583_v23  ;;  %v3194_v28 = vpop.f32.mrb[10].mxu0  ;;  %v1189_v21 = vld [vmem:[#allocation2 + $0x10] sm:$0xff] }
  0xfc   : > { %v3292_v29 = vpop.eup %3291  ;;  %v852_v30 = vadd.f32 1.0, %v3290_v24  ;;  %v3940_v31 = vadd.f32 %v3895_v53, %v695_v22  ;;  %v696_v32 = vmul.f32 %v3194_v28, %v3890_v51  ;;  %v586_v33 = vpop.f32.mrb[11].mxu0 }
  0xfd   : > { %v3294_v34 = vpop.eup %3293  ;;  %3301 = vrcp.f32 %v854_v25  ;;  %v855_v35 = vadd.f32 1.0, %v3292_v29  ;;  %v3944_v36 = vadd.f32 %v3895_v53, %v693_v27  ;;  %v694_v37 = vmul.f32 %v3890_v51, %v586_v33  ;;  %v1289_v33 = vld [vmem:[#allocation2 + $0x9] sm:$0xff] }
  0xfe   : > { %3303 = vrcp.f32 %v852_v30  ;;  %v853_v38 = vadd.f32 1.0, %v3294_v34  ;;  %v3041_v39 = vmul.f32 -1.442695, %v3940_v31  ;;  %v3949_v40 = vadd.f32 %v3895_v53, %v696_v32 }
  0xff   : > { %3305 = vrcp.f32 %v855_v35  ;;  %v3039_v41 = vmul.f32 -1.442695, %v3944_v36  ;;  %v3953_v42 = vadd.f32 %v3895_v53, %v694_v37 }
 0x100   : > { %3307 = vrcp.f32 %v853_v38  ;;  %v3042_v43 = vmul.f32 -1.442695, %v3949_v40 }
 0x101   : > { %3309 = vpow2.f32 %v3036_v26  ;;  %v3956_v44 = vpop.f32.mrb[12].mxu0  ;;  %v3040_v49 = vmul.f32 -1.442695, %v3953_v42 }
 0x102   : > { %v3296_v45 = vpop.eup %3295  ;;  %3311 = vpow2.f32 %v3041_v39  ;;  %v3958_v46 = vpop.f32.mrb[13].mxu0 }
 0x103   : > { %v3298_v47 = vpop.eup %3297  ;;  %v858_v48 = vadd.f32 1.0, %v3296_v45  ;;  %3313 = vpow2.f32 %v3039_v41  ;;  %v3961_v52 = vpop.f32.mrb[14].mxu0  ;;  %v1290_v45 = vld [vmem:[#allocation2 + $0x11] sm:$0xff] }
 0x104   : > { %v856_v54 = vadd.f32 1.0, %v3298_v47  ;;  %3315 = vpow2.f32 %v3042_v43  ;;  %v3963_v55 = vpop.f32.mrb[15].mxu0  ;;  %v3300_v56 = vpop.eup %3299 }
 0x105   : > { %3317 = vrcp.f32 %v858_v48  ;;  %v859_v17 = vadd.f32 1.0, %v3300_v56 }
 0x106   : > { %3319 = vrcp.f32 %v856_v54 }
 0x107   : > { %v3302_v57 = vpop.eup %3301  ;;  %3321 = vpow2.f32 %v3040_v49  ;;  %v4016_v49 = vld [vmem:[%s5466_s4 + $0x4] ss:$0 sm:$0xff] }
 0x108   : > { %v3304_v59 = vpop.eup %3303  ;;  %v950_v60 = vmul.f32 %v3302_v57, %v3900_v58  ;;  %3323 = vrcp.f32 %v859_v17 }
 0x109   : > { %v3306_v62 = vpop.eup %3305  ;;  %v948_v63 = vmul.f32 %v3304_v59, %v3904_v61  ;;  %v3967_v1 = vpop.f32.mrb[16].mxu0 }
 0x10a   : > { %v3308_v3 = vpop.eup %3307  ;;  %1057 = vst.msk [vmem:[#allocation2 + $0x48] sm:$0xff] %vm980_vm2, %v950_v60  ;;  %v951_v4 = vmul.f32 %v3306_v62, %v3909_v0  ;;  %v3971_v5 = vpop.f32.mrb[17].mxu0  ;;  %v3984_v0 = vld [vmem:[%s5466_s4] ss:$0 sm:$0xff] }
 0x10b   : > { %v3310_v6 = vpop.eup %3309  ;;  %1055 = vst.msk [vmem:[#allocation2 + $0x28] sm:$0xff] %vm980_vm2, %v948_v63  ;;  %v949_v7 = vmul.f32 %v3308_v3, %v3913_v2  ;;  %v3975_v8 = vpop.f32.mrb[18].mxu0  ;;  %v3989_v2 = vld [vmem:[%s5466_s4 + $0x1] ss:$0 sm:$0xff]  ;;  %v1124_v28 = vmul.f32 %v3984_v0, %v1087_v14 }
 0x10c   : > { %v3312_v58 = vpop.eup %3311  ;;  %1058 = vst.msk [vmem:[#allocation2 + $0x50] sm:$0xff] %vm980_vm2, %v951_v4  ;;  %v3978_v61 = vpop.f32.mrb[19].mxu0  ;;  %v857_v23 = vadd.f32 1.0, %v3310_v6  ;;  %v1225_v29 = vmul.f32 %v3989_v2, %v1188_v15  ;;  %v1226_v34 = vmul.f32 %v3989_v2, %v1189_v21  ;;  %v697_v21 = vmul.f32 %v3890_v51, %v3958_v46 }
 0x10d   : > { %v3314_v9 = vpop.eup %3313  ;;  %1056 = vst.msk [vmem:[#allocation2 + $0x30] sm:$0xff] %vm980_vm2, %v949_v7  ;;  %v862_v26 = vadd.f32 1.0, %v3312_v58  ;;  %v699_v58 = vmul.f32 %v3956_v44, %v3890_v51  ;;  %v700_v46 = vmul.f32 %v3961_v52, %v3890_v51 }
 0x10e   : > { %v3316_v11 = vpop.eup %3315  ;;  %v860_v30 = vadd.f32 1.0, %v3314_v9  ;;  %3325 = vrcp.f32 %v857_v23  ;;  %v1257_v47 = vadd.f32 %v1225_v29, %v1124_v28 }
 0x10f   : > { %v3318_v12 = vpop.eup %3317  ;;  %v863_v35 = vadd.f32 1.0, %v3316_v11  ;;  %3327 = vrcp.f32 %v862_v26  ;;  %v4044_v28 = vadd.f32 %v3895_v53, %v699_v58 }
 0x110   : > { %v3320_v19 = vpop.eup %3319  ;;  %v954_v22 = vmul.f32 %v3318_v12, %v3920_v10  ;;  %v4003_v10 = vld [vmem:[%s5466_s4 + $0x2] ss:$0 sm:$0xff]  ;;  %3329 = vrcp.f32 %v860_v30 }
 0x111   : > { %v3322_v24 = vpop.eup %3321  ;;  %v952_v25 = vmul.f32 %v3320_v19, %v3924_v13  ;;  %v3993_v27 = vpop.f32.mrb[20].mxu0  ;;  %v1125_v13 = vmul.f32 %v3984_v0, %v1088_v20  ;;  %v1326_v48 = vmul.f32 %v4003_v10, %v1289_v33  ;;  %3331 = vrcp.f32 %v863_v35  ;;  %v4037_v20 = vld [vmem:[%s5466_s4 + $0x5] ss:$0 sm:$0xff]  ;;  %v1192_v30 = vld [vmem:[#allocation2 + $0x48] sm:$0xff] }
 0x112   : > { %1061 = vst.msk [vmem:[#allocation2 + $0x88] sm:$0xff] %vm980_vm2, %v954_v22  ;;  %v3998_v32 = vpop.f32.mrb[21].mxu0  ;;  %v861_v38 = vadd.f32 1.0, %v3322_v24  ;;  %v1089_v41 = vld [vmem:[#allocation2 + $0x27] sm:$0xff]  ;;  %v1327_v59 = vmul.f32 %v4003_v10, %v1290_v45  ;;  %v3324_v19 = vpop.eup %3323 }
 0x113   : > { %1059 = vst.msk [vmem:[#allocation2 + $0x68] sm:$0xff] %vm980_vm2, %v952_v25  ;;  %v4008_v37 = vpop.f32.mrb[22].mxu0  ;;  %v1190_v43 = vld [vmem:[#allocation2 + $0x28] sm:$0xff]  ;;  %v1258_v54 = vadd.f32 %v1226_v34, %v1125_v13  ;;  %v1126_v56 = vmul.f32 %v3984_v0, %v1089_v41  ;;  %v1358_v3 = vadd.f32 %v1326_v48, %v1257_v47  ;;  %v1428_v4 = vmul.f32 %v4016_v49, %v1089_v41  ;;  %v4054_v47 = vld [vmem:[%s5466_s4 + $0x6] ss:$0 sm:$0xff] }
 0x114   : > { %v4010_v39 = vpop.f32.mrb[23].mxu0  ;;  %v1227_v57 = vmul.f32 %v3989_v2, %v1190_v43  ;;  %3333 = vrcp.f32 %v861_v38  ;;  %v1090_v60 = vld [vmem:[#allocation2 + $0x2f] sm:$0xff]  ;;  %v1091_v22 = vld [vmem:[#allocation2 + $0x47] sm:$0xff]  ;;  %v1529_v33 = vmul.f32 %v4037_v20, %v1190_v43  ;;  %v4057_v48 = vadd.f32 %v3895_v53, %v697_v21 }
 0x115   : > { %v1291_v62 = vld [vmem:[#allocation2 + $0x29] sm:$0xff]  ;;  %v1359_v14 = vadd.f32 %v1327_v59, %v1258_v54  ;;  %v1429_v15 = vmul.f32 %v4016_v49, %v1090_v60  ;;  %v1460_v23 = vadd.f32 %v1428_v4, %v1358_v3  ;;  %v1127_v24 = vmul.f32 %v3984_v0, %v1090_v60  ;;  %v1292_v13 = vld [vmem:[#allocation2 + $0x31] sm:$0xff] }
 0x116   : > { %v1191_v7 = vld [vmem:[#allocation2 + $0x30] sm:$0xff]  ;;  %v1259_v11 = vadd.f32 %v1227_v57, %v1126_v56  ;;  %v1328_v12 = vmul.f32 %v4003_v10, %v1291_v62  ;;  %v1128_v41 = vmul.f32 %v3984_v0, %v1091_v22  ;;  %v1430_v45 = vmul.f32 %v4016_v49, %v1091_v22 }
 0x117   : > { %v1228_v25 = vmul.f32 %v3989_v2, %v1191_v7  ;;  %v1461_v35 = vadd.f32 %v1429_v15, %v1359_v14  ;;  %v698_v43 = vmul.f32 %v3890_v51, %v3963_v55  ;;  %v1561_v56 = vadd.f32 %v1529_v33, %v1460_v23  ;;  %v1293_v15 = vld [vmem:[#allocation2 + $0x49] sm:$0xff] }
 0x118   : > { %v3326_v44 = vpop.eup %3325  ;;  %v1360_v34 = vadd.f32 %v1328_v12, %v1259_v11  ;;  %v1530_v52 = vmul.f32 %v4037_v20, %v1191_v7  ;;  %v955_v59 = vmul.f32 %v3324_v19, %v3929_v16  ;;  %v1229_v60 = vmul.f32 %v3989_v2, %v1192_v30  ;;  %v4070_v11 = vld [vmem:[%s5466_s4 + $0x8] ss:$0 sm:$0xff]  ;;  %v1092_v7 = vld [vmem:[#allocation2 + $0x4f] sm:$0xff]  ;;  %v4098_v33 = vld [vmem:[%s5466_s4 + $0x9] ss:$0 sm:$0xff] }
 0x119   : > { %v4021_v63 = vpop.f32.mrb[24].mxu0  ;;  %v3328_v26 = vpop.eup %3327  ;;  %v1260_v57 = vadd.f32 %v1228_v25, %v1127_v24  ;;  %v1329_v3 = vmul.f32 %v4003_v10, %v1292_v13  ;;  %v953_v4 = vmul.f32 %v3326_v44, %v3933_v18  ;;  %v1630_v14 = vmul.f32 %v4054_v47, %v1291_v62 }
 0x11a   : > { %v4024_v6 = vpop.f32.mrb[25].mxu0  ;;  %v3330_v29 = vpop.eup %3329  ;;  %v958_v58 = vmul.f32 %v3328_v26, %v3940_v31  ;;  %v1462_v55 = vadd.f32 %v1430_v45, %v1360_v34  ;;  %v1562_v12 = vadd.f32 %v1530_v52, %v1461_v35  ;;  %1062 = vst.msk [vmem:[#allocation2 + $0x90] sm:$0xff] %vm980_vm2, %v955_v59  ;;  %v3045_v19 = vmul.f32 -1.442695, %v4044_v28  ;;  %v1093_v26 = vld [vmem:[#allocation2 + $0x67] sm:$0xff] }
 0x11b   : > { %5498 = vst [vmem:[#allocation3_spill] sm:$0xff] %v4024_v6  ;;  %v4028_v9 = vpop.f32.mrb[26].mxu0  ;;  %v3332_v38 = vpop.eup %3331  ;;  %v956_v16 = vmul.f32 %v3330_v29, %v3944_v36  ;;  %1060 = vst.msk [vmem:[#allocation2 + $0x70] sm:$0xff] %vm980_vm2, %v953_v4  ;;  %v4081_v21 = vadd.f32 %v3895_v53, %v700_v46  ;;  %v1531_v62 = vmul.f32 %v4037_v20, %v1192_v30  ;;  %v1193_v46 = vld [vmem:[#allocation2 + $0x50] sm:$0xff] }
 0x11c   : > { %5499 = vst [vmem:[#allocation4_spill] sm:$0xff] %v4028_v9  ;;  %v4032_v17 = vpop.f32.mrb[27].mxu0  ;;  %1065 = vst.msk [vmem:[#allocation2 + $0xc8] sm:$0xff] %vm980_vm2, %v958_v58  ;;  %v959_v18 = vmul.f32 %v3332_v38, %v3949_v40  ;;  %v1361_v44 = vadd.f32 %v1329_v3, %v1260_v57  ;;  %v1631_v36 = vmul.f32 %v4054_v47, %v1292_v13  ;;  %3335 = vpow2.f32 %v3045_v19 }
 0x11d   : > { %5500 = vst [vmem:[#allocation5_spill] sm:$0xff] %v4032_v17  ;;  %v1662_v23 = vadd.f32 %v1630_v14, %v1561_v56  ;;  %1063 = vst.msk [vmem:[#allocation2 + $0xa8] sm:$0xff] %vm980_vm2, %v956_v16  ;;  %v1261_v25 = vadd.f32 %v1229_v60, %v1128_v41  ;;  %v1733_v40 = vmul.f32 %v4070_v11, %v1091_v22  ;;  %v3046_v41 = vmul.f32 -1.442695, %v4081_v21  ;;  %v1294_v60 = vld [vmem:[#allocation2 + $0x51] sm:$0xff] }
 0x11e   : > { %v3334_v54 = vpop.eup %3333  ;;  %1066 = vst.msk [vmem:[#allocation2 + $0xd0] sm:$0xff] %vm980_vm2, %v959_v18  ;;  %v4093_v29 = vadd.f32 %v3895_v53, %v698_v43  ;;  %v1330_v13 = vmul.f32 %v4003_v10, %v1293_v15  ;;  %v1431_v34 = vmul.f32 %v4016_v49, %v1092_v7  ;;  %v1663_v22 = vadd.f32 %v1631_v36, %v1562_v12  ;;  %v1194_v18 = vld [vmem:[#allocation2 + $0x68] sm:$0xff] }
 0x11f   : > { %v957_v31 = vmul.f32 %v3334_v54, %v3953_v42  ;;  %v3043_v42 = vmul.f32 -1.442695, %v4057_v48  ;;  %v1563_v35 = vadd.f32 %v1531_v62, %v1462_v55  ;;  %v1632_v38 = vmul.f32 %v4054_v47, %v1293_v15 }
 0x120   : > { %v1734_v45 = vmul.f32 %v4070_v11, %v1092_v7  ;;  %v1463_v43 = vadd.f32 %v1431_v34, %v1361_v44  ;;  %v1765_v54 = vadd.f32 %v1733_v40, %v1662_v23  ;;  %v1432_v56 = vmul.f32 %v4016_v49, %v1093_v26 }
 0x121   : > { %v4086_v24 = vpop.f32.mrb[28].mxu0  ;;  %1064 = vst.msk [vmem:[#allocation2 + $0xb0] sm:$0xff] %vm980_vm2, %v957_v31  ;;  %v1834_v57 = vmul.f32 %v4098_v33, %v1192_v30  ;;  %3337 = vpow2.f32 %v3043_v42  ;;  %v3044_v52 = vmul.f32 -1.442695, %v4093_v29  ;;  %v703_v59 = vmul.f32 %v3967_v1, %v3890_v51  ;;  %v4117_v30 = vld [vmem:[%s5466_s4 + $0xa] ss:$0 sm:$0xff] }
 0x122   : > { %5501 = vst [vmem:[#allocation6_spill] sm:$0xff] %v4086_v24  ;;  %v1362_v3 = vadd.f32 %v1330_v13, %v1261_v25  ;;  %v1532_v4 = vmul.f32 %v4037_v20, %v1193_v46  ;;  %v1766_v58 = vadd.f32 %v1734_v45, %v1663_v22  ;;  %v1664_v55 = vadd.f32 %v1632_v38, %v1563_v35  ;;  %v1094_v40 = vld [vmem:[#allocation2 + $0x6f] sm:$0xff]  ;;  %v1095_v38 = vld [vmem:[#allocation2 + $0x87] sm:$0xff] }
 0x123   : > { %v1129_v12 = vmul.f32 %v3984_v0, %v1092_v7  ;;  %v1230_v14 = vmul.f32 %v3989_v2, %v1193_v46  ;;  %v1835_v16 = vmul.f32 %v4098_v33, %v1193_v46  ;;  %3339 = vpow2.f32 %v3046_v41  ;;  %v1295_v34 = vld [vmem:[#allocation2 + $0x69] sm:$0xff] }
 0x124   : > { %v1866_v1 = vadd.f32 %v1834_v57, %v1765_v54  ;;  %v1464_v31 = vadd.f32 %v1432_v56, %v1362_v3  ;;  %v1735_v19 = vmul.f32 %v4070_v11, %v1093_v26  ;;  %v1564_v62 = vadd.f32 %v1532_v4, %v1463_v43  ;;  %v1196_v41 = vld [vmem:[#allocation2 + $0x88] sm:$0xff]  ;;  %v4136_v57 = vld [vmem:[%s5467_s5] ss:$0 sm:$0xff]  ;;  %v1197_v17 = vld [vmem:[#allocation2 + $0x90] sm:$0xff] }
 0x125   : > { %v1633_v44 = vmul.f32 %v4054_v47, %v1294_v60  ;;  %3341 = vpow2.f32 %v3044_v52  ;;  %v1935_v7 = vmul.f32 %v4117_v30, %v1293_v15  ;;  %v1867_v36 = vadd.f32 %v1835_v16, %v1766_v58 }
 0x126   : > { %v1533_v23 = vmul.f32 %v4037_v20, %v1194_v18  ;;  %v1767_v25 = vadd.f32 %v1735_v19, %v1664_v55  ;;  %v1262_v42 = vadd.f32 %v1230_v14, %v1129_v12  ;;  %v1936_v13 = vmul.f32 %v4117_v30, %v1294_v60  ;;  %v3336_v54 = vpop.eup %3335 }
 0x127   : > { %v4125_v22 = vadd.f32 %v3895_v53, %v703_v59  ;;  %v4129_v35 = vmul.f32 %v3890_v51, %v3971_v5  ;;  %v1967_v46 = vadd.f32 %v1935_v7, %v1866_v1  ;;  %v1836_v45 = vmul.f32 %v4098_v33, %v1194_v18  ;;  %v4151_v7 = vld [vmem:[%s5468_s6] ss:$0 sm:$0xff] }
 0x128   : > { %v1565_v15 = vadd.f32 %v1533_v23, %v1464_v31  ;;  %v1665_v43 = vadd.f32 %v1633_v44, %v1564_v62  ;;  %v1331_v56 = vmul.f32 %v4003_v10, %v1294_v60  ;;  %v1130_v52 = vmul.f32 %v3984_v0, %v1093_v26  ;;  %v1195_v31 = vld [vmem:[#allocation2 + $0x70] sm:$0xff] }
 0x129   : > { %v1231_v5 = vmul.f32 %v3989_v2, %v1194_v18  ;;  %v1433_v59 = vmul.f32 %v4016_v49, %v1094_v40  ;;  %v1968_v3 = vadd.f32 %v1936_v13, %v1867_v36  ;;  %v1868_v4 = vadd.f32 %v1836_v45, %v1767_v25 }
 0x12a   : > { %v1634_v58 = vmul.f32 %v4054_v47, %v1295_v34  ;;  %v1736_v55 = vmul.f32 %v4070_v11, %v1094_v40  ;;  %v1363_v14 = vadd.f32 %v1331_v56, %v1262_v42  ;;  %v1132_v60 = vmul.f32 %v3984_v0, %v1095_v38 }
 0x12b   : > { %v3338_v12 = vpop.eup %3337  ;;  %v1233_v16 = vmul.f32 %v3989_v2, %v1196_v41  ;;  %v1434_v1 = vmul.f32 %v4016_v49, %v1095_v38  ;;  %v2006_v26 = vmul.f32 %v4136_v57, %v1967_v46  ;;  %v1937_v62 = vmul.f32 %v4117_v30, %v1295_v34 }
 0x12c   : > { %v1666_v18 = vadd.f32 %v1634_v58, %v1565_v15  ;;  %v1768_v19 = vadd.f32 %v1736_v55, %v1665_v43  ;;  %v4154_v36 = vmul.f32 %v4037_v20, %v1196_v41  ;;  %v1737_v23 = vmul.f32 %v4070_v11, %v1095_v38  ;;  %v1296_v55 = vld [vmem:[#allocation2 + $0x71] sm:$0xff] }
 0x12d   : > { %v3340_v44 = vpop.eup %3339  ;;  %v1465_v25 = vadd.f32 %v1433_v59, %v1363_v14  ;;  %v866_v42 = vadd.f32 1.0, %v3336_v54  ;;  %v2007_v13 = vmul.f32 %v4136_v57, %v1968_v3  ;;  %v1263_v46 = vadd.f32 %v1231_v5, %v1130_v52  ;;  %v1297_v5 = vld [vmem:[#allocation2 + $0x89] sm:$0xff] }
 0x12e   : > { %v1837_v15 = vmul.f32 %v4098_v33, %v1195_v31  ;;  %v1969_v45 = vadd.f32 %v1937_v62, %v1868_v4  ;;  %v1131_v56 = vmul.f32 %v3984_v0, %v1094_v40  ;;  %v1232_v58 = vmul.f32 %v3989_v2, %v1195_v31  ;;  %v4167_v40 = vpop.f32.mrb[29].mxu0  ;;  %v1096_v62 = vld [vmem:[#allocation2 + $0x8f] sm:$0xff] }
 0x12f   : > { %v3342_v43 = vpop.eup %3341  ;;  %v1332_v50 = vmul.f32 %v4003_v10, %v1295_v34  ;;  %v1534_v24 = vmul.f32 %v4037_v20, %v1195_v31  ;;  %v4164_v38 = vadd.f32 %v4151_v7, %v2006_v26  ;;  %v1265_v54 = vadd.f32 %v1233_v16, %v1132_v60  ;;  %5503 = vst [vmem:[#allocation8_spill] sm:$0xff] %v4167_v40  ;;  %v4194_v40 = vld [vmem:[#allocation2 + $0xa8] sm:$0xff] }
 0x130   : > { %v1769_v59 = vadd.f32 %v1737_v23, %v1666_v18  ;;  %v1869_v3 = vadd.f32 %v1837_v15, %v1768_v19  ;;  %v1838_v52 = vmul.f32 %v4098_v33, %v1196_v41  ;;  %3343 = vrcp.f32 %v866_v42 }
 0x131   : > { %5502 = vst [vmem:[#allocation7_spill] sm:$0xff] %v4164_v38  ;;  %v1566_v4 = vadd.f32 %v1534_v24, %v1465_v25  ;;  %v864_v14 = vadd.f32 1.0, %v3338_v12  ;;  %v1938_v34 = vmul.f32 %v4117_v30, %v1296_v55  ;;  %v2008_v31 = vmul.f32 %v4136_v57, %v1969_v45  ;;  %v4175_v24 = vld [vmem:[#allocation2 + $0xa7] sm:$0xff]  ;;  %v4177_v12 = vpop.f32.mrb[30].mxu0 }
 0x132   : > { %v867_v9 = vadd.f32 1.0, %v3340_v44  ;;  %v865_v26 = vadd.f32 1.0, %v3342_v43  ;;  %v4172_v60 = vadd.f32 %v4151_v7, %v2007_v13  ;;  %v1264_v16 = vadd.f32 %v1232_v58, %v1131_v56  ;;  %5505 = vst [vmem:[#allocation10_spill] sm:$0xff] %v4177_v12  ;;  %v1298_v58 = vld [vmem:[#allocation2 + $0x91] sm:$0xff] }
 0x133   : > { %v1364_v18 = vadd.f32 %v1332_v50, %v1263_v46  ;;  %v1635_v41 = vmul.f32 %v4054_v47, %v1296_v55  ;;  %v3080_v19 = vmul.f32 -1.442695, %v4164_v38  ;;  %v1334_v23 = vmul.f32 %v4003_v10, %v1297_v5  ;;  %v4198_v38 = vld [vmem:[#allocation2 + $0xaf] sm:$0xff] }
 0x134   : > { %5504 = vst [vmem:[#allocation9_spill] sm:$0xff] %v4172_v60  ;;  %v1870_v25 = vadd.f32 %v1838_v52, %v1769_v59  ;;  %v1970_v42 = vadd.f32 %v1938_v34, %v1869_v3  ;;  %v1133_v44 = vmul.f32 %v3984_v0, %v1096_v62  ;;  %v1234_v15 = vmul.f32 %v3989_v2, %v1197_v17 }
 0x135   : > { %v1333_v13 = vmul.f32 %v4003_v10, %v1296_v55  ;;  %v1667_v45 = vadd.f32 %v1635_v41, %v1566_v4  ;;  %v1939_v50 = vmul.f32 %v4117_v30, %v1297_v5  ;;  %v4186_v46 = vadd.f32 %v4151_v7, %v2008_v31 }
 0x136   : > { %v1436_v43 = vmul.f32 %v4016_v49, %v4175_v24  ;;  %3345 = vrcp.f32 %v864_v14  ;;  %v3081_v56 = vmul.f32 -1.442695, %v4172_v60  ;;  %v1738_v59 = vmul.f32 %v4070_v11, %v1096_v62 }
 0x137   : > { %v1365_v3 = vadd.f32 %v1333_v13, %v1264_v16  ;;  %v1466_v52 = vadd.f32 %v1434_v1, %v1364_v18  ;;  %v1366_v34 = vadd.f32 %v1334_v23, %v1265_v54  ;;  %v1971_v12 = vadd.f32 %v1939_v50, %v1870_v25  ;;  %v4209_v25 = vld [vmem:[#allocation2 + $0xb0] sm:$0xff] }
 0x138   : > { %v2009_v55 = vmul.f32 %v4136_v57, %v1970_v42  ;;  %3347 = vrcp.f32 %v867_v9  ;;  %v1266_v4 = vadd.f32 %v1234_v15, %v1133_v44  ;;  %v1435_v31 = vmul.f32 %v4016_v49, %v1096_v62  ;;  %v4212_v15 = vld [vmem:[#allocation2 + $0xa9] sm:$0xff]  ;;  %v4219_v50 = vld [vmem:[#allocation2 + $0xb1] sm:$0xff] }
 0x139   : > { %3349 = vpow2.f32 %v3080_v19  ;;  %v1770_v41 = vadd.f32 %v1738_v59, %v1667_v45  ;;  %v1335_v14 = vmul.f32 %v4003_v10, %v1298_v58  ;;  %v3082_v6 = vmul.f32 -1.442695, %v4186_v46 }
 0x13a   : > { %v1468_v60 = vadd.f32 %v1436_v43, %v1366_v34  ;;  %3351 = vrcp.f32 %v865_v26  ;;  %v3344_v1 = vpop.eup %3343  ;;  %v1839_v54 = vmul.f32 %v4098_v33, %v1197_v17  ;;  %v1467_v9 = vadd.f32 %v1435_v31, %v1365_v3  ;;  %v4227_v34 = vld [vmem:[#allocation2 + $0xc7] sm:$0xff] }
 0x13b   : > { %3353 = vpow2.f32 %v3081_v56  ;;  %v1567_v16 = vadd.f32 %v4154_v36, %v1466_v52  ;;  %v1536_v62 = vmul.f32 %v4037_v20, %v1197_v17  ;;  %v2010_v18 = vmul.f32 %v4136_v57, %v1971_v12 }
 0x13c   : > { %v4205_v19 = vadd.f32 %v4151_v7, %v2009_v55  ;;  %v1537_v23 = vmul.f32 %v4037_v20, %v4194_v40  ;;  %v1367_v26 = vadd.f32 %v1335_v14, %v1266_v4  ;;  %v1636_v42 = vmul.f32 %v4054_v47, %v1297_v5 }
 0x13d   : > { %v1871_v44 = vadd.f32 %v1839_v54, %v1770_v41  ;;  %v1437_v36 = vmul.f32 %v4016_v49, %v4198_v38  ;;  %v1940_v17 = vmul.f32 %v4117_v30, %v1298_v58  ;;  %3355 = vpow2.f32 %v3082_v6  ;;  %v4238_v41 = vpop.f32.mrb[31].mxu0 }
 0x13e   : > { %v1569_v12 = vadd.f32 %v1537_v23, %v1468_v60  ;;  %v704_v13 = vmul.f32 %v3975_v8, %v3890_v51  ;;  %v1668_v45 = vadd.f32 %v1636_v42, %v1567_v16  ;;  %v1538_v5 = vmul.f32 %v4037_v20, %v4209_v25  ;;  %v4249_v23 = vld [vmem:[#allocation2 + $0xcf] sm:$0xff] }
 0x13f   : > { %v1469_v43 = vadd.f32 %v1437_v36, %v1367_v26  ;;  %v1568_v56 = vadd.f32 %v1536_v62, %v1467_v9  ;;  %v4224_v3 = vadd.f32 %v4151_v7, %v2010_v18  ;;  %v3083_v52 = vmul.f32 -1.442695, %v4205_v19 }
 0x140   : > { %v3346_v59 = vpop.eup %3345  ;;  %v1638_v6 = vmul.f32 %v4054_v47, %v4212_v15  ;;  %v4233_v8 = vadd.f32 %v3895_v53, %v4129_v35  ;;  %v1637_v60 = vmul.f32 %v4054_v47, %v1298_v58  ;;  %v1972_v55 = vadd.f32 %v1940_v17, %v1871_v44 }
 0x141   : > { %v1739_v4 = vmul.f32 %v4070_v11, %v4175_v24  ;;  %v1570_v31 = vadd.f32 %v1538_v5, %v1469_v43  ;;  %v1639_v54 = vmul.f32 %v4054_v47, %v4219_v50  ;;  %v4243_v16 = vmul.f32 -1.442695, %v4125_v22  ;;  %v4257_v5 = vld [vmem:[#allocation2 + $0xc8] sm:$0xff] }
 0x142   : > { %v3348_v14 = vpop.eup %3347  ;;  %v1670_v9 = vadd.f32 %v1638_v6, %v1569_v12  ;;  %v702_v35 = vmul.f32 %v3890_v51, %v3978_v61  ;;  %v1741_v58 = vmul.f32 %v4070_v11, %v4227_v34  ;;  %v1669_v26 = vadd.f32 %v1637_v60, %v1568_v56 }
 0x143   : > { %v3350_v62 = vpop.eup %3349  ;;  %v1771_v18 = vadd.f32 %v1739_v4, %v1668_v45  ;;  %v4252_v42 = vadd.f32 %v3895_v53, %v704_v13  ;;  %3357 = vpow2.f32 %v3083_v52  ;;  %v3084_v36 = vmul.f32 -1.442695, %v4224_v3  ;;  %v4271_v4 = vld [vmem:[#allocation2 + $0xd0] sm:$0xff] }
 0x144   : > { %v3352_v44 = vpop.eup %3351  ;;  %v1671_v17 = vadd.f32 %v1639_v54, %v1570_v31  ;;  %v962_v12 = vmul.f32 %v3344_v1, %v4044_v28  ;;  %v2011_v61 = vmul.f32 %v4136_v57, %v1972_v55  ;;  %v1840_v45 = vmul.f32 %v4098_v33, %v4194_v40 }
 0x145   : > { %v3354_v43 = vpop.eup %3353  ;;  %v1740_v56 = vmul.f32 %v4070_v11, %v4198_v38  ;;  %v960_v13 = vmul.f32 %v3346_v59, %v4057_v48  ;;  %v1742_v52 = vmul.f32 %v4070_v11, %v4249_v23  ;;  %v1773_v6 = vadd.f32 %v1741_v58, %v1670_v9 }
 0x146   : > { %1069 = vst.msk [vmem:[#allocation2 + $0x108] sm:$0xff] %vm980_vm2, %v962_v12  ;;  %v963_v28 = vmul.f32 %v3348_v14, %v4081_v21  ;;  %v4269_v1 = vmul.f32 -1.442695, %v4233_v8  ;;  %v2173_v60 = vadd.f32 1.0, %v3350_v62  ;;  %v1872_v55 = vadd.f32 %v1840_v45, %v1771_v18  ;;  %v4281_v14 = vld [vmem:[#allocation2 + $0xc9] sm:$0xff] }
 0x147   : > { %v1772_v31 = vadd.f32 %v1740_v56, %v1669_v26  ;;  %1067 = vst.msk [vmem:[#allocation2 + $0xe8] sm:$0xff] %vm980_vm2, %v960_v13  ;;  %v961_v48 = vmul.f32 %v3352_v44, %v4093_v29  ;;  %v3356_v59 = vpop.eup %3355  ;;  %v2174_v54 = vadd.f32 1.0, %v3354_v43  ;;  %3359 = vpow2.f32 %v3084_v36  ;;  %v4296_v43 = vld [vmem:[#allocation2 + $0xd1] sm:$0xff] }
 0x148   : > { %v1842_v9 = vmul.f32 %v4098_v33, %v4257_v5  ;;  %v1774_v58 = vadd.f32 %v1742_v52, %v1671_v17  ;;  %1070 = vst.msk [vmem:[#allocation2 + $0x110] sm:$0xff] %vm980_vm2, %v963_v28  ;;  %v4279_v21 = vadd.f32 %v4151_v7, %v2011_v61  ;;  %v1841_v62 = vmul.f32 %v4098_v33, %v4209_v25 }
 0x149   : > { %v1941_v29 = vmul.f32 %v4117_v30, %v4212_v15  ;;  %1068 = vst.msk [vmem:[#allocation2 + $0xf0] sm:$0xff] %vm980_vm2, %v961_v48  ;;  %v4289_v18 = vadd.f32 %v3895_v53, %v702_v35  ;;  %v1843_v26 = vmul.f32 %v4098_v33, %v4271_v4  ;;  %v3050_v36 = vmul.f32 -1.442695, %v4252_v42 }
 0x14a   : > { %v1874_v44 = vadd.f32 %v1842_v9, %v1773_v6  ;;  %v707_v17 = vmul.f32 %v3993_v27, %v3890_v51  ;;  %3361 = vrcp.f32 %v2173_v60  ;;  %v2175_v12 = vadd.f32 1.0, %v3356_v59 }
 0x14b   : > { %v1873_v61 = vadd.f32 %v1841_v62, %v1772_v31  ;;  %v1973_v45 = vadd.f32 %v1941_v29, %v1872_v55  ;;  %3363 = vrcp.f32 %v2174_v54  ;;  %v1943_v35 = vmul.f32 %v4117_v30, %v4281_v14 }
 0x14c   : > { %v1875_v56 = vadd.f32 %v1843_v26, %v1774_v58  ;;  %v705_v13 = vmul.f32 %v3890_v51, %v3998_v32  ;;  %v3085_v52 = vmul.f32 -1.442695, %v4279_v21  ;;  %v1134_v6 = vmul.f32 %v3984_v0, %v4175_v24 }
 0x14d   : > { %v1235_v27 = vmul.f32 %v3989_v2, %v4194_v40  ;;  %v1942_v28 = vmul.f32 %v4117_v30, %v4219_v50  ;;  %v3358_v60 = vpop.eup %3357  ;;  %v1944_v55 = vmul.f32 %v4117_v30, %v4296_v43  ;;  %v1135_v31 = vmul.f32 %v3984_v0, %v4198_v38 }
 0x14e   : > { %v1236_v32 = vmul.f32 %v3989_v2, %v4209_v25  ;;  %v1975_v48 = vadd.f32 %v1943_v35, %v1874_v44  ;;  %3365 = vrcp.f32 %v2175_v12  ;;  %v2012_v24 = vmul.f32 %v4136_v57, %v1973_v45 }
 0x14f   : > { %v1974_v59 = vadd.f32 %v1942_v28, %v1873_v61  ;;  %v4317_v40 = vmul.f32 -1.442695, %v4289_v18  ;;  %v1976_v54 = vadd.f32 %v1944_v55, %v1875_v56  ;;  %v4320_v9 = vadd.f32 %v3895_v53, %v707_v17 }
 0x150   : > { %v708_v58 = vmul.f32 %v4008_v37, %v3890_v51  ;;  %v4326_v38 = vmul.f32 %v3890_v51, %v4010_v39  ;;  %3367 = vpow2.f32 %v3085_v52  ;;  %v2176_v25 = vadd.f32 1.0, %v3358_v60 }
 0x151   : > { %v4329_v62 = vadd.f32 %v3895_v53, %v705_v13  ;;  %v4333_v29 = vmul.f32 %v4021_v63, %v3890_v51  ;;  %v3360_v26 = vpop.eup %3359  ;;  %v1267_v44 = vadd.f32 %v1235_v27, %v1134_v6  ;;  %v1268_v17 = vadd.f32 %v1236_v32, %v1135_v31 }
 0x152   : > { %v1336_v12 = vmul.f32 %v4003_v10, %v4212_v15  ;;  %v2014_v37 = vmul.f32 %v4136_v57, %v1975_v48  ;;  %v1136_v39 = vmul.f32 %v3984_v0, %v4227_v34  ;;  %v2013_v61 = vmul.f32 %v4136_v57, %v1974_v59  ;;  %v4375_v48 = vld [vmem:[#allocation2 + $0xe7] sm:$0xff] }
 0x153   : > { %v4342_v45 = vadd.f32 %v4151_v7, %v2012_v24  ;;  %3369 = vpow2.f32 %v4243_v16  ;;  %v1237_v51 = vmul.f32 %v3989_v2, %v4257_v5  ;;  %v1337_v63 = vmul.f32 %v4003_v10, %v4219_v50  ;;  %v5506_v24 = vld [vmem:[#allocation7_spill] sm:$0xff] }
 0x154   : > { %v2015_v15 = vmul.f32 %v4136_v57, %v1976_v54  ;;  %3371 = vpow2.f32 %v4269_v1  ;;  %v3362_v35 = vpop.eup %3361  ;;  %v2177_v56 = vadd.f32 1.0, %v3360_v26  ;;  %v4352_v13 = vmul.f32 -1.442695, %v4320_v9  ;;  %v5508_v54 = vld [vmem:[#allocation9_spill] sm:$0xff] }
 0x155   : > { %3373 = vrcp.f32 %v2176_v25  ;;  %v4355_v52 = vadd.f32 %v3895_v53, %v708_v58  ;;  %v3364_v16 = vpop.eup %3363  ;;  %v1368_v6 = vadd.f32 %v1336_v12, %v1267_v44  ;;  %v1369_v27 = vadd.f32 %v1337_v63, %v1268_v17  ;;  %v4388_v17 = vld [vmem:[#allocation2 + $0xef] sm:$0xff] }
 0x156   : > { %v4358_v28 = vadd.f32 %v4151_v7, %v2014_v37  ;;  %3375 = vpow2.f32 %v3050_v36  ;;  %v1137_v50 = vmul.f32 %v3984_v0, %v4249_v23  ;;  %v1238_v1 = vmul.f32 %v3989_v2, %v4271_v4 }
 0x157   : > { %v4365_v60 = vadd.f32 %v4151_v7, %v2013_v61  ;;  %v3086_v55 = vmul.f32 -1.442695, %v4342_v45  ;;  %v1269_v53 = vadd.f32 %v1237_v51, %v1136_v39  ;;  %v1438_v31 = vmul.f32 %v4016_v49, %v4227_v34 }
 0x158   : > { %v1439_v32 = vmul.f32 %v4016_v49, %v4249_v23  ;;  %v4373_v36 = vadd.f32 %v4151_v7, %v2015_v15  ;;  %v3366_v59 = vpop.eup %3365  ;;  %v4378_v2 = vmul.f32 %v3362_v35, %v5506_v24  ;;  %v4381_v58 = vmul.f32 %v3364_v16, %v5508_v54 }
 0x159   : > { %3377 = vrcp.f32 %v2177_v56  ;;  %v1338_v25 = vmul.f32 %v4003_v10, %v4281_v14  ;;  %v1539_v34 = vmul.f32 %v4037_v20, %v4257_v5  ;;  %v1470_v23 = vadd.f32 %v1438_v31, %v1368_v6 }
 0x15a   : > { %5507 = vst [vmem:[#allocation7_spill] sm:$0xff] %v4378_v2  ;;  %5509 = vst [vmem:[#allocation9_spill] sm:$0xff] %v4381_v58  ;;  %v1471_v26 = vadd.f32 %v1439_v32, %v1369_v27  ;;  %v3088_v44 = vmul.f32 -1.442695, %v4358_v28  ;;  %v3368_v12 = vpop.eup %3367  ;;  %v1270_v37 = vadd.f32 %v1238_v1, %v1137_v50  ;;  %3379 = vpow2.f32 %v3086_v55 }
 0x15b   : > { %v3087_v39 = vmul.f32 -1.442695, %v4365_v60  ;;  %v1440_v61 = vmul.f32 %v4016_v49, %v4375_v48  ;;  %v4394_v51 = vmul.f32 %v3366_v59, %v4186_v46  ;;  %v1339_v5 = vmul.f32 %v4003_v10, %v4296_v43  ;;  %v4407_v10 = vld [vmem:[#allocation2 + $0xe8] sm:$0xff] }
 0x15c   : > { %v1540_v63 = vmul.f32 %v4037_v20, %v4271_v4  ;;  %v3089_v15 = vmul.f32 -1.442695, %v4373_v36  ;;  %v2301_v56 = vsel %vm980_vm2, %v4378_v2, 0.0  ;;  %v2302_v16 = vsel %vm980_vm2, %v4381_v58, 0.0  ;;  %v5516_v58 = vld [vmem:[#allocation5_spill] sm:$0xff] }
 0x15d   : > { %5510 = vst [vmem:[#allocation11_spill] sm:$0xff] %v4394_v51  ;;  %v3370_v35 = vpop.eup %3369  ;;  %v1370_v6 = vadd.f32 %v1338_v25, %v1269_v53  ;;  %v1441_v46 = vmul.f32 %v4016_v49, %v4388_v17  ;;  %v2178_v50 = vadd.f32 1.0, %v3368_v12  ;;  %3381 = vpow2.f32 %v3088_v44  ;;  %v4415_v25 = vld [vmem:[#allocation2 + $0xf0] sm:$0xff] }
 0x15e   : > { %v3372_v27 = vpop.eup %3371  ;;  %v1571_v1 = vadd.f32 %v1539_v34, %v1470_v23  ;;  %v1572_v4 = vadd.f32 %v1540_v63, %v1471_v26  ;;  %v1371_v31 = vadd.f32 %v1339_v5, %v1270_v37  ;;  %v1640_v32 = vmul.f32 %v4054_v47, %v4281_v14  ;;  %v4422_v37 = vld [vmem:[#allocation2 + $0xe9] sm:$0xff] }
 0x15f   : > { %v3374_v55 = vpop.eup %3373  ;;  %3383 = vpow2.f32 %v3087_v39  ;;  %v1472_v59 = vadd.f32 %v1440_v61, %v1370_v6  ;;  %v2303_v54 = vadd.f32 %v2302_v16, %v2301_v56  ;;  %v2304_v53 = vsel %vm980_vm2, %v4394_v51, 0.0  ;;  %v4428_v56 = vld [vmem:[#allocation2 + $0xf1] sm:$0xff] }
 0x160   : > { %v3376_v24 = vpop.eup %3375  ;;  %v1641_v49 = vmul.f32 %v4054_v47, %v4296_v43  ;;  %3385 = vpow2.f32 %v3089_v15  ;;  %v1541_v34 = vmul.f32 %v4037_v20, %v4407_v10  ;;  %v1473_v23 = vadd.f32 %v1441_v46, %v1371_v31 }
 0x161   : > { %v870_v26 = vadd.f32 1.0, %v3370_v35  ;;  %v868_v44 = vadd.f32 1.0, %v3372_v27  ;;  %3387 = vrcp.f32 %v2178_v50  ;;  %v4420_v14 = vmul.f32 %v3374_v55, %v4205_v19  ;;  %v4433_v19 = vld [vmem:[%s5465_s3] ss:$0 sm:$0xff] }
 0x162   : > { %v1672_v12 = vadd.f32 %v1640_v32, %v1571_v1  ;;  %v1673_v39 = vadd.f32 %v1641_v49, %v1572_v4  ;;  %v1573_v5 = vadd.f32 %v1541_v34, %v1472_v59  ;;  %v1542_v43 = vmul.f32 %v4037_v20, %v4415_v25  ;;  %v4448_v4 = vld [vmem:[#allocation2 + $0x107] sm:$0xff]  ;;  %v4460_v49 = vld [vmem:[#allocation2 + $0x10f] sm:$0xff] }
 0x163   : > { %5511 = vst [vmem:[#allocation12_spill] sm:$0xff] %v4420_v14  ;;  %v3378_v61 = vpop.eup %3377  ;;  %3389 = vrcp.f32 %v870_v26  ;;  %v871_v63 = vadd.f32 1.0, %v3376_v24  ;;  %v2305_v15 = vadd.f32 %v2304_v53, %v2303_v54  ;;  %v1743_v35 = vmul.f32 %v4070_v11, %v4375_v48 }
 0x164   : > { %3391 = vrcp.f32 %v868_v44  ;;  %v4437_v16 = vadd.f32 %v4433_v19, %v4326_v38  ;;  %v3380_v6 = vpop.eup %3379  ;;  %v1574_v20 = vadd.f32 %v1542_v43, %v1473_v23  ;;  %v1642_v46 = vmul.f32 %v4054_v47, %v4422_v37  ;;  %v4451_v38 = vld [vmem:[#allocation2 + $0x108] sm:$0xff]  ;;  %v4472_v44 = vld [vmem:[#allocation2 + $0x110] sm:$0xff] }
 0x165   : > { %v1744_v27 = vmul.f32 %v4070_v11, %v4388_v17  ;;  %3393 = vrcp.f32 %v871_v63  ;;  %v4444_v50 = vmul.f32 %v3378_v61, %v4224_v3  ;;  %v2306_v1 = vsel %vm980_vm2, %v4420_v14, 0.0 }
 0x166   : > { %5512 = vst [vmem:[#allocation13_spill] sm:$0xff] %v4437_v16  ;;  %v1775_v55 = vadd.f32 %v1743_v35, %v1672_v12  ;;  %3395 = vpow2.f32 %v4317_v40  ;;  %v1643_v31 = vmul.f32 %v4054_v47, %v4428_v56  ;;  %v1674_v32 = vadd.f32 %v1642_v46, %v1573_v5 }
 0x167   : > { %5513 = vst [vmem:[#allocation14_spill] sm:$0xff] %v4444_v50  ;;  %v1776_v59 = vadd.f32 %v1744_v27, %v1673_v39  ;;  %v4456_v24 = vmul.f32 -1.442695, %v4329_v62  ;;  %v3382_v3 = vpop.eup %3381  ;;  %v2179_v54 = vadd.f32 1.0, %v3380_v6  ;;  %v1844_v53 = vmul.f32 %v4098_v33, %v4407_v10 }
 0x168   : > { %v4463_v34 = vmul.f32 -1.442695, %v4355_v52  ;;  %v4466_v40 = vmul.f32 -1.442695, %v4437_v16  ;;  %v4468_v47 = vadd.f32 %v2306_v1, %v2305_v15  ;;  %v1745_v26 = vmul.f32 %v4070_v11, %v4448_v4 }
 0x169   : > { %v3384_v23 = vpop.eup %3383  ;;  %v1675_v12 = vadd.f32 %v1643_v31, %v1574_v20  ;;  %v1845_v39 = vmul.f32 %v4098_v33, %v4415_v25  ;;  %v4478_v5 = vsel %vm980_vm2, %v4444_v50, 0.0  ;;  %v1846_v43 = vmul.f32 %v4098_v33, %v4451_v38 }
 0x16a   : > { %v3386_v61 = vpop.eup %3385  ;;  %v1876_v63 = vadd.f32 %v1844_v53, %v1775_v55  ;;  %3397 = vpow2.f32 %v4352_v13  ;;  %v4485_v15 = vmul.f32 %v3984_v0, %v4375_v48  ;;  %v1746_v35 = vmul.f32 %v4070_v11, %v4460_v49  ;;  %v4493_v53 = vld [vmem:[#allocation2 + $0x109] sm:$0xff]  ;;  %v4500_v11 = vld [vmem:[%s5464_s2] ss:$0 sm:$0xff] }
 0x16b   : > { %v1777_v6 = vadd.f32 %v1745_v26, %v1674_v32  ;;  %v1877_v20 = vadd.f32 %v1845_v39, %v1776_v59  ;;  %v3388_v46 = vpop.eup %3387  ;;  %v2181_v27 = vadd.f32 1.0, %v3382_v3  ;;  %3399 = vrcp.f32 %v2179_v54  ;;  %v5514_v32 = vld [vmem:[#allocation3_spill] sm:$0xff] }
 0x16c   : > { %v1847_v1 = vmul.f32 %v4098_v33, %v4472_v44  ;;  %v1945_v55 = vmul.f32 %v4117_v30, %v4422_v37  ;;  %v2180_v13 = vadd.f32 1.0, %v3384_v23  ;;  %v1778_v0 = vadd.f32 %v1746_v35, %v1675_v12  ;;  %v5515_v23 = vld [vmem:[#allocation4_spill] sm:$0xff]  ;;  %v4507_v35 = vld [vmem:[#allocation2 + $0x111] sm:$0xff] }
 0x16d   : > { %v3390_v31 = vpop.eup %3389  ;;  %v1946_v48 = vmul.f32 %v4117_v30, %v4428_v56  ;;  %v709_v59 = vmul.f32 %v4500_v11, %v5514_v32  ;;  %v2182_v3 = vadd.f32 1.0, %v3386_v61  ;;  %v712_v39 = vmul.f32 %v4500_v11, %v5515_v23 }
 0x16e   : > { %v3392_v33 = vpop.eup %3391  ;;  %v1977_v54 = vadd.f32 %v1945_v55, %v1876_v63  ;;  %v966_v26 = vmul.f32 %v3390_v31, %v4125_v22  ;;  %v1878_v50 = vadd.f32 %v1846_v43, %v1777_v6  ;;  %v710_v2 = vmul.f32 %v4500_v11, %v5516_v58  ;;  %v2372_v6 = vld [vmem:[%s5469_s7] sm:$0xff] }
 0x16f   : > { %v3394_v12 = vpop.eup %3393  ;;  %v1978_v14 = vadd.f32 %v1946_v48, %v1877_v20  ;;  %v964_v51 = vmul.f32 %v3392_v33, %v4233_v8  ;;  %3401 = vrcp.f32 %v2181_v27  ;;  %v1947_v61 = vmul.f32 %v4117_v30, %v4493_v53 }
 0x170   : > { %v3396_v16 = vpop.eup %3395  ;;  %1073 = vst.msk [vmem:[#allocation2 + $0x148] sm:$0xff] %vm980_vm2, %v966_v26  ;;  %v967_v22 = vmul.f32 %v3394_v12, %v4252_v42  ;;  %v4518_v63 = vadd.f32 %v4433_v19, %v4333_v29  ;;  %3403 = vrcp.f32 %v2180_v13  ;;  %v1879_v43 = vadd.f32 %v1847_v1, %v1778_v0  ;;  %v2373_v42 = vld [vmem:[%s5469_s7 + $0x8] sm:$0xff]  ;;  %v2374_v13 = vld [vmem:[%s5469_s7 + $0x10] sm:$0xff] }
 0x171   : > { %1071 = vst.msk [vmem:[#allocation2 + $0x128] sm:$0xff] %vm980_vm2, %v964_v51  ;;  %v869_v8 = vadd.f32 1.0, %v3396_v16  ;;  %v4522_v58 = vadd.f32 %v4433_v19, %v709_v59  ;;  %3405 = vrcp.f32 %v2182_v3  ;;  %v1948_v29 = vmul.f32 %v4117_v30, %v4507_v35 }
 0x172   : > { %v2016_v20 = vmul.f32 %v4136_v57, %v1977_v54  ;;  %1074 = vst.msk [vmem:[#allocation2 + $0x150] sm:$0xff] %vm980_vm2, %v967_v22  ;;  %v4535_v51 = vadd.f32 %v4433_v19, %v712_v39  ;;  %v1979_v16 = vadd.f32 %v1947_v61, %v1878_v50  ;;  %v2017_v27 = vmul.f32 %v4136_v57, %v1978_v14  ;;  %v2375_v50 = vld [vmem:[%s5469_s7 + $0x18] sm:$0xff] }
 0x173   : > { %3407 = vpow2.f32 %v4456_v24  ;;  %v4540_v1 = vadd.f32 %v4433_v19, %v710_v2  ;;  %v3057_v31 = vmul.f32 -1.442695, %v4518_v63  ;;  %v3268_v30 = vpack.c.bf16 %v2373_v42, %v2372_v6  ;;  %v4600_v42 = vld [vmem:[%s5466_s4 + $0x2] ss:$0 sm:$0xff] }
 0x174   : > { %v3398_v55 = vpop.eup %3397  ;;  %3409 = vrcp.f32 %v869_v8  ;;  %v1980_v0 = vadd.f32 %v1948_v29, %v1879_v43  ;;  %v3055_v2 = vmul.f32 -1.442695, %v4522_v58  ;;  %v3606_v24 = vmov 0.0|0.0  }
 0x175   : > { %v874_v14 = vadd.f32 1.0, %v3398_v55  ;;  %3411 = vpow2.f32 %v4463_v34  ;;  %3267 = vmatprep.subr.bf16.mxu0 %v3606_v24  ;;  %v3400_v48 = vpop.eup %3399  ;;  %v4552_v32 = vmul.f32 %v3388_v46, %v4279_v21  ;;  %v4555_v59 = vadd.f32 %v4151_v7, %v2016_v20  ;;  %v4564_v21 = vld [vmem:[%s5466_s4 + $0x1] ss:$0 sm:$0xff] }
 0x176   : > { %3413 = vpow2.f32 %v4466_v40  ;;  %v3058_v33 = vmul.f32 -1.442695, %v4535_v51  ;;  %3269 = vmatpush3.bf16.msra.mxu0 %v3268_v30  ;;  %v2018_v3 = vmul.f32 %v4136_v57, %v1979_v16  ;;  %v3056_v34 = vmul.f32 -1.442695, %v4540_v1  ;;  %v4571_v40 = vld [vmem:[%s5466_s4] ss:$0 sm:$0xff] }
 0x177   : > { %3415 = vrcp.f32 %v874_v14  ;;  %3270 = vmatprep.subr.bf16.mxu0 %v3606_v24  ;;  %v3271_v54 = vpack.c.bf16 %v2375_v50, %v2374_v13  ;;  %v1239_v46 = vmul.f32 %v4564_v21, %v4407_v10  ;;  %v1139_v26 = vmul.f32 %v4571_v40, %v4388_v17 }
 0x178   : > { %v1240_v23 = vmul.f32 %v4564_v21, %v4415_v25  ;;  %3417 = vpow2.f32 %v3057_v31  ;;  %v2309_v39 = vadd.f32 %v4478_v5, %v4468_v47  ;;  %v2019_v12 = vmul.f32 %v4136_v57, %v1980_v0 }
 0x179   : > { %v4581_v61 = vadd.f32 %v4151_v7, %v2017_v27  ;;  %3419 = vpow2.f32 %v3055_v2  ;;  %v3402_v10 = vpop.eup %3401  ;;  %v4584_v22 = vmul.f32 %v3400_v48, %v4342_v45  ;;  %v2310_v17 = vsel %vm980_vm2, %v4552_v32, 0.0  ;;  %v4607_v27 = vld [vmem:[%s5466_s4 + $0x4] ss:$0 sm:$0xff] }
 0x17a   : > { %v3090_v43 = vmul.f32 -1.442695, %v4555_v59  ;;  %3421 = vpow2.f32 %v3058_v33  ;;  %3272 = vmatpush3.bf16.msra.mxu0 %v3271_v54  ;;  %v3404_v25 = vpop.eup %3403  ;;  %v1140_v47 = vmul.f32 %v4571_v40, %v4448_v4  ;;  %v1241_v57 = vmul.f32 %v4564_v21, %v4451_v38 }
 0x17b   : > { %v4594_v5 = vadd.f32 %v4151_v7, %v2018_v3  ;;  %3423 = vpow2.f32 %v3056_v34  ;;  %v3406_v45 = vpop.eup %3405  ;;  %v1271_v8 = vadd.f32 %v1239_v46, %v4485_v15  ;;  %v1272_v6 = vadd.f32 %v1240_v23, %v1139_v26 }
 0x17c   : > { %v1340_v29 = vmul.f32 %v4600_v42, %v4422_v37  ;;  %v2311_v16 = vadd.f32 %v2310_v17, %v2309_v39  ;;  %v1442_v55 = vmul.f32 %v4607_v27, %v4448_v4  ;;  %v4612_v15 = vadd.f32 %v4151_v7, %v2019_v12  ;;  %v4625_v7 = vld [vmem:[%s5466_s4 + $0x5] ss:$0 sm:$0xff] }
 0x17d   : > { %v3408_v20 = vpop.eup %3407  ;;  %v3091_v31 = vmul.f32 -1.442695, %v4581_v61  ;;  %v4616_v13 = vmul.f32 %v3404_v25, %v4365_v60  ;;  %v2312_v37 = vsel %vm980_vm2, %v4584_v22, 0.0  ;;  %v1341_v50 = vmul.f32 %v4600_v42, %v4428_v56 }
 0x17e   : > { %v3410_v30 = vpop.eup %3409  ;;  %3425 = vpow2.f32 %v3090_v43  ;;  %v1273_v14 = vadd.f32 %v1241_v57, %v1140_v47  ;;  %v1543_v4 = vmul.f32 %v4625_v7, %v4451_v38  ;;  %v1141_v60 = vmul.f32 %v4571_v40, %v4460_v49 }
 0x17f   : > { %5517 = vst [vmem:[#allocation3_spill] sm:$0xff] %v4616_v13  ;;  %v3412_v0 = vpop.eup %3411  ;;  %v3092_v2 = vmul.f32 -1.442695, %v4594_v5  ;;  %v1242_v56 = vmul.f32 %v4564_v21, %v4472_v44  ;;  %v1443_v48 = vmul.f32 %v4607_v27, %v4460_v49  ;;  %v1372_v33 = vadd.f32 %v1340_v29, %v1271_v8 }
 0x180   : > { %v3414_v24 = vpop.eup %3413  ;;  %v1373_v3 = vadd.f32 %v1341_v50, %v1272_v6  ;;  %v2313_v54 = vadd.f32 %v2312_v37, %v2311_v16  ;;  %3427 = vpow2.f32 %v3091_v31  ;;  %v3093_v46 = vmul.f32 -1.442695, %v4612_v15  ;;  %v5520_v31 = vld [vmem:[#allocation6_spill] sm:$0xff] }
 0x181   : > { %v3416_v34 = vpop.eup %3415  ;;  %v965_v38 = vmul.f32 %v3410_v30, %v4289_v18  ;;  %v4639_v23 = vmul.f32 %v3402_v10, %v4358_v28  ;;  %v2314_v39 = vsel %vm980_vm2, %v4616_v13, 0.0  ;;  %v872_v17 = vadd.f32 1.0, %v3408_v20  ;;  %v4744_v13 = vld [vmem:[%s5466_s4 + $0xa] ss:$0 sm:$0xff] }
 0x182   : > { %v3418_v26 = vpop.eup %3417  ;;  %v970_v12 = vmul.f32 %v3416_v34, %v4320_v9  ;;  %v1342_v43 = vmul.f32 %v4600_v42, %v4493_v53  ;;  %v1343_v25 = vmul.f32 %v4600_v42, %v4507_v35  ;;  %3429 = vpow2.f32 %v3092_v2  ;;  %v1105_v2 = vld [vmem:[#allocation2 + $0x127] sm:$0xff] }
 0x183   : > { %5518 = vst [vmem:[#allocation4_spill] sm:$0xff] %v4639_v23  ;;  %v3420_v49 = vpop.eup %3419  ;;  %1072 = vst.msk [vmem:[#allocation2 + $0x130] sm:$0xff] %vm980_vm2, %v965_v38  ;;  %v875_v18 = vadd.f32 1.0, %v3412_v0  ;;  %v4650_v28 = vmul.f32 %v3406_v45, %v4373_v36  ;;  %v1474_v10 = vadd.f32 %v1442_v55, %v1372_v33  ;;  %v1475_v57 = vadd.f32 %v1443_v48, %v1373_v3  ;;  %v5522_v48 = vld [vmem:[#allocation8_spill] sm:$0xff] }
 0x184   : > { %v3422_v47 = vpop.eup %3421  ;;  %1077 = vst.msk [vmem:[#allocation2 + $0x188] sm:$0xff] %vm980_vm2, %v970_v12  ;;  %v873_v9 = vadd.f32 1.0, %v3414_v24  ;;  %v2315_v6 = vadd.f32 %v2314_v39, %v2313_v54  ;;  %3431 = vpow2.f32 %v3093_v46  ;;  %v878_v29 = vadd.f32 1.0, %v3418_v26  ;;  %v1206_v26 = vld [vmem:[#allocation2 + $0x128] sm:$0xff] }
 0x185   : > { %5519 = vst [vmem:[#allocation5_spill] sm:$0xff] %v4650_v28  ;;  %v3424_v8 = vpop.eup %3423  ;;  %v2316_v20 = vsel %vm980_vm2, %v4639_v23, 0.0  ;;  %3433 = vrcp.f32 %v872_v17  ;;  %v876_v16 = vadd.f32 1.0, %v3420_v49  ;;  %v715_v30 = vmul.f32 %v4500_v11, %v5520_v31  ;;  %v5523_v17 = vld [vmem:[#allocation10_spill] sm:$0xff] }
 0x186   : > { %v5521_v36 = vmov 0.0   ;;  %v1274_v45 = vadd.f32 %v1242_v56, %v1141_v60  ;;  %v1544_v55 = vmul.f32 %v4625_v7, %v4472_v44  ;;  %3435 = vrcp.f32 %v875_v18  ;;  %v4666_v60 = vld [vmem:[%s5466_s4 + $0x6] ss:$0 sm:$0xff] }
 0x187   : > { %3223 = vmatprep.mubr.msk.f32.mxu0 %vm3607_vm4, %v5521_v36  ;;  %3228 = vmatprep.mubr.msk.f32.mxu1 %vm3607_vm4, %v5521_v36  ;;  %v879_v37 = vadd.f32 1.0, %v3422_v47  ;;  %v1374_v0 = vadd.f32 %v1342_v43, %v1273_v14  ;;  %3437 = vrcp.f32 %v873_v9  ;;  %v877_v24 = vadd.f32 1.0, %v3424_v8  ;;  %v1107_v8 = vld [vmem:[#allocation2 + $0x147] sm:$0xff] }
 0x188   : > { %v3426_v50 = vpop.eup %3425  ;;  %v713_v33 = vmul.f32 %v4500_v11, %v5522_v48  ;;  %v2317_v3 = vadd.f32 %v2316_v20, %v2315_v6  ;;  %v1575_v34 = vadd.f32 %v1543_v4, %v1474_v10  ;;  %v1576_v54 = vadd.f32 %v1544_v55, %v1475_v57  ;;  %v4689_v6 = vld [vmem:[#allocation2 + $0x148] sm:$0xff] }
 0x189   : > { %3439 = vrcp.f32 %v878_v29  ;;  %v1644_v44 = vmul.f32 %v4666_v60, %v4493_v53  ;;  %v2318_v14 = vsel %vm980_vm2, %v4650_v28, 0.0  ;;  %v4673_v56 = vadd.f32 %v4433_v19, %v715_v30 }
 0x18a   : > { %3441 = vrcp.f32 %v876_v16  ;;  %v3428_v46 = vpop.eup %3427  ;;  %v1645_v4 = vmul.f32 %v4666_v60, %v4507_v35  ;;  %v2183_v38 = vadd.f32 1.0, %v3426_v50  ;;  %v1444_v39 = vmul.f32 %v4607_v27, %v1105_v2  ;;  %v1106_v12 = vld [vmem:[#allocation2 + $0x12f] sm:$0xff] }
 0x18b   : > { %3443 = vrcp.f32 %v879_v37  ;;  %v4679_v53 = vadd.f32 %v4433_v19, %v713_v33  ;;  %v716_v49 = vmul.f32 %v4500_v11, %v5523_v17  ;;  %v714_v43 = vmul.f32 %v4500_v11, %v4238_v41  ;;  %v4699_v11 = vld [vmem:[%s5466_s4 + $0x8] ss:$0 sm:$0xff]  ;;  %v4702_v30 = vld [vmem:[#allocation2 + $0x130] sm:$0xff] }
 0x18c   : > { %3445 = vrcp.f32 %v877_v24  ;;  %v3430_v18 = vpop.eup %3429  ;;  %v1375_v47 = vadd.f32 %v1343_v25, %v1274_v45  ;;  %v4685_v10 = vadd.f32 %v2318_v14, %v2317_v3  ;;  %v1676_v35 = vadd.f32 %v1644_v44, %v1575_v34  ;;  %v1307_v36 = vld [vmem:[#allocation2 + $0x129] sm:$0xff]  ;;  %v1308_v28 = vld [vmem:[#allocation2 + $0x131] sm:$0xff] }
 0x18d   : > { %v4687_v57 = vadd.f32 %v1645_v4, %v1576_v54  ;;  %v2184_v9 = vadd.f32 1.0, %v3428_v46  ;;  %v1142_v29 = vmul.f32 %v4571_v40, %v1105_v2  ;;  %v1243_v20 = vmul.f32 %v4564_v21, %v1206_v26 }
 0x18e   : > { %v4694_v16 = vmul.f32 -1.442695, %v4673_v56  ;;  %v3432_v31 = vpop.eup %3431  ;;  %3447 = vrcp.f32 %v2183_v38  ;;  %v1476_v41 = vadd.f32 %v1444_v39, %v1374_v0  ;;  %v1747_v25 = vmul.f32 %v4699_v11, %v1105_v2  ;;  %v4729_v39 = vld [vmem:[%s5466_s4 + $0x9] ss:$0 sm:$0xff] }
 0x18f   : > { %v1445_v45 = vmul.f32 %v4607_v27, %v1106_v12  ;;  %v3434_v55 = vpop.eup %3433  ;;  %v2185_v37 = vadd.f32 1.0, %v3430_v18  ;;  %v4706_v50 = vmul.f32 -1.442695, %v4679_v53  ;;  %v4709_v24 = vadd.f32 %v4433_v19, %v716_v49 }
 0x190   : > { %v4712_v0 = vadd.f32 %v4433_v19, %v714_v43  ;;  %v3436_v48 = vpop.eup %3435  ;;  %v4715_v33 = vmul.f32 %v4571_v40, %v1107_v8  ;;  %v4719_v2 = vmul.f32 %v4564_v21, %v4689_v6  ;;  %v1545_v3 = vmul.f32 %v4625_v7, %v1206_v26 }
 0x191   : > { %v1779_v34 = vadd.f32 %v1747_v25, %v1676_v35  ;;  %v3438_v54 = vpop.eup %3437  ;;  %v1275_v44 = vadd.f32 %v1243_v20, %v1142_v29  ;;  %v1143_v14 = vmul.f32 %v4571_v40, %v1106_v12  ;;  %v1244_v46 = vmul.f32 %v4564_v21, %v4702_v30 }
 0x192   : > { %v1344_v19 = vmul.f32 %v4600_v42, %v1307_v36  ;;  %3449 = vrcp.f32 %v2184_v9  ;;  %v1577_v38 = vadd.f32 %v1545_v3, %v1476_v41  ;;  %v1848_v17 = vmul.f32 %v4729_v39, %v1206_v26 }
 0x193   : > { %v3440_v4 = vpop.eup %3439  ;;  %v1477_v49 = vadd.f32 %v1445_v45, %v1375_v47  ;;  %v2186_v18 = vadd.f32 1.0, %v3432_v31  ;;  %3451 = vrcp.f32 %v2185_v37  ;;  %v1446_v35 = vmul.f32 %v4607_v27, %v1107_v8  ;;  %v5524_v45 = vld [vmem:[#allocation13_spill] sm:$0xff] }
 0x194   : > { %v3442_v43 = vpop.eup %3441  ;;  %v968_v29 = vmul.f32 %v3434_v55, %v4329_v62  ;;  %v1880_v25 = vadd.f32 %v1848_v17, %v1779_v34  ;;  %v1546_v9 = vmul.f32 %v4625_v7, %v4702_v30  ;;  %v1646_v41 = vmul.f32 %v4666_v60, %v1307_v36  ;;  %v1108_v62 = vld [vmem:[#allocation2 + $0x14f] sm:$0xff] }
 0x195   : > { %v3444_v20 = vpop.eup %3443  ;;  %v971_v3 = vmul.f32 %v3436_v48, %v4355_v52  ;;  %v1276_v26 = vadd.f32 %v1244_v46, %v1143_v14  ;;  %v1376_v47 = vadd.f32 %v1344_v19, %v1275_v44  ;;  %v1748_v31 = vmul.f32 %v4699_v11, %v1106_v12  ;;  %v1209_v55 = vld [vmem:[#allocation2 + $0x150] sm:$0xff] }
 0x196   : > { %v3446_v23 = vpop.eup %3445  ;;  %1075 = vst.msk [vmem:[#allocation2 + $0x168] sm:$0xff] %vm980_vm2, %v968_v29  ;;  %v969_v37 = vmul.f32 %v3438_v54, %v5524_v45  ;;  %v1578_v34 = vadd.f32 %v1546_v9, %v1477_v49  ;;  %v1678_v17 = vadd.f32 %v1646_v41, %v1577_v38  ;;  %v1949_v52 = vmul.f32 %v4744_v13, %v1307_v36 }
 0x197   : > { %1078 = vst.msk [vmem:[#allocation2 + $0x190] sm:$0xff] %vm980_vm2, %v971_v3  ;;  %v974_v48 = vmul.f32 %v3440_v4, %v4518_v63  ;;  %v1749_v12 = vmul.f32 %v4699_v11, %v1107_v8  ;;  %v1345_v44 = vmul.f32 %v4600_v42, %v1308_v28  ;;  %v1780_v54 = vadd.f32 %v1748_v31, %v4687_v57 }
 0x198   : > { %1076 = vst.msk [vmem:[#allocation2 + $0x170] sm:$0xff] %vm980_vm2, %v969_v37  ;;  %v972_v14 = vmul.f32 %v3442_v43, %v4522_v58  ;;  %v3448_v46 = vpop.eup %3447  ;;  %v1647_v19 = vmul.f32 %v4666_v60, %v1308_v28  ;;  %v1981_v38 = vadd.f32 %v1949_v52, %v1880_v25  ;;  %v975_v36 = vmul.f32 %v3444_v20, %v4535_v51  ;;  %v1309_v58 = vld [vmem:[#allocation2 + $0x149] sm:$0xff] }
 0x199   : > { %1081 = vst.msk [vmem:[#allocation2 + $0x1c8] sm:$0xff] %vm980_vm2, %v974_v48  ;;  %v973_v63 = vmul.f32 %v3446_v23, %v4540_v1  ;;  %v1145_v8 = vmul.f32 %v4571_v40, %v1108_v62  ;;  %v1246_v4 = vmul.f32 %v4564_v21, %v1209_v55  ;;  %v1377_v49 = vadd.f32 %v1345_v44, %v1276_v26 }
 0x19a   : > { %v1849_v57 = vmul.f32 %v4729_v39, %v4702_v30  ;;  %1079 = vst.msk [vmem:[#allocation2 + $0x1a8] sm:$0xff] %vm980_vm2, %v972_v14  ;;  %3453 = vrcp.f32 %v2186_v18  ;;  %v1478_v43 = vadd.f32 %v1446_v35, %v1376_v47  ;;  %v1679_v29 = vadd.f32 %v1647_v19, %v1578_v34  ;;  %1082 = vst.msk [vmem:[#allocation2 + $0x1d0] sm:$0xff] %vm980_vm2, %v975_v36 }
 0x19b   : > { %v1781_v25 = vadd.f32 %v1749_v12, %v1678_v17  ;;  %1080 = vst.msk [vmem:[#allocation2 + $0x1b0] sm:$0xff] %vm980_vm2, %v973_v63  ;;  %v4766_v51 = vmul.f32 %v3448_v46, %v4555_v59  ;;  %v1447_v1 = vmul.f32 %v4607_v27, %v1108_v62  ;;  %v4770_v20 = vmul.f32 -1.442695, %v4709_v24  ;;  %v4780_v59 = vld [vmem:[%s5467_s5] ss:$0 sm:$0xff] }
 0x19c   : > { %v1881_v23 = vadd.f32 %v1849_v57, %v1780_v54  ;;  %v3450_v30 = vpop.eup %3449  ;;  %v1547_v18 = vmul.f32 %v4625_v7, %v4689_v6  ;;  %v1850_v35 = vmul.f32 %v4729_v39, %v4689_v6  ;;  %v1750_v9 = vmul.f32 %v4699_v11, %v1108_v62  ;;  %v1310_v6 = vld [vmem:[#allocation2 + $0x151] sm:$0xff]  ;;  %v4799_v54 = vld [vmem:[%s5468_s6] ss:$0 sm:$0xff] }
 0x19d   : > { %5525 = vst [vmem:[#allocation6_spill] sm:$0xff] %v4766_v51  ;;  %v2020_v41 = vmul.f32 %v4780_v59, %v1981_v38  ;;  %v3452_v3 = vpop.eup %3451  ;;  %v1277_v26 = vadd.f32 %v4719_v2, %v4715_v33  ;;  %v1346_v47 = vmul.f32 %v4600_v42, %v1309_v58  ;;  %v1479_v31 = vadd.f32 %v1447_v1, %v1377_v49  ;;  %v1109_v38 = vld [vmem:[#allocation2 + $0x167] sm:$0xff] }
 0x19e   : > { %v1950_v45 = vmul.f32 %v4744_v13, %v1308_v28  ;;  %v1278_v37 = vadd.f32 %v1246_v4, %v1145_v8  ;;  %v1782_v34 = vadd.f32 %v1750_v9, %v1679_v29  ;;  %v1882_v62 = vadd.f32 %v1850_v35, %v1781_v25  ;;  %v1210_v4 = vld [vmem:[#allocation2 + $0x168] sm:$0xff] }
 0x19f   : > { %v1579_v17 = vadd.f32 %v1547_v18, %v1478_v43  ;;  %v4788_v52 = vmul.f32 %v3450_v30, %v4581_v61  ;;  %v2320_v48 = vsel %vm980_vm2, %v4766_v51, 0.0  ;;  %v1548_v12 = vmul.f32 %v4625_v7, %v1209_v55  ;;  %v1110_v30 = vld [vmem:[#allocation2 + $0x16f] sm:$0xff] }
 0x1a0   : > { %v1982_v44 = vadd.f32 %v1950_v45, %v1881_v23  ;;  %v1648_v33 = vmul.f32 %v4666_v60, %v1309_v58  ;;  %v1851_v2 = vmul.f32 %v4729_v39, %v1209_v55  ;;  %v1951_v28 = vmul.f32 %v4744_v13, %v1309_v58  ;;  %v1111_v23 = vld [vmem:[#allocation2 + $0x187] sm:$0xff] }
 0x1a1   : > { %5526 = vst [vmem:[#allocation8_spill] sm:$0xff] %v4788_v52  ;;  %v4802_v61 = vadd.f32 %v4799_v54, %v2020_v41  ;;  %v4805_v14 = vmul.f32 %v3452_v3, %v4594_v5  ;;  %v1347_v46 = vmul.f32 %v4600_v42, %v1310_v6  ;;  %v1378_v19 = vadd.f32 %v1346_v47, %v1277_v26  ;;  %v4823_v9 = vld [vmem:[#allocation2 + $0x188] sm:$0xff] }
 0x1a2   : > { %v1580_v36 = vadd.f32 %v1548_v12, %v1479_v31  ;;  %v2321_v55 = vadd.f32 %v2320_v48, %v4685_v10  ;;  %v1883_v63 = vadd.f32 %v1851_v2, %v1782_v34  ;;  %v1983_v8 = vadd.f32 %v1951_v28, %v1882_v62  ;;  %v1311_v34 = vld [vmem:[#allocation2 + $0x169] sm:$0xff] }
 0x1a3   : > { %5527 = vst [vmem:[#allocation10_spill] sm:$0xff] %v4805_v14  ;;  %v1680_v49 = vadd.f32 %v1648_v33, %v1579_v17  ;;  %v2322_v57 = vsel %vm980_vm2, %v4788_v52, 0.0  ;;  %v4811_v58 = vadd.f32 %v1347_v46, %v1278_v37  ;;  %v1649_v43 = vmul.f32 %v4666_v60, %v1310_v6 }
 0x1a4   : > { %v2021_v5 = vmul.f32 %v4780_v59, %v1982_v44  ;;  %v3454_v29 = vpop.eup %3453  ;;  %v1952_v25 = vmul.f32 %v4744_v13, %v1310_v6  ;;  %v3094_v1 = vmul.f32 -1.442695, %v4802_v61  ;;  %v1751_v10 = vmul.f32 %v4699_v11, %v1109_v38  ;;  %v1211_v6 = vld [vmem:[#allocation2 + $0x170] sm:$0xff] }
 0x1a5   : > { %v4819_v18 = vmul.f32 -1.442695, %v4712_v0  ;;  %v2324_v35 = vsel %vm980_vm2, %v4805_v14, 0.0  ;;  %v1146_v41 = vmul.f32 %v4571_v40, %v1109_v38  ;;  %v1247_v3 = vmul.f32 %v4564_v21, %v1210_v4 }
 0x1a6   : > { %v1681_v26 = vadd.f32 %v1649_v43, %v1580_v36  ;;  %v2323_v47 = vadd.f32 %v2322_v57, %v2321_v55  ;;  %v1984_v31 = vadd.f32 %v1952_v25, %v1883_v63  ;;  %v2022_v45 = vmul.f32 %v4780_v59, %v1983_v8  ;;  %v1312_v57 = vld [vmem:[#allocation2 + $0x171] sm:$0xff] }
 0x1a7   : > { %v1783_v37 = vadd.f32 %v1751_v10, %v1680_v49  ;;  %v4829_v62 = vmul.f32 %v3454_v29, %v4612_v15  ;;  %v4832_v17 = vadd.f32 %v4799_v54, %v2021_v5  ;;  %v1148_v48 = vmul.f32 %v4571_v40, %v1111_v23 }
 0x1a8   : > { %v1752_v12 = vmul.f32 %v4699_v11, %v1110_v30  ;;  %3455 = vpow2.f32 %v3094_v1  ;;  %v1249_v44 = vmul.f32 %v4564_v21, %v4823_v9  ;;  %v1448_v33 = vmul.f32 %v4607_v27, %v1109_v38 }
 0x1a9   : > { %5528 = vst [vmem:[#allocation13_spill] sm:$0xff] %v4829_v62  ;;  %v1852_v2 = vmul.f32 %v4729_v39, %v1210_v4  ;;  %v1279_v28 = vadd.f32 %v1247_v3, %v1146_v41  ;;  %v1348_v46 = vmul.f32 %v4600_v42, %v1311_v34  ;;  %v1853_v36 = vmul.f32 %v4729_v39, %v1211_v6 }
 0x1aa   : > { %v1784_v15 = vadd.f32 %v1752_v12, %v1681_v26  ;;  %v4842_v55 = vadd.f32 %v2324_v35, %v2323_v47  ;;  %v2023_v63 = vmul.f32 %v4780_v59, %v1984_v31  ;;  %v4846_v8 = vadd.f32 %v4799_v54, %v2022_v45  ;;  %v1112_v26 = vld [vmem:[#allocation2 + $0x18f] sm:$0xff] }
 0x1ab   : > { %v1884_v49 = vadd.f32 %v1852_v2, %v1783_v37  ;;  %v3095_v43 = vmul.f32 -1.442695, %v4832_v17  ;;  %v1147_v38 = vmul.f32 %v4571_v40, %v1110_v30  ;;  %v1248_v5 = vmul.f32 %v4564_v21, %v1211_v6  ;;  %v4856_v47 = vld [vmem:[#allocation2 + $0x189] sm:$0xff] }
 0x1ac   : > { %v1885_v29 = vadd.f32 %v1853_v36, %v1784_v15  ;;  %v1450_v25 = vmul.f32 %v4607_v27, %v1111_v23  ;;  %v1551_v1 = vmul.f32 %v4625_v7, %v4823_v9  ;;  %v1449_v10 = vmul.f32 %v4607_v27, %v1110_v30  ;;  %v4864_v15 = vld [vmem:[#allocation2 + $0x190] sm:$0xff] }
 0x1ad   : > { %v1953_v35 = vmul.f32 %v4744_v13, %v1311_v34  ;;  %v1281_v41 = vadd.f32 %v1249_v44, %v1148_v48  ;;  %v1480_v3 = vadd.f32 %v1448_v33, %v1378_v19  ;;  %v1380_v31 = vadd.f32 %v1348_v46, %v1279_v28  ;;  %v4867_v33 = vld [vmem:[#allocation2 + $0x1a7] sm:$0xff] }
 0x1ae   : > { %v1954_v45 = vmul.f32 %v4744_v13, %v1312_v57  ;;  %v4860_v37 = vadd.f32 %v4799_v54, %v2023_v63  ;;  %v3096_v12 = vmul.f32 -1.442695, %v4846_v8  ;;  %v1753_v2 = vmul.f32 %v4699_v11, %v1111_v23 }
 0x1af   : > { %v1985_v30 = vadd.f32 %v1953_v35, %v1884_v49  ;;  %3457 = vpow2.f32 %v3095_v43  ;;  %v1549_v48 = vmul.f32 %v4625_v7, %v1210_v4  ;;  %v1280_v19 = vadd.f32 %v1248_v5, %v1147_v38 }
 0x1b0   : > { %v1986_v44 = vadd.f32 %v1954_v45, %v1885_v29  ;;  %v1149_v28 = vmul.f32 %v4571_v40, %v1112_v26  ;;  %v1350_v46 = vmul.f32 %v4600_v42, %v4856_v47  ;;  %v1481_v36 = vadd.f32 %v1449_v10, %v4811_v58  ;;  %v4887_v45 = vld [vmem:[#allocation2 + $0x191] sm:$0xff] }
 0x1b1   : > { %3459 = vpow2.f32 %v4694_v16  ;;  %v1581_v23 = vadd.f32 %v1549_v48, %v1480_v3  ;;  %v1250_v63 = vmul.f32 %v4564_v21, %v4864_v15  ;;  %v1349_v49 = vmul.f32 %v4600_v42, %v1312_v57  ;;  %v4890_v48 = vld [vmem:[#allocation2 + $0x1a8] sm:$0xff] }
 0x1b2   : > { %v1482_v4 = vadd.f32 %v1450_v25, %v1380_v31  ;;  %v3456_v43 = vpop.eup %3455  ;;  %3461 = vpow2.f32 %v3096_v12  ;;  %v1550_v38 = vmul.f32 %v4625_v7, %v1211_v6  ;;  %v2024_v5 = vmul.f32 %v4780_v59, %v1985_v30 }
 0x1b3   : > { %v1452_v29 = vmul.f32 %v4607_v27, %v4867_v33  ;;  %v3097_v58 = vmul.f32 -1.442695, %v4860_v37  ;;  %v1381_v10 = vadd.f32 %v1349_v49, %v1280_v19  ;;  %v1650_v16 = vmul.f32 %v4666_v60, %v1311_v34 }
 0x1b4   : > { %v2025_v35 = vmul.f32 %v4780_v59, %v1986_v44  ;;  %v1854_v3 = vmul.f32 %v4729_v39, %v4823_v9  ;;  %v1382_v25 = vadd.f32 %v1350_v46, %v1281_v41  ;;  %v1582_v31 = vadd.f32 %v1550_v38, %v1481_v36 }
 0x1b5   : > { %3463 = vpow2.f32 %v4706_v50  ;;  %v1282_v6 = vadd.f32 %v1250_v63, %v1149_v28  ;;  %v1451_v12 = vmul.f32 %v4607_v27, %v1112_v26  ;;  %v1682_v30 = vadd.f32 %v1650_v16, %v1581_v23  ;;  %v4907_v23 = vld [vmem:[#allocation2 + $0x1af] sm:$0xff] }
 0x1b6   : > { %v1583_v19 = vadd.f32 %v1551_v1, %v1482_v4  ;;  %v2187_v49 = vadd.f32 1.0, %v3456_v43  ;;  %v1651_v34 = vmul.f32 %v4666_v60, %v1312_v57  ;;  %v4894_v44 = vadd.f32 %v4799_v54, %v2024_v5 }
 0x1b7   : > { %v1484_v9 = vadd.f32 %v1452_v29, %v1382_v25  ;;  %3465 = vpow2.f32 %v3097_v58  ;;  %v1652_v50 = vmul.f32 %v4666_v60, %v4856_v47  ;;  %v1483_v41 = vadd.f32 %v1451_v12, %v1381_v10  ;;  %v4912_v29 = vld [vmem:[#allocation2 + $0x1a9] sm:$0xff] }
 0x1b8   : > { %v4899_v28 = vadd.f32 %v4799_v54, %v2025_v35  ;;  %v1351_v46 = vmul.f32 %v4600_v42, %v4887_v45  ;;  %v1552_v1 = vmul.f32 %v4625_v7, %v4864_v15  ;;  %v1683_v36 = vadd.f32 %v1651_v34, %v1582_v31 }
 0x1b9   : > { %v1553_v57 = vmul.f32 %v4625_v7, %v4890_v48  ;;  %v3458_v63 = vpop.eup %3457  ;;  %v1653_v4 = vmul.f32 %v4666_v60, %v4887_v45  ;;  %v1754_v43 = vmul.f32 %v4699_v11, %v1112_v26  ;;  %v1785_v38 = vadd.f32 %v1753_v2, %v1682_v30 }
 0x1ba   : > { %v1684_v5 = vadd.f32 %v1652_v50, %v1583_v19  ;;  %3467 = vrcp.f32 %v2187_v49  ;;  %v1383_v10 = vadd.f32 %v1351_v46, %v1282_v6  ;;  %v3098_v16 = vmul.f32 -1.442695, %v4894_v44  ;;  %v4922_v49 = vld [vmem:[#allocation2 + $0x1c7] sm:$0xff]  ;;  %v4926_v46 = vld [vmem:[#allocation2 + $0x1b0] sm:$0xff] }
 0x1bb   : > { %v3460_v58 = vpop.eup %3459  ;;  %v1585_v35 = vadd.f32 %v1553_v57, %v1484_v9  ;;  %v3099_v25 = vmul.f32 -1.442695, %v4899_v28  ;;  %v1755_v31 = vmul.f32 %v4699_v11, %v4867_v33  ;;  %v1453_v12 = vmul.f32 %v4607_v27, %v4907_v23 }
 0x1bc   : > { %v1584_v34 = vadd.f32 %v1552_v1, %v1483_v41  ;;  %v3462_v26 = vpop.eup %3461  ;;  %v2188_v2 = vadd.f32 1.0, %v3458_v63  ;;  %v1855_v30 = vmul.f32 %v4729_v39, %v4864_v15  ;;  %v1786_v19 = vadd.f32 %v1754_v43, %v1683_v36 }
 0x1bd   : > { %v1654_v6 = vmul.f32 %v4666_v60, %v4912_v29  ;;  %v1886_v9 = vadd.f32 %v1854_v3, %v1785_v38  ;;  %v1787_v50 = vadd.f32 %v1755_v31, %v1684_v5  ;;  %v1756_v14 = vmul.f32 %v4699_v11, %v4907_v23  ;;  %v4936_v38 = vld [vmem:[#allocation2 + $0x1c8] sm:$0xff] }
 0x1be   : > { %v1685_v57 = vadd.f32 %v1653_v4, %v1584_v34  ;;  %v1955_v1 = vmul.f32 %v4744_v13, %v4856_v47  ;;  %3469 = vpow2.f32 %v3098_v16  ;;  %v1485_v15 = vadd.f32 %v1453_v12, %v1383_v10 }
 0x1bf   : > { %v3464_v41 = vpop.eup %3463  ;;  %v1686_v36 = vadd.f32 %v1654_v6, %v1585_v35  ;;  %3471 = vpow2.f32 %v3099_v25  ;;  %v1757_v63 = vmul.f32 %v4699_v11, %v4922_v49  ;;  %v1856_v3 = vmul.f32 %v4729_v39, %v4890_v48  ;;  %v4942_v25 = vld [vmem:[#allocation2 + $0x1b1] sm:$0xff] }
 0x1c0   : > { %v1788_v43 = vadd.f32 %v1756_v14, %v1685_v57  ;;  %3473 = vrcp.f32 %v2188_v2  ;;  %v1887_v4 = vadd.f32 %v1855_v30, %v1786_v19  ;;  %v1554_v5 = vmul.f32 %v4625_v7, %v4926_v46 }
 0x1c1   : > { %v1857_v47 = vmul.f32 %v4729_v39, %v4926_v46  ;;  %v3466_v10 = vpop.eup %3465  ;;  %v1987_v16 = vadd.f32 %v1955_v1, %v1886_v9  ;;  %v1888_v35 = vadd.f32 %v1856_v3, %v1787_v50  ;;  %v1789_v31 = vadd.f32 %v1757_v63, %v1686_v36  ;;  %v4950_v1 = vld [vmem:[#allocation2 + $0x1c9] sm:$0xff] }
 0x1c2   : > { %v882_v12 = vadd.f32 1.0, %v3460_v58  ;;  %v1956_v14 = vmul.f32 %v4744_v13, %v4887_v45  ;;  %v1586_v34 = vadd.f32 %v1554_v5, %v1485_v15  ;;  %v880_v30 = vadd.f32 1.0, %v3464_v41  ;;  %v4957_v41 = vld [vmem:[#allocation2 + $0x1cf] sm:$0xff] }
 0x1c3   : > { %v1889_v2 = vadd.f32 %v1857_v47, %v1788_v43  ;;  %v2189_v19 = vadd.f32 1.0, %v3462_v26  ;;  %v1858_v6 = vmul.f32 %v4729_v39, %v4936_v38  ;;  %v1957_v57 = vmul.f32 %v4744_v13, %v4912_v29 }
 0x1c4   : > { %3475 = vrcp.f32 %v882_v12  ;;  %v3468_v9 = vpop.eup %3467  ;;  %v1988_v50 = vadd.f32 %v1956_v14, %v1887_v4  ;;  %v1655_v58 = vmul.f32 %v4666_v60, %v4942_v25  ;;  %v1958_v45 = vmul.f32 %v4744_v13, %v4942_v25 }
 0x1c5   : > { %3477 = vrcp.f32 %v880_v30  ;;  %v2026_v26 = vmul.f32 %v4780_v59, %v1987_v16  ;;  %v1890_v15 = vadd.f32 %v1858_v6, %v1789_v31  ;;  %v1989_v36 = vadd.f32 %v1957_v57, %v1888_v35  ;;  %v4968_v31 = vld [vmem:[#allocation2 + $0x1d0] sm:$0xff] }
 0x1c6   : > { %3479 = vpow2.f32 %v4770_v20  ;;  %v2326_v63 = vsel %vm980_vm2, %v4829_v62, 0.0  ;;  %v1687_v3 = vadd.f32 %v1655_v58, %v1586_v34  ;;  %v1990_v43 = vadd.f32 %v1958_v45, %v1889_v2  ;;  %v4987_v58 = vld [vmem:[#allocation2 + $0x1d1] sm:$0xff] }
 0x1c7   : > { %3481 = vpow2.f32 %v4819_v18  ;;  %v2190_v4 = vadd.f32 1.0, %v3466_v10  ;;  %v4964_v5 = vmul.f32 %v3468_v9, %v4802_v61  ;;  %v1959_v47 = vmul.f32 %v4744_v13, %v4950_v1 }
 0x1c8   : > { %3483 = vrcp.f32 %v2189_v19  ;;  %v3470_v16 = vpop.eup %3469  ;;  %v1758_v20 = vmul.f32 %v4699_v11, %v4957_v41  ;;  %v2027_v35 = vmul.f32 %v4780_v59, %v1988_v50  ;;  %v2327_v14 = vadd.f32 %v2326_v63, %v4842_v55 }
 0x1c9   : > { %5529 = vst [vmem:[#allocation15_spill] sm:$0xff] %v4964_v5  ;;  %v3472_v12 = vpop.eup %3471  ;;  %v2028_v18 = vmul.f32 %v4780_v59, %v1989_v36  ;;  %v1991_v10 = vadd.f32 %v1959_v47, %v1890_v15  ;;  %v4976_v61 = vadd.f32 %v4799_v54, %v2026_v26  ;;  %v1150_v2 = vmul.f32 %v4571_v40, %v4867_v33 }
 0x1ca   : > { %v3474_v34 = vpop.eup %3473  ;;  %v1251_v30 = vmul.f32 %v4564_v21, %v4890_v48  ;;  %v1790_v19 = vadd.f32 %v1758_v20, %v1687_v3  ;;  %v2029_v6 = vmul.f32 %v4780_v59, %v1990_v43  ;;  %3485 = vrcp.f32 %v2190_v4 }
 0x1cb   : > { %v2328_v55 = vsel %vm980_vm2, %v4964_v5, 0.0  ;;  %v2191_v57 = vadd.f32 1.0, %v3470_v16  ;;  %v1859_v9 = vmul.f32 %v4729_v39, %v4968_v31  ;;  %v2192_v50 = vadd.f32 1.0, %v3472_v12 }
 0x1cc   : > { %v1151_v33 = vmul.f32 %v4571_v40, %v4907_v23  ;;  %v1252_v48 = vmul.f32 %v4564_v21, %v4926_v46  ;;  %v4994_v45 = vadd.f32 %v4799_v54, %v2027_v35  ;;  %v4997_v15 = vmul.f32 %v3474_v34, %v4832_v17 }
 0x1cd   : > { %v2030_v36 = vmul.f32 %v4780_v59, %v1991_v10  ;;  %v5001_v63 = vadd.f32 %v4799_v54, %v2028_v18  ;;  %v3100_v3 = vmul.f32 -1.442695, %v4976_v61  ;;  %v1283_v4 = vadd.f32 %v1251_v30, %v1150_v2 }
 0x1ce   : > { %v3476_v26 = vpop.eup %3475  ;;  %5530 = vst [vmem:[#allocation16_spill] sm:$0xff] %v4997_v15  ;;  %v1891_v47 = vadd.f32 %v1859_v9, %v1790_v19  ;;  %v5006_v46 = vadd.f32 %v4799_v54, %v2029_v6  ;;  %3487 = vrcp.f32 %v2191_v57  ;;  %v1960_v17 = vmul.f32 %v4744_v13, %v4987_v58 }
 0x1cf   : > { %v3478_v43 = vpop.eup %3477  ;;  %v978_v23 = vmul.f32 %v3476_v26, %v4673_v56  ;;  %v1352_v20 = vmul.f32 %v4600_v42, %v4912_v29  ;;  %3489 = vrcp.f32 %v2192_v50  ;;  %v1284_v18 = vadd.f32 %v1252_v48, %v1151_v33  ;;  %v1725_v50 = vld [vmem:[#allocation2 + $0x227] sm:$0xff] }
 0x1d0   : > { %v3480_v16 = vpop.eup %3479  ;;  %v976_v35 = vmul.f32 %v3478_v43, %v4679_v53  ;;  %v3101_v10 = vmul.f32 -1.442695, %v4994_v45  ;;  %v5017_v30 = vadd.f32 %v4799_v54, %v2030_v36  ;;  %3491 = vpow2.f32 %v3100_v3 }
 0x1d1   : > { %v3482_v12 = vpop.eup %3481  ;;  %1085 = vst.msk [vmem:[#allocation2 + $0x208] sm:$0xff] %vm980_vm2, %v978_v23  ;;  %v883_v56 = vadd.f32 1.0, %v3480_v16  ;;  %v3102_v29 = vmul.f32 -1.442695, %v5001_v63  ;;  %v1992_v53 = vadd.f32 %v1960_v17, %v1891_v47  ;;  %v3103_v19 = vmul.f32 -1.442695, %v5006_v46 }
 0x1d2   : > { %v3484_v34 = vpop.eup %3483  ;;  %1083 = vst.msk [vmem:[#allocation2 + $0x1e8] sm:$0xff] %vm980_vm2, %v976_v35  ;;  %v881_v2 = vadd.f32 1.0, %v3482_v12  ;;  %v2329_v6 = vadd.f32 %v2328_v55, %v2327_v14  ;;  %v1353_v57 = vmul.f32 %v4600_v42, %v4942_v25  ;;  %v1384_v9 = vadd.f32 %v1352_v20, %v1283_v4  ;;  %v1726_v47 = vld [vmem:[#allocation2 + $0x22f] sm:$0xff] }
 0x1d3   : > { %3493 = vrcp.f32 %v883_v56  ;;  %v5024_v33 = vmul.f32 %v3484_v34, %v4846_v8  ;;  %v2330_v48 = vsel %vm980_vm2, %v4997_v15, 0.0  ;;  %v1454_v36 = vmul.f32 %v4607_v27, %v4922_v49  ;;  %v1827_v16 = vld [vmem:[#allocation2 + $0x228] sm:$0xff]  ;;  %v1828_v17 = vld [vmem:[#allocation2 + $0x230] sm:$0xff] }
 0x1d4   : > { %3495 = vrcp.f32 %v881_v2  ;;  %v3486_v26 = vpop.eup %3485  ;;  %v1385_v3 = vadd.f32 %v1353_v57, %v1284_v18  ;;  %v3104_v14 = vmul.f32 -1.442695, %v5017_v30  ;;  %v5032_v25 = vmul.f32 %v4699_v11, %v1725_v50  ;;  %v1928_v12 = vld [vmem:[#allocation2 + $0x229] sm:$0xff] }
 0x1d5   : > { %5531 = vst [vmem:[#allocation17_spill] sm:$0xff] %v5024_v33  ;;  %3497 = vpow2.f32 %v3101_v10  ;;  %v2031_v55 = vmul.f32 %v4780_v59, %v1992_v53  ;;  %v2331_v8 = vadd.f32 %v2330_v48, %v2329_v6  ;;  %v1152_v43 = vmul.f32 %v4571_v40, %v4922_v49 }
 0x1d6   : > { %3499 = vpow2.f32 %v3102_v29  ;;  %v1455_v4 = vmul.f32 %v4607_v27, %v4957_v41  ;;  %v1486_v23 = vadd.f32 %v1454_v36, %v1384_v9  ;;  %v1253_v20 = vmul.f32 %v4564_v21, %v4936_v38 }
 0x1d7   : > { %3501 = vpow2.f32 %v3103_v19  ;;  %v1555_v35 = vmul.f32 %v4625_v7, %v4936_v38  ;;  %v5044_v18 = vmul.f32 %v3486_v26, %v4860_v37  ;;  %v2332_v49 = vsel %vm980_vm2, %v5024_v33, 0.0 }
 0x1d8   : > { %v3488_v56 = vpop.eup %3487  ;;  %v1153_v10 = vmul.f32 %v4571_v40, %v4957_v41  ;;  %v1254_v34 = vmul.f32 %v4564_v21, %v4968_v31  ;;  %v1487_v2 = vadd.f32 %v1455_v4, %v1385_v3  ;;  %3503 = vpow2.f32 %v3104_v14  ;;  %v1929_v41 = vld [vmem:[#allocation2 + $0x231] sm:$0xff] }
 0x1d9   : > { %5532 = vst [vmem:[#allocation18_spill] sm:$0xff] %v5044_v18  ;;  %v3490_v29 = vpop.eup %3489  ;;  %v5053_v53 = vmul.f32 %v4699_v11, %v1726_v47  ;;  %v5056_v38 = vmul.f32 %v4729_v39, %v1827_v16  ;;  %v5059_v37 = vmul.f32 %v4729_v39, %v1828_v17  ;;  %v5062_v19 = vadd.f32 %v4799_v54, %v2031_v55  ;;  %v1117_v3 = vld [vmem:[#allocation2 + $0x1e7] sm:$0xff] }
 0x1da   : > { %v3492_v6 = vpop.eup %3491  ;;  %v1556_v40 = vmul.f32 %v4625_v7, %v4968_v31  ;;  %v1587_v21 = vadd.f32 %v1555_v35, %v1486_v23  ;;  %v5067_v57 = vmul.f32 %v4744_v13, %v1928_v12  ;;  %v2333_v9 = vadd.f32 %v2332_v49, %v2331_v8  ;;  %v1218_v12 = vld [vmem:[#allocation2 + $0x1e8] sm:$0xff] }
 0x1db   : > { %v5070_v48 = vmul.f32 %v3488_v56, %v4894_v44  ;;  %v1285_v26 = vadd.f32 %v1253_v20, %v1152_v43  ;;  %v1354_v36 = vmul.f32 %v4600_v42, %v4950_v1  ;;  %v2334_v14 = vsel %vm980_vm2, %v5044_v18, 0.0 }
 0x1dc   : > { %v1286_v31 = vadd.f32 %v1254_v34, %v1153_v10  ;;  %v1656_v4 = vmul.f32 %v4666_v60, %v4950_v1  ;;  %v1588_v8 = vadd.f32 %v1556_v40, %v1487_v2  ;;  %v1355_v44 = vmul.f32 %v4600_v42, %v4987_v58  ;;  %v1522_v40 = vld [vmem:[#allocation2 + $0x208] sm:$0xff] }
 0x1dd   : > { %v3494_v50 = vpop.eup %3493  ;;  %5533 = vst [vmem:[#allocation19_spill] sm:$0xff] %v5070_v48  ;;  %v5083_v16 = vmul.f32 %v4744_v13, %v1929_v41  ;;  %v3105_v17 = vmul.f32 -1.442695, %v5062_v19  ;;  %v1657_v35 = vmul.f32 %v4666_v60, %v4987_v58  ;;  %v1456_v1 = vmul.f32 %v4607_v27, %v1117_v3  ;;  %v1420_v58 = vld [vmem:[#allocation2 + $0x207] sm:$0xff] }
 0x1de   : > { %v3496_v55 = vpop.eup %3495  ;;  %v979_v23 = vmul.f32 %v3494_v50, %v4709_v24  ;;  %v1688_v24 = vadd.f32 %v1656_v4, %v1587_v21  ;;  %v2335_v49 = vadd.f32 %v2334_v14, %v2333_v9  ;;  %v5091_v42 = vmul.f32 %v3490_v29, %v4899_v28  ;;  %v3560_v9 = vld [vmem:[%s5466_s4] ss:$0 sm:$0xff]  ;;  %v3561_v29 = vld [vmem:[%s5466_s4 + $0x1] ss:$0 sm:$0xff]  ;;  %v3562_v4 = vld [vmem:[%s5466_s4 + $0x4] ss:$0 sm:$0xff] }
 0x1df   : > { %v3498_v47 = vpop.eup %3497  ;;  %v977_v43 = vmul.f32 %v3496_v55, %v4712_v0  ;;  %v1386_v0 = vadd.f32 %v1354_v36, %v1285_v26  ;;  %v2193_v10 = vadd.f32 1.0, %v3492_v6  ;;  %v2336_v34 = vsel %vm980_vm2, %v5070_v48, 0.0 }
 0x1e0   : > { %v3500_v20 = vpop.eup %3499  ;;  %1086 = vst.msk [vmem:[#allocation2 + $0x210] sm:$0xff] %vm980_vm2, %v979_v23  ;;  %5534 = vst [vmem:[#allocation20_spill] sm:$0xff] %v5091_v42  ;;  %v1387_v2 = vadd.f32 %v1355_v44, %v1286_v31  ;;  %v1759_v27 = vmul.f32 %v4699_v11, %v1117_v3  ;;  %v1689_v21 = vadd.f32 %v1657_v35, %v1588_v8  ;;  %v2194_v41 = vadd.f32 1.0, %v3498_v47  ;;  %v3563_v44 = vld [vmem:[%s5466_s4 + $0x5] ss:$0 sm:$0xff] }
 0x1e1   : > { %v3502_v56 = vpop.eup %3501  ;;  %1084 = vst.msk [vmem:[#allocation2 + $0x1f0] sm:$0xff] %vm980_vm2, %v977_v43  ;;  %v1154_v28 = vmul.f32 %v3560_v9, %v1117_v3  ;;  %v1255_v6 = vmul.f32 %v3561_v29, %v1218_v12  ;;  %3505 = vpow2.f32 %v3105_v17  ;;  %v2195_v50 = vadd.f32 1.0, %v3500_v20 }
 0x1e2   : > { %v3504_v26 = vpop.eup %3503  ;;  %v1488_v36 = vadd.f32 %v1456_v1, %v1386_v0  ;;  %v1791_v14 = vadd.f32 %v1759_v27, %v1688_v24  ;;  %v2196_v55 = vadd.f32 1.0, %v3502_v56  ;;  %v5103_v31 = vadd.f32 %v2336_v34, %v2335_v49 }
 0x1e3   : > { %v1458_v23 = vmul.f32 %v3562_v4, %v1420_v58  ;;  %v1559_v3 = vmul.f32 %v4625_v7, %v1522_v40  ;;  %3507 = vrcp.f32 %v2193_v10  ;;  %v5111_v8 = vsel %vm980_vm2, %v5091_v42, 0.0 }
 0x1e4   : > { %v1761_v47 = vmul.f32 %v4699_v11, %v1420_v58  ;;  %v1557_v43 = vmul.f32 %v3563_v44, %v1218_v12  ;;  %v1860_v17 = vmul.f32 %v4729_v39, %v1218_v12  ;;  %3509 = vrcp.f32 %v2194_v41 }
 0x1e5   : > { %v1862_v20 = vmul.f32 %v4729_v39, %v1522_v40  ;;  %v1287_v35 = vadd.f32 %v1255_v6, %v1154_v28  ;;  %v5119_v49 = vadd.f32 1.0, %v3504_v26  ;;  %3511 = vrcp.f32 %v2195_v50  ;;  %v3564_v28 = vld [vmem:[%s5466_s4 + $0x2] ss:$0 sm:$0xff] }
 0x1e6   : > { %v1589_v56 = vadd.f32 %v1557_v43, %v1488_v36  ;;  %v1892_v0 = vadd.f32 %v1860_v17, %v1791_v14  ;;  %3513 = vrcp.f32 %v2196_v55 }
 0x1e7   : > { %v1421_v1 = vld [vmem:[#allocation2 + $0x20f] sm:$0xff]  ;;  %3515 = vrcp.f32 %v5119_v49 }
 0x1e8   : > { %v1523_v7 = vld [vmem:[#allocation2 + $0x210] sm:$0xff]  ;;  %v1459_v10 = vmul.f32 %v3562_v4, %v1421_v1 }
 0x1e9   : > { %v1623_v24 = vld [vmem:[#allocation2 + $0x209] sm:$0xff]  ;;  %v1560_v27 = vmul.f32 %v3563_v44, %v1523_v7  ;;  %v1320_v41 = vld [vmem:[#allocation2 + $0x1f1] sm:$0xff] }
 0x1ea   : > { %v1118_v34 = vld [vmem:[#allocation2 + $0x1ef] sm:$0xff]  ;;  %v1660_v40 = vmul.f32 %v4666_v60, %v1623_v24  ;;  %v1357_v14 = vmul.f32 %v3564_v28, %v1320_v41 }
 0x1eb   : > { %v1219_v58 = vld [vmem:[#allocation2 + $0x1f0] sm:$0xff]  ;;  %v1155_v42 = vmul.f32 %v3560_v9, %v1118_v34  ;;  %v1457_v18 = vmul.f32 %v3562_v4, %v1118_v34  ;;  %v1760_v55 = vmul.f32 %v4699_v11, %v1118_v34  ;;  %v1659_v4 = vmul.f32 %v4666_v60, %v1320_v41  ;;  %v3506_v15 = vpop.eup %3505 }
 0x1ec   : > { %v1256_v48 = vmul.f32 %v3561_v29, %v1219_v58  ;;  %v1319_v12 = vld [vmem:[#allocation2 + $0x1e9] sm:$0xff]  ;;  %v1558_v50 = vmul.f32 %v3563_v44, %v1219_v58  ;;  %v1624_v9 = vld [vmem:[#allocation2 + $0x211] sm:$0xff]  ;;  %v1762_v29 = vmul.f32 %v4699_v11, %v1421_v1  ;;  %v1861_v44 = vmul.f32 %v4729_v39, %v1219_v58 }
 0x1ed   : > { %v1356_v6 = vmul.f32 %v3564_v28, %v1319_v12  ;;  %v1658_v26 = vmul.f32 %v4666_v60, %v1319_v12  ;;  %v1489_v43 = vadd.f32 %v1457_v18, %v1387_v2  ;;  %v1792_v52 = vadd.f32 %v1760_v55, %v1689_v21  ;;  %v3508_v2 = vpop.eup %3507 }
 0x1ee   : > { %v1288_v36 = vadd.f32 %v1256_v48, %v1155_v42  ;;  %v1961_v51 = vmul.f32 %v4744_v13, %v1319_v12  ;;  %v1962_v48 = vmul.f32 %v4744_v13, %v1320_v41  ;;  %v1661_v11 = vmul.f32 %v4666_v60, %v1624_v9  ;;  %v3510_v28 = vpop.eup %3509 }
 0x1ef   : > { %v1388_v17 = vadd.f32 %v1356_v6, %v1287_v35  ;;  %v1690_v33 = vadd.f32 %v1658_v26, %v1589_v56  ;;  %v1590_v62 = vadd.f32 %v1558_v50, %v1489_v43  ;;  %v1893_v1 = vadd.f32 %v1861_v44, %v1792_v52  ;;  %v3512_v26 = vpop.eup %3511 }
 0x1f0   : > { %v1389_v5 = vadd.f32 %v1357_v14, %v1288_v36  ;;  %v1963_v50 = vmul.f32 %v4744_v13, %v1623_v24  ;;  %v1993_v21 = vadd.f32 %v1961_v51, %v1892_v0  ;;  %v1863_v12 = vmul.f32 %v4729_v39, %v1523_v7 }
 0x1f1   : > { %v1490_v18 = vadd.f32 %v1458_v23, %v1388_v17  ;;  %v1793_v42 = vadd.f32 %v1761_v47, %v1690_v33  ;;  %v1691_v35 = vadd.f32 %v1659_v4, %v1590_v62  ;;  %v1994_v41 = vadd.f32 %v1962_v48, %v1893_v1  ;;  %v3514_v23 = vpop.eup %3513 }
 0x1f2   : > { %v1491_v34 = vadd.f32 %v1459_v10, %v1389_v5  ;;  %v2032_v5 = vmul.f32 %v4780_v59, %v1993_v21  ;;  %v5137_v60 = vmul.f32 %v3508_v2, %v4976_v61  ;;  %v2339_v7 = vadd.f32 %v5111_v8, %v5103_v31 }
 0x1f3   : > { %v1591_v56 = vadd.f32 %v1559_v3, %v1490_v18  ;;  %v1894_v6 = vadd.f32 %v1862_v20, %v1793_v42  ;;  %v1794_v36 = vadd.f32 %v1762_v29, %v1691_v35  ;;  %v1964_v3 = vmul.f32 %v4744_v13, %v1624_v9  ;;  %v3516_v42 = vpop.eup %3515 }
 0x1f4   : > { %v1592_v58 = vadd.f32 %v1560_v27, %v1491_v34  ;;  %v2033_v51 = vmul.f32 %v4780_v59, %v1994_v41  ;;  %v5144_v39 = vadd.f32 %v4799_v54, %v2032_v5  ;;  %v2198_v27 = vadd.f32 1.0, %v3506_v15 }
 0x1f5   : > { %v1692_v33 = vadd.f32 %v1660_v40, %v1591_v56  ;;  %v1995_v47 = vadd.f32 %v1963_v50, %v1894_v6  ;;  %v1895_v62 = vadd.f32 %v1863_v12, %v1794_v36  ;;  %v2340_v8 = vsel %vm980_vm2, %v5137_v60, 0.0 }
 0x1f6   : > { %v1693_v52 = vadd.f32 %v1661_v11, %v1592_v58  ;;  %v5150_v10 = vadd.f32 %v4799_v54, %v2033_v51  ;;  %v5166_v43 = vmul.f32 %v3510_v28, %v4994_v45  ;;  %v2341_v17 = vadd.f32 %v2340_v8, %v2339_v7 }
 0x1f7   : > { %v1795_v20 = vadd.f32 %v5032_v25, %v1692_v33  ;;  %v2034_v24 = vmul.f32 %v4780_v59, %v1995_v47  ;;  %v1996_v61 = vadd.f32 %v1964_v3, %v1895_v62  ;;  %v3106_v25 = vmul.f32 -1.442695, %v5144_v39 }
 0x1f8   : > { %v1796_v0 = vadd.f32 %v5053_v53, %v1693_v52  ;;  %v3107_v53 = vmul.f32 -1.442695, %v5150_v10  ;;  %v5174_v4 = vmul.f32 %v3512_v26, %v5001_v63  ;;  %v2342_v45 = vsel %vm980_vm2, %v5166_v43, 0.0 }
 0x1f9   : > { %v1896_v13 = vadd.f32 %v5056_v38, %v1795_v20  ;;  %v5154_v40 = vadd.f32 %v4799_v54, %v2034_v24  ;;  %v2035_v31 = vmul.f32 %v4780_v59, %v1996_v61  ;;  %3517 = vpow2.f32 %v3106_v25 }
 0x1fa   : > { %v1897_v14 = vadd.f32 %v5059_v37, %v1796_v0  ;;  %3519 = vpow2.f32 %v3107_v53  ;;  %v2343_v18 = vadd.f32 %v2342_v45, %v2341_v17  ;;  %v2344_v2 = vsel %vm980_vm2, %v5174_v4, 0.0 }
 0x1fb   : > { %v1997_v15 = vadd.f32 %v5067_v57, %v1896_v13  ;;  %v3108_v38 = vmul.f32 -1.442695, %v5154_v40  ;;  %v2074_v49 = vadd.f32 %v4799_v54, %v2035_v31 }
 0x1fc   : > { %v1998_v55 = vadd.f32 %v5083_v16, %v1897_v14  ;;  %v2345_v35 = vadd.f32 %v2344_v2, %v2343_v18  ;;  %v3285_v2 = vld [vmem:[%s5471_s9] sm:$0xff]  }
 0x1fd   : > { %v2036_v37 = vmul.f32 %v4780_v59, %v1997_v15  ;;  %3521 = vpow2.f32 %v3108_v38  ;;  %v3109_v29 = vmul.f32 -1.442695, %v2074_v49 }
 0x1fe   : > { %v2037_v9 = vmul.f32 %v4780_v59, %v1998_v55  ;;  %3523 = vrcp.f32 %v2198_v27  ;;  %v5180_v59 = vmul.f32 %v3514_v23, %v5006_v46 }
 0x1ff   : > { %v2075_v57 = vadd.f32 %v4799_v54, %v2036_v37  ;;  %3525 = vpow2.f32 %v3109_v29 }
 0x200   : > { %v2076_v16 = vadd.f32 %v4799_v54, %v2037_v9  ;;  %v5185_v54 = vmul.f32 %v3516_v42, %v5017_v30  ;;  %v2346_v56 = vsel %vm980_vm2, %v5180_v59, 0.0 }
 0x201   : > { %v3110_v44 = vmul.f32 -1.442695, %v2075_v57  ;;  %v2347_v21 = vadd.f32 %v2346_v56, %v2345_v35  ;;  %v2530_v56 = vlaneseq }
 0x202   : > { %v3111_v48 = vmul.f32 -1.442695, %v2076_v16  ;;  %v2348_v36 = vsel %vm980_vm2, %v5185_v54, 0.0 }
 0x203   : > { %3527 = vpow2.f32 %v3110_v44  ;;  %v3518_v63 = vpop.eup %3517  ;;  %v2349_v23 = vadd.f32 %v2348_v36, %v2347_v21 }
 0x204   : > { %3529 = vpow2.f32 %v3111_v48  ;;  %v3520_v34 = vpop.eup %3519  ;;  %v2199_v11 = vadd.f32 1.0, %v3518_v63  ;;  %v3286_v63 = vld [vmem:[%s5471_s9 + $0x8] sm:$0xff]  }
 0x205   : > { %v2200_v28 = vadd.f32 1.0, %v3520_v34 }
 0x206   : > { %3531 = vrcp.f32 %v2199_v11 }
 0x207   : > { %v3522_v1 = vpop.eup %3521  ;;  %3533 = vrcp.f32 %v2200_v28 }
 0x208   : > { %v3524_v6 = vpop.eup %3523  ;;  %v2201_v50 = vadd.f32 1.0, %v3522_v1 }
 0x209   : > { %v3526_v46 = vpop.eup %3525  ;;  %v5190_v58 = vmul.f32 %v3524_v6, %v5062_v19  ;;  %v2531_v6 = vshrl.u32 %v2530_v56, 7 }
 0x20a   : > { %3535 = vrcp.f32 %v2201_v50  ;;  %v2202_v26 = vadd.f32 1.0, %v3526_v46 }
 0x20b   : > { %v2350_v47 = vsel %vm980_vm2, %v5190_v58, 0.0  ;;  %v2532_v50 = vsub.s32 0, %v2531_v6 }
 0x20c   : > { %3537 = vrcp.f32 %v2202_v26  ;;  %v2351_v52 = vadd.f32 %v2350_v47, %v2349_v23  ;;  %v5535_v26 = vld [vmem:[#allocation7_spill] sm:$0xff] }
 0x20d   : > { %v3528_v12 = vpop.eup %3527 }
 0x20e   : > { %v3530_v30 = vpop.eup %3529  ;;  %v2203_v41 = vadd.f32 1.0, %v3528_v12  ;;  %v5536_v12 = vld [vmem:[#allocation9_spill] sm:$0xff] }
 0x20f   : > { %v2204_v33 = vadd.f32 1.0, %v3530_v30 }
 0x210   : > { %3539 = vrcp.f32 %v2203_v41  ;;  %v3532_v5 = vpop.eup %3531  ;;  %v5537_v41 = vld [vmem:[#allocation11_spill] sm:$0xff] }
 0x211   : > { %3541 = vrcp.f32 %v2204_v33  ;;  %v3534_v62 = vpop.eup %3533  ;;  %v5197_v19 = vmul.f32 %v3532_v5, %v5144_v39  ;;  %v5538_v33 = vld [vmem:[#allocation12_spill] sm:$0xff]  ;;  %v5539_v5 = vld [vmem:[#allocation14_spill] sm:$0xff] }
 0x212   : > { %v5200_v51 = vmul.f32 %v3534_v62, %v5150_v10 }
 0x213   : > { %v2352_v24 = vsel %vm980_vm2, %v5197_v19, 0.0 }
 0x214   : > { %v3536_v3 = vpop.eup %3535  ;;  %v2353_v7 = vadd.f32 %v2352_v24, %v2351_v52  ;;  %v2354_v0 = vsel %vm980_vm2, %v5200_v51, 0.0 }
 0x215   : > { %v5203_v20 = vmul.f32 %v3536_v3, %v5154_v40 }
 0x216   : > { %v3538_v61 = vpop.eup %3537  ;;  %v2355_v13 = vadd.f32 %v2354_v0, %v2353_v7 }
 0x217   : > { %v2356_v27 = vsel %vm980_vm2, %v5203_v20, 0.0  ;;  %v5211_v39 = vmul.f32 %v3538_v61, %v2074_v49  ;;  %v5540_v61 = vld [vmem:[#allocation3_spill] sm:$0xff] }
 0x218   : > { %v2357_v10 = vadd.f32 %v2356_v27, %v2355_v13  ;;  %v5541_v13 = vld [vmem:[#allocation4_spill] sm:$0xff] }
 0x219   : > { %v2358_v40 = vsel %vm980_vm2, %v5211_v39, 0.0 }
 0x21a   : > { %v3540_v25 = vpop.eup %3539  ;;  %v2359_v8 = vadd.f32 %v2358_v40, %v2357_v10  ;;  %v5542_v10 = vld [vmem:[#allocation5_spill] sm:$0xff] }
 0x21b   : > { %v3542_v14 = vpop.eup %3541  ;;  %v5215_v31 = vmul.f32 %v3540_v25, %v2075_v57  ;;  %v2450_v57 = vld [vmem:[%s5470_s8] sm:$0xff] }
 0x21c   : > { %v5217_v53 = vmul.f32 %v3542_v14, %v2076_v16  ;;  %3227 = vmatpush3.msra.mxu1 %v2450_v57 }
 0x21d   : > { %v2360_v15 = vsel %vm980_vm2, %v5215_v31, 0.0  ;;  %3231 = vmatprep.subr.bf16.mxu1 %v3285_v2 }
 0x21e   : > { %v2361_v38 = vadd.f32 %v2360_v15, %v2359_v8  ;;  %v2362_v55 = vsel %vm980_vm2, %v5217_v53, 0.0 }
 0x220   : > { %v2363_v49 = vadd.f32 %v2362_v55, %v2361_v38  ;;  %v5544_v38 = vld [vmem:[#allocation8_spill] sm:$0xff] }
 0x222   : > { %v2364_v37 = vrot.slane %v2363_v49, 4 }
 0x224   : > { %v2365_v9 = vadd.f32 %v2364_v37, %v2363_v49  ;;  %v5545_v49 = vld [vmem:[#allocation10_spill] sm:$0xff] }
 0x226   : > { %v2366_v29 = vrot.slane %v2365_v9, 2 }
 0x228   : > { %v2367_v17 = vadd.f32 %v2366_v29, %v2365_v9  ;;  %v5546_v9 = vld [vmem:[#allocation13_spill] sm:$0xff] }
 0x22a   : > { %v2368_v45 = vrot.slane %v2367_v17, 1 }
 0x22c   : > { %v2369_v44 = vadd.f32 %v2368_v45, %v2367_v17  ;;  %v5547_v45 = vld [vmem:[#allocation15_spill] sm:$0xff] }
 0x22e   : > { %v2371_v48 = vmul.f32 0.00390625, %v2369_v44 }
 0x230   : > { %3224 = vmatmul.mubr.msk.f32.vlgmr.msra.gmra.mrb[32].mxu0 %vm980_vm2, %v2371_v48  ;;  %v5548_v48 = vld [vmem:[#allocation16_spill] sm:$0xff] }
 0x303   : > { %v2445_v16 = vpop.f32.mrb[32].mxu0 }
 0x304   : > { %v2449_v18 = vmax.f32 %v2445_v16, 0.0  ;;  %v3225_v42 = vpop.f32.mrb[33].mxu0  ;;  %v5549_v16 = vld [vmem:[#allocation17_spill] sm:$0xff] }
 0x305   : > { %v5550_v42 = vld [vmem:[#allocation18_spill] sm:$0xff] }
 0x306   : > { %3229 = vmatmul.mubr.msk.f32.vlgmr.msra.gmra.mrb[0].mxu1 %vm464_vm1, %v2449_v18 }
 0x307   : > { %3232 = vmatpush3.bf16.msra.mxu1 %v3285_v2 }
 0x308   : > { %3233 = vmatprep.subr.bf16.mxu1 %v3286_v63 }
 0x30b   : > { %3234 = vmatpush3.bf16.msra.mxu1 %v3286_v63 }
 0x3d9   : > { %v2520_v34 = vpop.f32.mrb[0].mxu1 }
 0x3da   : > { %v3114_v11 = vmul.f32 -1.442695, %v2520_v34  ;;  %v3230_v35 = vpop.f32.mrb[1].mxu1 }
 0x3dc   : > { %3543 = vpow2.f32 %v3114_v11  ;;  %v5551_v11 = vld [vmem:[#allocation19_spill] sm:$0xff] }
 0x3e6   : > { %v3544_v1 = vpop.eup %3543 }
 0x3e7   : > { %v2527_v28 = vadd.f32 1.0, %v3544_v1  ;;  %v5552_v1 = vld [vmem:[#allocation20_spill] sm:$0xff] }
 0x3e9   : > { %3545 = vrcp.f32 %v2527_v28 }
 0x3f3   : > { %v3546_v46 = vpop.eup %3545 }
 0x3f4   : > { %v2533_v21 = vrot.slane %v3546_v46, %v2532_v50 }
 0x3f6   : > { %v2534_v36 = vmul.f32 %v2533_v21, %v5535_v26  ;;  %v2535_v30 = vmul.f32 %v2533_v21, %v5536_v12  ;;  %v2536_v23 = vmul.f32 %v2533_v21, %v5537_v41  ;;  %v2537_v47 = vmul.f32 %v2533_v21, %v5538_v33 }
 0x3f7   : > { %v2538_v52 = vmul.f32 %v2533_v21, %v5539_v5  ;;  %v2539_v62 = vmul.f32 %v2533_v21, %v4552_v32  ;;  %v2540_v0 = vmul.f32 %v2533_v21, %v4584_v22  ;;  %v2541_v27 = vmul.f32 %v2533_v21, %v5540_v61  ;;  %v5543_v32 = vld [vmem:[#allocation6_spill] sm:$0xff] }
 0x3f8   : > { %v2566_v3 = vpack.c.bf16 %v2535_v30, %v2534_v36  ;;  %v2567_v24 = vpack.c.bf16 %v2537_v47, %v2536_v23  ;;  %v2542_v25 = vmul.f32 %v2533_v21, %v5541_v13  ;;  %v2543_v40 = vmul.f32 %v2533_v21, %v5542_v10  ;;  %v3566_v13 = vld [vmem:[%s3692_s28] sm:$0xff] }
 0x3f9   : > { %v2568_v7 = vpack.c.bf16 %v2539_v62, %v2538_v52  ;;  %v2569_v14 = vpack.c.bf16 %v2541_v27, %v2540_v0  ;;  %v2544_v15 = vmul.f32 %v2533_v21, %v5543_v32  ;;  %v2545_v55 = vmul.f32 %v2533_v21, %v5544_v38  ;;  %v3565_v0 = vld [vmem:[%s3692_s28 + $0x10] sm:$0xff] }
 0x3fa   : > { %3235 = vmatprep.mubr.msk.bf16.mxu1 %vm980_vm2, %v2566_v3  ;;  %v2570_v8 = vpack.c.bf16 %v2543_v40, %v2542_v25  ;;  %v2546_v37 = vmul.f32 %v2533_v21, %v5545_v49  ;;  %v2547_v22 = vmul.f32 %v2533_v21, %v5546_v9  ;;  %v2548_v44 = vmul.f32 %v2533_v21, %v5547_v45  ;;  %v3567_v40 = vld [vmem:[%s3692_s28 + $0x18] sm:$0xff] }
 0x3fb   : > { %3236 = vmatmul.mubr.msk.bf16.vlgmr.msra.gmra.mrb[4].mxu1 %vm980_vm2, %v2567_v24  ;;  %v2571_v29 = vpack.c.bf16 %v2545_v55, %v2544_v15  ;;  %v2549_v57 = vmul.f32 %v2533_v21, %v5548_v48  ;;  %v2550_v18 = vmul.f32 %v2533_v21, %v5549_v16  ;;  %v2551_v2 = vmul.f32 %v2533_v21, %v5550_v42  ;;  %v3570_v16 = vld [vmem:[%s3692_s28 + $0x20] sm:$0xff] }
 0x3fc   : > { %3239 = vmatprep.mubr.msk.bf16.mxu1 %vm980_vm2, %v2568_v7  ;;  %v2572_v17 = vpack.c.bf16 %v2547_v22, %v2546_v37  ;;  %v2552_v35 = vmul.f32 %v2533_v21, %v5551_v11  ;;  %v2553_v28 = vmul.f32 %v2533_v21, %v5552_v1  ;;  %v2554_v56 = vmul.f32 %v2533_v21, %v5137_v60 }
 0x3fd   : > { %v2573_v63 = vpack.c.bf16 %v2549_v57, %v2548_v44  ;;  %v2574_v34 = vpack.c.bf16 %v2551_v2, %v2550_v18  ;;  %v2555_v6 = vmul.f32 %v2533_v21, %v5166_v43  ;;  %v2556_v26 = vmul.f32 %v2533_v21, %v5174_v4  ;;  %v3569_v44 = vld [vmem:[%s3692_s28 + $0x30] sm:$0xff]  ;;  %v3571_v2 = vld [vmem:[%s3692_s28 + $0x38] sm:$0xff] }
 0x3fe   : > { %v2575_v50 = vpack.c.bf16 %v2553_v28, %v2552_v35  ;;  %v2557_v36 = vmul.f32 %v2533_v21, %v5180_v59  ;;  %v2558_v12 = vmul.f32 %v2533_v21, %v5185_v54  ;;  %v2559_v30 = vmul.f32 %v2533_v21, %v5190_v58 }
 0x3ff   : > { %v2576_v46 = vpack.c.bf16 %v2555_v6, %v2554_v56  ;;  %v2560_v60 = vmul.f32 %v2533_v21, %v5197_v19  ;;  %v2561_v43 = vmul.f32 %v2533_v21, %v5200_v51  ;;  %v2562_v33 = vmul.f32 %v2533_v21, %v5203_v20  ;;  %v5285_v19 = vld [vmem:[%s5472_s10] ss:$0 sm:$0xff] }
 0x400   : > { %v2577_v41 = vpack.c.bf16 %v2557_v36, %v2556_v26  ;;  %v2578_v23 = vpack.c.bf16 %v2559_v30, %v2558_v12  ;;  %v2563_v4 = vmul.f32 %v2533_v21, %v5211_v39  ;;  %v2564_v54 = vmul.f32 %v2533_v21, %v5215_v31  ;;  %v5290_v20 = vld [vmem:[%s5473_s11] ss:$0 sm:$0xff]  ;;  %v3573_v30 = vld [vmem:[%s3692_s28 + $0x50] sm:$0xff] }
 0x401   : > { %v2579_v47 = vpack.c.bf16 %v2561_v43, %v2560_v60  ;;  %v2565_v58 = vmul.f32 %v2533_v21, %v5217_v53  ;;  %v3574_v60 = vld [vmem:[%s3692_s28 + $0x40] sm:$0xff] }
 0x402   : > { %v2580_v59 = vpack.c.bf16 %v2563_v4, %v2562_v33  ;;  %v3575_v4 = vld [vmem:[%s3692_s28 + $0x58] sm:$0xff] }
 0x403   : > { %3240 = vmatmul.mubr.msk.bf16.gmra.mrb[8].mxu1 %vm980_vm2, %v2569_v14  ;;  %v2581_v5 = vpack.c.bf16 %v2565_v58, %v2564_v54 }
 0x404   : > { %3243 = vmatprep.mubr.msk.bf16.mxu1 %vm980_vm2, %v2570_v8  ;;  %v3568_v8 = vld [vmem:[%s3692_s28 + $0x8] sm:$0xff] }
 0x40b   : > { %3244 = vmatmul.mubr.msk.bf16.gmra.mrb[12].mxu1 %vm980_vm2, %v2571_v29 }
 0x40c   : > { %3247 = vmatprep.mubr.msk.bf16.mxu1 %vm980_vm2, %v2572_v17 }
 0x413   : > { %3248 = vmatmul.mubr.msk.bf16.gmra.mrb[16].mxu1 %vm980_vm2, %v2573_v63 }
 0x414   : > { %3251 = vmatprep.mubr.msk.bf16.mxu1 %vm980_vm2, %v2574_v34  ;;  %v3572_v34 = vld [vmem:[%s3692_s28 + $0x28] sm:$0xff] }
 0x41b   : > { %3252 = vmatmul.mubr.msk.bf16.gmra.mrb[20].mxu1 %vm980_vm2, %v2575_v50 }
 0x41c   : > { %3255 = vmatprep.mubr.msk.bf16.mxu1 %vm980_vm2, %v2576_v46 }
 0x423   : > { %3256 = vmatmul.mubr.msk.bf16.gmra.mrb[24].mxu1 %vm980_vm2, %v2577_v41 }
 0x424   : > { %3259 = vmatprep.mubr.msk.bf16.mxu1 %vm980_vm2, %v2578_v23 }
 0x42b   : > { %3260 = vmatmul.mubr.msk.bf16.gmra.mrb[28].mxu1 %vm980_vm2, %v2579_v47 }
 0x42c   : > { %3263 = vmatprep.mubr.msk.bf16.mxu1 %vm980_vm2, %v2580_v59  ;;  %v3576_v59 = vld [vmem:[%s3692_s28 + $0x48] sm:$0xff] }
 0x433   : > { %3264 = vmatmul.mubr.msk.bf16.gmra.mrb[32].mxu1 %vm980_vm2, %v2581_v5 }
 0x4ce   : > { %v3237_v51 = vpop.f32.mrb[4].mxu1 }
 0x4cf   : > { %v2816_v39 = vmul.f32 %v3237_v51, %v5285_v19  ;;  %v2680_v31 = vpop.f32.mrb[5].mxu1 }
 0x4d0   : > { %v2814_v53 = vmul.f32 %v5285_v19, %v2680_v31  ;;  %v3238_v21 = vpop.f32.mrb[6].mxu1 }
 0x4d1   : > { %v2855_v52 = vadd.f32 %v5290_v20, %v2816_v39  ;;  %v2817_v62 = vmul.f32 %v3238_v21, %v5285_v19  ;;  %v2683_v3 = vpop.f32.mrb[7].mxu1 }
 0x4d2   : > { %v2853_v24 = vadd.f32 %v5290_v20, %v2814_v53  ;;  %v2815_v7 = vmul.f32 %v5285_v19, %v2683_v3 }
 0x4d3   : > { %v2887_v61 = vadd.f32 %v3565_v0, %v2855_v52  ;;  %v2856_v27 = vadd.f32 %v5290_v20, %v2817_v62 }
 0x4d4   : > { %v2885_v25 = vadd.f32 %v3566_v13, %v2853_v24  ;;  %v2854_v10 = vadd.f32 %v5290_v20, %v2815_v7  ;;  %v3577_v24 = vld [vmem:[%s3692_s28 + $0x70] sm:$0xff] }
 0x4d5   : > { %2919 = vst.msk [vmem:[%s5301_s26 + $0x10] sm:$0xff] %vm464_vm1, %v2887_v61  ;;  %v2888_v14 = vadd.f32 %v3567_v40, %v2856_v27  ;;  %v3578_v61 = vld [vmem:[%s3692_s28 + $0x60] sm:$0xff]  ;;  %v3580_v40 = vld [vmem:[%s3692_s28 + $0x68] sm:$0xff] }
 0x4d6   : > { %2917 = vst.msk [vmem:[%s5301_s26] sm:$0xff] %vm464_vm1, %v2885_v25  ;;  %v2886_v32 = vadd.f32 %v3568_v8, %v2854_v10  ;;  %v3241_v15 = vpop.f32.mrb[8].mxu1  ;;  %v3579_v25 = vld [vmem:[%s3692_s28 + $0x78] sm:$0xff] }
 0x4d7   : > { %2920 = vst.msk [vmem:[%s5301_s26 + $0x18] sm:$0xff] %vm464_vm1, %v2888_v14  ;;  %v2820_v38 = vmul.f32 %v3241_v15, %v5285_v19  ;;  %v2696_v55 = vpop.f32.mrb[9].mxu1 }
 0x4d8   : > { %2918 = vst.msk [vmem:[%s5301_s26 + $0x8] sm:$0xff] %vm464_vm1, %v2886_v32  ;;  %v2818_v49 = vmul.f32 %v5285_v19, %v2696_v55  ;;  %v3242_v37 = vpop.f32.mrb[10].mxu1 }
 0x4d9   : > { %v2859_v9 = vadd.f32 %v5290_v20, %v2820_v38  ;;  %v2821_v22 = vmul.f32 %v3242_v37, %v5285_v19  ;;  %v2699_v29 = vpop.f32.mrb[11].mxu1 }
 0x4da   : > { %v2857_v17 = vadd.f32 %v5290_v20, %v2818_v49  ;;  %v2819_v45 = vmul.f32 %v5285_v19, %v2699_v29 }
 0x4db   : > { %v2891_v48 = vadd.f32 %v3569_v44, %v2859_v9  ;;  %v2860_v57 = vadd.f32 %v5290_v20, %v2821_v22 }
 0x4dc   : > { %v2889_v18 = vadd.f32 %v3570_v16, %v2857_v17  ;;  %v2858_v42 = vadd.f32 %v5290_v20, %v2819_v45  ;;  %v3581_v17 = vld [vmem:[%s3692_s28 + $0x90] sm:$0xff] }
 0x4dd   : > { %2923 = vst.msk [vmem:[%s5301_s26 + $0x30] sm:$0xff] %vm464_vm1, %v2891_v48  ;;  %v2892_v63 = vadd.f32 %v3571_v2, %v2860_v57  ;;  %v3582_v48 = vld [vmem:[%s3692_s28 + $0x80] sm:$0xff]  ;;  %v3584_v2 = vld [vmem:[%s3692_s28 + $0x88] sm:$0xff] }
 0x4de   : > { %2921 = vst.msk [vmem:[%s5301_s26 + $0x20] sm:$0xff] %vm464_vm1, %v2889_v18  ;;  %v2890_v11 = vadd.f32 %v3572_v34, %v2858_v42  ;;  %v3245_v35 = vpop.f32.mrb[12].mxu1  ;;  %v3583_v18 = vld [vmem:[%s3692_s28 + $0x98] sm:$0xff] }
 0x4df   : > { %2924 = vst.msk [vmem:[%s5301_s26 + $0x38] sm:$0xff] %vm464_vm1, %v2892_v63  ;;  %v2824_v1 = vmul.f32 %v3245_v35, %v5285_v19  ;;  %v2712_v28 = vpop.f32.mrb[13].mxu1 }
 0x4e0   : > { %2922 = vst.msk [vmem:[%s5301_s26 + $0x28] sm:$0xff] %vm464_vm1, %v2890_v11  ;;  %v2822_v56 = vmul.f32 %v5285_v19, %v2712_v28  ;;  %v3246_v6 = vpop.f32.mrb[14].mxu1 }
 0x4e1   : > { %v2863_v50 = vadd.f32 %v5290_v20, %v2824_v1  ;;  %v2825_v46 = vmul.f32 %v3246_v6, %v5285_v19  ;;  %v2715_v26 = vpop.f32.mrb[15].mxu1 }
 0x4e2   : > { %v2861_v36 = vadd.f32 %v5290_v20, %v2822_v56  ;;  %v2823_v12 = vmul.f32 %v5285_v19, %v2715_v26 }
 0x4e3   : > { %v2895_v41 = vadd.f32 %v3573_v30, %v2863_v50  ;;  %v2864_v23 = vadd.f32 %v5290_v20, %v2825_v46 }
 0x4e4   : > { %v2893_v43 = vadd.f32 %v3574_v60, %v2861_v36  ;;  %v2862_v33 = vadd.f32 %v5290_v20, %v2823_v12  ;;  %v3585_v36 = vld [vmem:[%s3692_s28 + $0xb0] sm:$0xff] }
 0x4e5   : > { %2927 = vst.msk [vmem:[%s5301_s26 + $0x50] sm:$0xff] %vm464_vm1, %v2895_v41  ;;  %v2896_v47 = vadd.f32 %v3575_v4, %v2864_v23  ;;  %v3586_v41 = vld [vmem:[%s3692_s28 + $0xa0] sm:$0xff]  ;;  %v3588_v4 = vld [vmem:[%s3692_s28 + $0xa8] sm:$0xff] }
 0x4e6   : > { %2925 = vst.msk [vmem:[%s5301_s26 + $0x40] sm:$0xff] %vm464_vm1, %v2893_v43  ;;  %v2894_v54 = vadd.f32 %v3576_v59, %v2862_v33  ;;  %v3249_v58 = vpop.f32.mrb[16].mxu1  ;;  %v3587_v43 = vld [vmem:[%s3692_s28 + $0xb8] sm:$0xff] }
 0x4e7   : > { %2928 = vst.msk [vmem:[%s5301_s26 + $0x58] sm:$0xff] %vm464_vm1, %v2896_v47  ;;  %v2828_v5 = vmul.f32 %v3249_v58, %v5285_v19  ;;  %v2728_v51 = vpop.f32.mrb[17].mxu1 }
 0x4e8   : > { %2926 = vst.msk [vmem:[%s5301_s26 + $0x48] sm:$0xff] %vm464_vm1, %v2894_v54  ;;  %v2826_v39 = vmul.f32 %v5285_v19, %v2728_v51  ;;  %v3250_v31 = vpop.f32.mrb[18].mxu1 }
 0x4e9   : > { %v2867_v53 = vadd.f32 %v5290_v20, %v2828_v5  ;;  %v2829_v21 = vmul.f32 %v3250_v31, %v5285_v19  ;;  %v2731_v52 = vpop.f32.mrb[19].mxu1 }
 0x4ea   : > { %v2865_v62 = vadd.f32 %v5290_v20, %v2826_v39  ;;  %v2827_v3 = vmul.f32 %v5285_v19, %v2731_v52 }
 0x4eb   : > { %v2899_v7 = vadd.f32 %v3577_v24, %v2867_v53  ;;  %v2868_v0 = vadd.f32 %v5290_v20, %v2829_v21 }
 0x4ec   : > { %v2897_v27 = vadd.f32 %v3578_v61, %v2865_v62  ;;  %v2866_v13 = vadd.f32 %v5290_v20, %v2827_v3  ;;  %v3589_v62 = vld [vmem:[%s3692_s28 + $0xd0] sm:$0xff] }
 0x4ed   : > { %2931 = vst.msk [vmem:[%s5301_s26 + $0x70] sm:$0xff] %vm464_vm1, %v2899_v7  ;;  %v2900_v10 = vadd.f32 %v3579_v25, %v2868_v0  ;;  %v3590_v7 = vld [vmem:[%s3692_s28 + $0xc0] sm:$0xff]  ;;  %v3592_v25 = vld [vmem:[%s3692_s28 + $0xc8] sm:$0xff] }
 0x4ee   : > { %2929 = vst.msk [vmem:[%s5301_s26 + $0x60] sm:$0xff] %vm464_vm1, %v2897_v27  ;;  %v2898_v14 = vadd.f32 %v3580_v40, %v2866_v13  ;;  %v3253_v8 = vpop.f32.mrb[20].mxu1  ;;  %v3591_v27 = vld [vmem:[%s3692_s28 + $0xd8] sm:$0xff] }
 0x4ef   : > { %2932 = vst.msk [vmem:[%s5301_s26 + $0x78] sm:$0xff] %vm464_vm1, %v2900_v10  ;;  %v2832_v32 = vmul.f32 %v3253_v8, %v5285_v19  ;;  %v2744_v15 = vpop.f32.mrb[21].mxu1 }
 0x4f0   : > { %2930 = vst.msk [vmem:[%s5301_s26 + $0x68] sm:$0xff] %vm464_vm1, %v2898_v14  ;;  %v2830_v38 = vmul.f32 %v5285_v19, %v2744_v15  ;;  %v3254_v55 = vpop.f32.mrb[22].mxu1 }
 0x4f1   : > { %v2871_v49 = vadd.f32 %v5290_v20, %v2832_v32  ;;  %v2833_v37 = vmul.f32 %v3254_v55, %v5285_v19  ;;  %v2747_v9 = vpop.f32.mrb[23].mxu1 }
 0x4f2   : > { %v2869_v22 = vadd.f32 %v5290_v20, %v2830_v38  ;;  %v2831_v29 = vmul.f32 %v5285_v19, %v2747_v9 }
 0x4f3   : > { %v2903_v45 = vadd.f32 %v3581_v17, %v2871_v49  ;;  %v2872_v44 = vadd.f32 %v5290_v20, %v2833_v37 }
 0x4f4   : > { %v2901_v57 = vadd.f32 %v3582_v48, %v2869_v22  ;;  %v2870_v16 = vadd.f32 %v5290_v20, %v2831_v29  ;;  %v3593_v22 = vld [vmem:[%s3692_s28 + $0xf0] sm:$0xff] }
 0x4f5   : > { %2935 = vst.msk [vmem:[%s5301_s26 + $0x90] sm:$0xff] %vm464_vm1, %v2903_v45  ;;  %v2904_v42 = vadd.f32 %v3583_v18, %v2872_v44  ;;  %v3594_v45 = vld [vmem:[%s3692_s28 + $0xe0] sm:$0xff]  ;;  %v3596_v18 = vld [vmem:[%s3692_s28 + $0xe8] sm:$0xff] }
 0x4f6   : > { %2933 = vst.msk [vmem:[%s5301_s26 + $0x80] sm:$0xff] %vm464_vm1, %v2901_v57  ;;  %v2902_v63 = vadd.f32 %v3584_v2, %v2870_v16  ;;  %v3257_v34 = vpop.f32.mrb[24].mxu1  ;;  %v3595_v57 = vld [vmem:[%s3692_s28 + $0xf8] sm:$0xff] }
 0x4f7   : > { %2936 = vst.msk [vmem:[%s5301_s26 + $0x98] sm:$0xff] %vm464_vm1, %v2904_v42  ;;  %v2836_v11 = vmul.f32 %v3257_v34, %v5285_v19  ;;  %v2760_v35 = vpop.f32.mrb[25].mxu1 }
 0x4f8   : > { %2934 = vst.msk [vmem:[%s5301_s26 + $0x88] sm:$0xff] %vm464_vm1, %v2902_v63  ;;  %v2834_v1 = vmul.f32 %v5285_v19, %v2760_v35  ;;  %v3258_v28 = vpop.f32.mrb[26].mxu1 }
 0x4f9   : > { %v2875_v56 = vadd.f32 %v5290_v20, %v2836_v11  ;;  %v2837_v6 = vmul.f32 %v3258_v28, %v5285_v19  ;;  %v2763_v50 = vpop.f32.mrb[27].mxu1 }
 0x4fa   : > { %v2873_v46 = vadd.f32 %v5290_v20, %v2834_v1  ;;  %v2835_v26 = vmul.f32 %v5285_v19, %v2763_v50 }
 0x4fb   : > { %v2907_v12 = vadd.f32 %v3585_v36, %v2875_v56  ;;  %v2876_v30 = vadd.f32 %v5290_v20, %v2837_v6 }
 0x4fc   : > { %v2905_v23 = vadd.f32 %v3586_v41, %v2873_v46  ;;  %v2874_v60 = vadd.f32 %v5290_v20, %v2835_v26 }
 0x4fd   : > { %2939 = vst.msk [vmem:[%s5301_s26 + $0xb0] sm:$0xff] %vm464_vm1, %v2907_v12  ;;  %v2908_v33 = vadd.f32 %v3587_v43, %v2876_v30 }
 0x4fe   : > { %2937 = vst.msk [vmem:[%s5301_s26 + $0xa0] sm:$0xff] %vm464_vm1, %v2905_v23  ;;  %v2906_v47 = vadd.f32 %v3588_v4, %v2874_v60  ;;  %v3261_v59 = vpop.f32.mrb[28].mxu1 }
 0x4ff   : > { %2940 = vst.msk [vmem:[%s5301_s26 + $0xb8] sm:$0xff] %vm464_vm1, %v2908_v33  ;;  %v2840_v54 = vmul.f32 %v3261_v59, %v5285_v19  ;;  %v2776_v58 = vpop.f32.mrb[29].mxu1 }
 0x500   : > { %2938 = vst.msk [vmem:[%s5301_s26 + $0xa8] sm:$0xff] %vm464_vm1, %v2906_v47  ;;  %v2838_v5 = vmul.f32 %v5285_v19, %v2776_v58  ;;  %v3262_v51 = vpop.f32.mrb[30].mxu1 }
 0x501   : > { %v2879_v39 = vadd.f32 %v5290_v20, %v2840_v54  ;;  %v2841_v31 = vmul.f32 %v3262_v51, %v5285_v19  ;;  %v2779_v53 = vpop.f32.mrb[31].mxu1 }
 0x502   : > { %v2877_v21 = vadd.f32 %v5290_v20, %v2838_v5  ;;  %v2839_v52 = vmul.f32 %v5285_v19, %v2779_v53 }
 0x503   : > { %v2911_v3 = vadd.f32 %v3589_v62, %v2879_v39  ;;  %v2880_v24 = vadd.f32 %v5290_v20, %v2841_v31 }
 0x504   : > { %v2909_v0 = vadd.f32 %v3590_v7, %v2877_v21  ;;  %v2878_v61 = vadd.f32 %v5290_v20, %v2839_v52 }
 0x505   : > { %2943 = vst.msk [vmem:[%s5301_s26 + $0xd0] sm:$0xff] %vm464_vm1, %v2911_v3  ;;  %v2912_v13 = vadd.f32 %v3591_v27, %v2880_v24 }
 0x506   : > { %2941 = vst.msk [vmem:[%s5301_s26 + $0xc0] sm:$0xff] %vm464_vm1, %v2909_v0  ;;  %v2910_v10 = vadd.f32 %v3592_v25, %v2878_v61  ;;  %v3265_v40 = vpop.f32.mrb[32].mxu1 }
 0x507   : > { %2944 = vst.msk [vmem:[%s5301_s26 + $0xd8] sm:$0xff] %vm464_vm1, %v2912_v13  ;;  %v2844_v14 = vmul.f32 %v3265_v40, %v5285_v19  ;;  %v2792_v8 = vpop.f32.mrb[33].mxu1 }
 0x508   : > { %2942 = vst.msk [vmem:[%s5301_s26 + $0xc8] sm:$0xff] %vm464_vm1, %v2910_v10  ;;  %v2842_v32 = vmul.f32 %v5285_v19, %v2792_v8  ;;  %v3266_v15 = vpop.f32.mrb[34].mxu1 }
 0x509   : > { %v2883_v38 = vadd.f32 %v5290_v20, %v2844_v14  ;;  %v2845_v55 = vmul.f32 %v3266_v15, %v5285_v19  ;;  %v2795_v49 = vpop.f32.mrb[35].mxu1 }
 0x50a   : > { %v2881_v37 = vadd.f32 %v5290_v20, %v2842_v32  ;;  %v2843_v9 = vmul.f32 %v5285_v19, %v2795_v49 }
 0x50b   : > { %v2915_v29 = vadd.f32 %v3593_v22, %v2883_v38  ;;  %v2884_v17 = vadd.f32 %v5290_v20, %v2845_v55 }
 0x50c   : > { %v2913_v44 = vadd.f32 %v3594_v45, %v2881_v37  ;;  %v2882_v48 = vadd.f32 %v5290_v20, %v2843_v9 }
 0x50d   : > { %2947 = vst.msk [vmem:[%s5301_s26 + $0xf0] sm:$0xff] %vm464_vm1, %v2915_v29  ;;  %v2916_v16 = vadd.f32 %v3595_v57, %v2884_v17 }
 0x50e   : > { %2945 = vst.msk [vmem:[%s5301_s26 + $0xe0] sm:$0xff] %vm464_vm1, %v2913_v44  ;;  %v2914_v42 = vadd.f32 %v3596_v18, %v2882_v48 }
 0x50f   : > { %2948 = vst.msk [vmem:[%s5301_s26 + $0xf8] sm:$0xff] %vm464_vm1, %v2916_v16 }
 0x510   : > { %2946 = vst.msk [vmem:[%s5301_s26 + $0xe8] sm:$0xff] %vm464_vm1, %v2914_v42 }
 0x511 PF: > { %s22_s21 = sadd.s32 1, %s3603_s21  }
 0x512   : > { %p19_p4 = scmp.ge.s32.totalorder %s22_s21, 4  }
 0x514   :  { %21 = sbr.rel (!%p19_p4) target bundleno = 1 (0x1), region = 102 }

</bundles_post_ra>
